<compile_context>
chip_gen: v6e
topology: v6e:2x2x1
jax: 0.10.0
libtpu: 0.0.40
codegen_flags: <defaults>
</compile_context>

<pallas_src>
import math

import jax
import jax.numpy as jnp
from jax import lax
from jax.experimental import pallas as pl
from jax.experimental.pallas import tpu as pltpu

EPS = 1e-5
EMBED = 256
NUM_HEADS = 4
HEAD_DIM = EMBED // NUM_HEADS


# ----------------------------------------------------------------------------
# Pallas kernel: forward for one block of Bt batch elements (rows flattened).
# ----------------------------------------------------------------------------
def make_kernel(Bt, L):
    La = L // 8                         # sequence length seen by the attention
    R_attn = Bt * La
    scale = 1.0 / math.sqrt(HEAD_DIM)
    bf16 = jnp.bfloat16

    def kernel(x_ref,
               c1w0_ref, c1w1_ref, c1w2_ref, bn1s_ref, bn1h_ref,
               c2w0_ref, c2w1_ref, c2w2_ref, bn2s_ref, bn2h_ref,
               c3w0_ref, c3w1_ref, c3w2_ref, bn3s_ref, bn3h_ref,
               wqkv_ref, bqkv_ref, wo_ref, bo_ref,
               w1_ref, b1_ref, w2_ref, b2_ref,
               out_ref):

        def conv_bn_relu_pool(x, wt0_ref, wt1_ref, wt2_ref, s_ref, h_ref, Lc):
            # x: (R, Cin) f32 with R = Bt*Lc (batch flattened onto rows).
            R = x.shape[0]
            mdt = wt1_ref.dtype                    # f32 for conv1, bf16 for conv2/3
            pos = lax.broadcasted_iota(jnp.int32, (R, 1), 0) % Lc
            # +-1 row-shifted slabs via XLU sublane rotates; the wrap-around
            # rows are sample-boundary rows, zeroed by the mask.
            x_prev = jnp.where(pos == 0, 0.0, pltpu.roll(x, shift=1, axis=0))
            x_next = jnp.where(pos == Lc - 1, 0.0, pltpu.roll(x, shift=R - 1, axis=0))
            # Three accumulating per-tap matmuls (no (R, 3*Cin) im2col concat).
            y = jnp.dot(x.astype(mdt), wt1_ref[...],
                        preferred_element_type=jnp.float32)
            y = y + jnp.dot(x_prev.astype(mdt), wt0_ref[...],
                            preferred_element_type=jnp.float32)
            y = y + jnp.dot(x_next.astype(mdt), wt2_ref[...],
                            preferred_element_type=jnp.float32)
            y = jnp.maximum(y * s_ref[...] + h_ref[...], 0.0)     # bias+BN folded, ReLU
            Cout = y.shape[1]
            return jnp.max(y.reshape(R // 2, 2, Cout), axis=1)    # MaxPool1d(2)

        x = x_ref[...]                                            # (Bt*L, Cin) f32
        x = conv_bn_relu_pool(x, c1w0_ref, c1w1_ref, c1w2_ref, bn1s_ref, bn1h_ref, L)
        x = conv_bn_relu_pool(x, c2w0_ref, c2w1_ref, c2w2_ref, bn2s_ref, bn2h_ref, L // 2)
        x = conv_bn_relu_pool(x, c3w0_ref, c3w1_ref, c3w2_ref, bn3s_ref, bn3h_ref, L // 4)
        # x: (Bt*La, 256) f32

        # ---- 4-head self-attention (residual) ------------------------------
        # Single fused QKV matmul (N = 768); q/k/v splits are 128-lane aligned.
        qkv = jnp.dot(x.astype(bf16), wqkv_ref[...],
                      preferred_element_type=jnp.float32) + bqkv_ref[...]
        q3 = qkv[:, :EMBED].reshape(Bt, La, EMBED)
        k3 = qkv[:, EMBED:2 * EMBED].reshape(Bt, La, EMBED)
        v3 = qkv[:, 2 * EMBED:].reshape(Bt, La, EMBED)

        attn = jnp.zeros((R_attn, EMBED), jnp.float32)
        for h in range(NUM_HEADS):                 # tiny per-head score/softmax/PV
            lo, hi = h * HEAD_DIM, (h + 1) * HEAD_DIM
            qh = q3[:, :, lo:hi].astype(bf16)
            kh = k3[:, :, lo:hi].astype(bf16)
            vh = v3[:, :, lo:hi].astype(bf16)
            s = jnp.einsum("bqd,bkd->bqk", qh, kh,
                           preferred_element_type=jnp.float32) * scale
            s = s - jnp.max(s, axis=-1, keepdims=True)
            e = jnp.exp(s)
            p = e * pl.reciprocal(jnp.sum(e, axis=-1, keepdims=True), approx=False)
            oh = jnp.einsum("bqk,bkd->bqd", p.astype(bf16), vh,
                            preferred_element_type=jnp.float32)
            # Accumulate each head straight through its 8-aligned sublane slab
            # of W_o — no lane concat of the head outputs.
            attn = attn + jnp.dot(oh.reshape(R_attn, HEAD_DIM).astype(bf16),
                                  wo_ref[lo:hi, :],
                                  preferred_element_type=jnp.float32)
        # TODO(synk): per-head 64-lane q/k/v slices remain; a head-major
        # relayout would remove them but risks Mosaic reshape limitations.
        x = x + attn + bo_ref[...]                                # residual + out-proj bias

        # ---- fused classifier heads (Dropout == identity in eval) ----------
        feat = jnp.mean(x.reshape(Bt, La, EMBED), axis=1)         # (Bt, 256)
        hid = jnp.maximum(
            jnp.dot(feat.astype(bf16), w1_ref[...],
                    preferred_element_type=jnp.float32) + b1_ref[...],
            0.0)                                                  # [mut_hid | can_hid]
        out_ref[...] = (jnp.dot(hid.astype(bf16), w2_ref[...],
                                preferred_element_type=jnp.float32)
                        + b2_ref[...])                            # lane-dense (Bt, 256)

    return kernel


# ----------------------------------------------------------------------------
# Parameter setup (deterministic, PyTorch-shaped) and kernel-arg packing.
# ----------------------------------------------------------------------------
def init_torch_like_params(key, in_ch, num_mut, num_can):
    keys = iter(jax.random.split(key, 64))

    def nrm(shape, s=0.1):
        return (s * jax.random.normal(next(keys), shape)).astype(jnp.float32)

    p = {}
    p["conv1_w"], p["conv1_b"] = nrm((64, in_ch, 3)), nrm((64,))
    p["conv2_w"], p["conv2_b"] = nrm((128, 64, 3)), nrm((128,))
    p["conv3_w"], p["conv3_b"] = nrm((256, 128, 3)), nrm((256,))
    for i, c in zip((1, 2, 3), (64, 128, 256)):
        p[f"bn{i}_gamma"] = 1.0 + nrm((c,))
        p[f"bn{i}_beta"] = nrm((c,))
        p[f"bn{i}_mean"] = nrm((c,))
        p[f"bn{i}_var"] = 0.5 + jax.random.uniform(next(keys), (c,), dtype=jnp.float32)
    p["in_proj_w"], p["in_proj_b"] = nrm((3 * EMBED, EMBED)), nrm((3 * EMBED,))
    p["out_proj_w"], p["out_proj_b"] = nrm((EMBED, EMBED)), nrm((EMBED,))
    p["fcm1_w"], p["fcm1_b"] = nrm((128, 256)), nrm((128,))
    p["fcm2_w"], p["fcm2_b"] = nrm((num_mut, 128)), nrm((num_mut,))
    p["fcc1_w"], p["fcc1_b"] = nrm((128, 256)), nrm((128,))
    p["fcc2_w"], p["fcc2_b"] = nrm((num_can, 128)), nrm((num_can,))
    return p


def build_kernel_args(p, num_mut, num_can):
    bf16 = jnp.bfloat16
    f32 = jnp.float32

    def bn_fold(i, bias):
        # Eval-mode BN folded with the conv bias: y*s + h.
        s = p[f"bn{i}_gamma"] / jnp.sqrt(p[f"bn{i}_var"] + EPS)
        h = p[f"bn{i}_beta"] + (bias - p[f"bn{i}_mean"]) * s
        return s[None, :].astype(f32), h[None, :].astype(f32)

    args = []
    # Conv weights split per tap: tap0 -> x[i-1], tap1 -> x[i], tap2 -> x[i+1].
    # Conv1 (K = Cin = 5) stays f32; conv2/3 go bf16 for the MXU fast path.
    for i, wname, bname, wdt in ((1, "conv1_w", "conv1_b", f32),
                                 (2, "conv2_w", "conv2_b", bf16),
                                 (3, "conv3_w", "conv3_b", bf16)):
        taps = jnp.transpose(p[wname], (2, 1, 0))            # (3, Cin, Cout)
        s, h = bn_fold(i, p[bname])
        args += [taps[0].astype(wdt), taps[1].astype(wdt), taps[2].astype(wdt), s, h]

    # Fused QKV projection: columns [Wq.T | Wk.T | Wv.T] -> (256, 768).
    wqkv = p["in_proj_w"].T.astype(bf16)
    bqkv = p["in_proj_b"][None, :].astype(f32)
    args += [wqkv, bqkv,
             p["out_proj_w"].T.astype(bf16), p["out_proj_b"][None, :].astype(f32)]

    # Fused classifier heads: hidden = [mut_hidden | can_hidden] (256 lanes),
    # output = block-diagonal second layer padded to 128 lanes per head.
    w1 = jnp.concatenate([p["fcm1_w"].T, p["fcc1_w"].T], axis=1)   # (256, 256)
    b1 = jnp.concatenate([p["fcm1_b"], p["fcc1_b"]])[None, :]      # (1, 256)
    w2 = jnp.zeros((256, 256), f32)
    w2 = w2.at[:128, :num_mut].set(p["fcm2_w"].T)
    w2 = w2.at[128:, 128:128 + num_can].set(p["fcc2_w"].T)
    b2 = jnp.zeros((256,), f32)
    b2 = b2.at[:num_mut].set(p["fcm2_b"]).at[128:128 + num_can].set(p["fcc2_b"])
    args += [w1.astype(bf16), b1.astype(f32), w2.astype(bf16), b2[None, :].astype(f32)]
    return args


# ----------------------------------------------------------------------------
# Batch-block sizing: as large as comfortably fits VMEM (v7x has 64 MiB).
# ----------------------------------------------------------------------------
def _pick_block_batch(B, L, Cin, max_block_batch=None):
    La = L // 8
    # Rough per-sample f32-word footprint (slab + rolled copies + bf16 matmul
    # operands + attention intermediates), with slack.
    words = (4 * L * Cin
             + 4 * L * 64
             + 4 * (L // 2) * 128
             + 4 * (L // 4) * 256
             + 10 * La * 256
             + 2 * NUM_HEADS * La * La
             + 2048)
    bytes_per_sample = 4 * words
    budget = 24 * 1024 * 1024            # conservative; leaves headroom on v7x
    bt = max(1, min(budget // bytes_per_sample, 256))
    if max_block_batch is not None:
        bt = min(bt, max_block_batch)
    bt = min(bt, B)
    # Keep >= 2 grid steps for big batches so the "parallel" grid axis can
    # shard across v7x's two TensorCores (negligible overhead on v5e/v6e).
    if B >= 16:
        bt = min(bt, (B + 1) // 2)
    return int(max(1, bt))


# ----------------------------------------------------------------------------
# Wrapper calling pallas_call (grid over blocks of Bt batch elements).
# ----------------------------------------------------------------------------
def dual_task_forward(x_ncl, params, max_block_batch=None):
    B, Cin, L = x_ncl.shape
    assert L % 8 == 0, "three MaxPool1d(2) stages require L % 8 == 0"
    num_mut = params["fcm2_b"].shape[0]
    num_can = params["fcc2_b"].shape[0]
    assert num_mut <= 128 and num_can <= 128

    Bt = _pick_block_batch(B, L, Cin, max_block_batch)
    if Bt < B:
        Bt = max(8, (Bt // 8) * 8)       # output block sublane dim must be 8-aligned
    num_blocks = -(-B // Bt)
    B_pad = num_blocks * Bt

    x = jnp.transpose(x_ncl, (0, 2, 1)).astype(jnp.float32)        # (B, L, Cin)
    if B_pad != B:
        x = jnp.concatenate(
            [x, jnp.zeros((B_pad - B, L, Cin), jnp.float32)], axis=0)
    x_flat = x.reshape(B_pad * L, Cin)                             # rows contiguous per sample

    w_args = build_kernel_args(params, num_mut, num_can)
    kernel = make_kernel(Bt, L)

    in_specs = [pl.BlockSpec((Bt * L, Cin), lambda i: (i, 0))]
    in_specs += [pl.BlockSpec(a.shape, lambda i: (0, 0)) for a in w_args]

    out = pl.pallas_call(
        kernel,
        grid=(num_blocks,),
        in_specs=in_specs,
        out_specs=pl.BlockSpec((Bt, 256), lambda i: (i, 0)),
        out_shape=jax.ShapeDtypeStruct((B_pad, 256), jnp.float32),
        compiler_params=pltpu.CompilerParams(
            dimension_semantics=("parallel",),
            vmem_limit_bytes=48 * 1024 * 1024),
    )(x_flat, *w_args)

    mut_out = out[:B, :num_mut]
    can_out = out[:B, 128:128 + num_can]
    return mut_out, can_out


# ----------------------------------------------------------------------------
# Pure-JAX reference (mirrors PyTorch eval-mode forward) for a sanity check.
# ----------------------------------------------------------------------------
def reference_forward(x, p):
    def bn(h, i):
        g = p[f"bn{i}_gamma"][None, :, None]
        b = p[f"bn{i}_beta"][None, :, None]
        m = p[f"bn{i}_mean"][None, :, None]
        v = p[f"bn{i}_var"][None, :, None]
        return (h - m) / jnp.sqrt(v + EPS) * g + b

    def conv(h, w, b):
        y = lax.conv_general_dilated(h, w, window_strides=(1,), padding=[(1, 1)],
                                     dimension_numbers=("NCH", "OIH", "NCH"))
        return y + b[None, :, None]

    def pool(h):
        B, C, L = h.shape
        return jnp.max(h.reshape(B, C, L // 2, 2), axis=-1)

    h = x.astype(jnp.float32)
    h = pool(jax.nn.relu(bn(conv(h, p["conv1_w"], p["conv1_b"]), 1)))
    h = pool(jax.nn.relu(bn(conv(h, p["conv2_w"], p["conv2_b"]), 2)))
    h = pool(jax.nn.relu(bn(conv(h, p["conv3_w"], p["conv3_b"]), 3)))

    xa = jnp.transpose(h, (0, 2, 1))                               # (B, L/8, 256)
    E, H, D = EMBED, NUM_HEADS, HEAD_DIM
    wq, wk, wv = p["in_proj_w"][:E], p["in_proj_w"][E:2 * E], p["in_proj_w"][2 * E:]
    bq, bk, bv = p["in_proj_b"][:E], p["in_proj_b"][E:2 * E], p["in_proj_b"][2 * E:]
    q, k, v = xa @ wq.T + bq, xa @ wk.T + bk, xa @ wv.T + bv
    B_, L_, _ = xa.shape

    def split(t):
        return jnp.transpose(t.reshape(B_, L_, H, D), (0, 2, 1, 3))

    qh, kh, vh = split(q), split(k), split(v)
    s = jnp.einsum("bhqd,bhkd->bhqk", qh, kh) / (D ** 0.5)
    pa = jax.nn.softmax(s, axis=-1)
    o = jnp.einsum("bhqk,bhkd->bhqd", pa, vh)
    o = jnp.transpose(o, (0, 2, 1, 3)).reshape(B_, L_, E)
    o = o @ p["out_proj_w"].T + p["out_proj_b"]

    h = h + jnp.transpose(o, (0, 2, 1))
    feat = jnp.mean(h, axis=2)
    mf = jax.nn.relu(feat @ p["fcm1_w"].T + p["fcm1_b"])
    mo = mf @ p["fcm2_w"].T + p["fcm2_b"]
    cf = jax.nn.relu(feat @ p["fcc1_w"].T + p["fcc1_b"])
    co = cf @ p["fcc2_w"].T + p["fcc2_b"]
    return mo, co


if __name__ == "__main__":
    key = jax.random.PRNGKey(0)
    kx, kp = jax.random.split(key)
    B, Cin, L = 2, 5, 16
    num_mut, num_can = 6, 4

    x = jax.random.normal(kx, (B, Cin, L), dtype=jnp.float32)       # PyTorch (B, C, L)
    params = init_torch_like_params(kp, Cin, num_mut, num_can)

    mut_out, can_out = dual_task_forward(x, params)
    jax.block_until_ready((mut_out, can_out))

    ref_mut, ref_can = reference_forward(x, params)
    assert mut_out.shape == (B, num_mut) and can_out.shape == (B, num_can)
    assert jnp.allclose(mut_out, ref_mut, atol=5e-2, rtol=5e-2)
    assert jnp.allclose(can_out, ref_can, atol=5e-2, rtol=5e-2)

    print("KERNEL_OK")
</pallas_src>

<mosaic_0001>
module attributes {stable_mosaic.version = 11 : i64} {
  func.func @kernel(%arg0: i32, %arg1: memref<32x5xf32, #tpu.memory_space<vmem>>, %arg2: memref<5x64xf32, #tpu.memory_space<vmem>>, %arg3: memref<5x64xf32, #tpu.memory_space<vmem>>, %arg4: memref<5x64xf32, #tpu.memory_space<vmem>>, %arg5: memref<1x64xf32, #tpu.memory_space<vmem>>, %arg6: memref<1x64xf32, #tpu.memory_space<vmem>>, %arg7: memref<64x128xbf16, #tpu.memory_space<vmem>>, %arg8: memref<64x128xbf16, #tpu.memory_space<vmem>>, %arg9: memref<64x128xbf16, #tpu.memory_space<vmem>>, %arg10: memref<1x128xf32, #tpu.memory_space<vmem>>, %arg11: memref<1x128xf32, #tpu.memory_space<vmem>>, %arg12: memref<128x256xbf16, #tpu.memory_space<vmem>>, %arg13: memref<128x256xbf16, #tpu.memory_space<vmem>>, %arg14: memref<128x256xbf16, #tpu.memory_space<vmem>>, %arg15: memref<1x256xf32, #tpu.memory_space<vmem>>, %arg16: memref<1x256xf32, #tpu.memory_space<vmem>>, %arg17: memref<256x768xbf16, #tpu.memory_space<vmem>>, %arg18: memref<1x768xf32, #tpu.memory_space<vmem>>, %arg19: memref<256x256xbf16, #tpu.memory_space<vmem>>, %arg20: memref<1x256xf32, #tpu.memory_space<vmem>>, %arg21: memref<256x256xbf16, #tpu.memory_space<vmem>>, %arg22: memref<1x256xf32, #tpu.memory_space<vmem>>, %arg23: memref<256x256xbf16, #tpu.memory_space<vmem>>, %arg24: memref<1x256xf32, #tpu.memory_space<vmem>>, %arg25: memref<2x256xf32, #tpu.memory_space<vmem>>) attributes {dimension_semantics = [#tpu.dimension_semantics<parallel>], iteration_bounds = array<i64: 1>, scalar_prefetch = 0 : i64, scratch_operands = 0 : i64, tpu.core_type = #tpu.core_type<tc>, window_params = [{transform_indices = @transform_0, window_bounds = array<i64: 32, 5>}, {pipeline_mode = #tpu.pipeline_mode<synchronous>, transform_indices = @transform_1, window_bounds = array<i64: 5, 64>}, {pipeline_mode = #tpu.pipeline_mode<synchronous>, transform_indices = @transform_2, window_bounds = array<i64: 5, 64>}, {pipeline_mode = #tpu.pipeline_mode<synchronous>, transform_indices = @transform_3, window_bounds = array<i64: 5, 64>}, {pipeline_mode = #tpu.pipeline_mode<synchronous>, transform_indices = @transform_4, window_bounds = array<i64: 1, 64>}, {pipeline_mode = #tpu.pipeline_mode<synchronous>, transform_indices = @transform_5, window_bounds = array<i64: 1, 64>}, {pipeline_mode = #tpu.pipeline_mode<synchronous>, transform_indices = @transform_6, window_bounds = array<i64: 64, 128>}, {pipeline_mode = #tpu.pipeline_mode<synchronous>, transform_indices = @transform_7, window_bounds = array<i64: 64, 128>}, {pipeline_mode = #tpu.pipeline_mode<synchronous>, transform_indices = @transform_8, window_bounds = array<i64: 64, 128>}, {pipeline_mode = #tpu.pipeline_mode<synchronous>, transform_indices = @transform_9, window_bounds = array<i64: 1, 128>}, {pipeline_mode = #tpu.pipeline_mode<synchronous>, transform_indices = @transform_10, window_bounds = array<i64: 1, 128>}, {pipeline_mode = #tpu.pipeline_mode<synchronous>, transform_indices = @transform_11, window_bounds = array<i64: 128, 256>}, {pipeline_mode = #tpu.pipeline_mode<synchronous>, transform_indices = @transform_12, window_bounds = array<i64: 128, 256>}, {pipeline_mode = #tpu.pipeline_mode<synchronous>, transform_indices = @transform_13, window_bounds = array<i64: 128, 256>}, {pipeline_mode = #tpu.pipeline_mode<synchronous>, transform_indices = @transform_14, window_bounds = array<i64: 1, 256>}, {pipeline_mode = #tpu.pipeline_mode<synchronous>, transform_indices = @transform_15, window_bounds = array<i64: 1, 256>}, {pipeline_mode = #tpu.pipeline_mode<synchronous>, transform_indices = @transform_16, window_bounds = array<i64: 256, 768>}, {pipeline_mode = #tpu.pipeline_mode<synchronous>, transform_indices = @transform_17, window_bounds = array<i64: 1, 768>}, {pipeline_mode = #tpu.pipeline_mode<synchronous>, transform_indices = @transform_18, window_bounds = array<i64: 256, 256>}, {pipeline_mode = #tpu.pipeline_mode<synchronous>, transform_indices = @transform_19, window_bounds = array<i64: 1, 256>}, {pipeline_mode = #tpu.pipeline_mode<synchronous>, transform_indices = @transform_20, window_bounds = array<i64: 256, 256>}, {pipeline_mode = #tpu.pipeline_mode<synchronous>, transform_indices = @transform_21, window_bounds = array<i64: 1, 256>}, {pipeline_mode = #tpu.pipeline_mode<synchronous>, transform_indices = @transform_22, window_bounds = array<i64: 256, 256>}, {pipeline_mode = #tpu.pipeline_mode<synchronous>, transform_indices = @transform_23, window_bounds = array<i64: 1, 256>}, {transform_indices = @transform_24, window_bounds = array<i64: 2, 256>}]} {
    %c0 = arith.constant 0 : index
    %c0_0 = arith.constant 0 : index
    %0 = vector.load %arg1[%c0, %c0_0] : memref<32x5xf32, #tpu.memory_space<vmem>>, vector<32x5xf32>
    %1 = tpu.iota {dimensions = array<i32: 0>} : vector<32x1xi32>
    %c16_i32 = arith.constant 16 : i32
    %c0_i32 = arith.constant 0 : i32
    %2 = arith.cmpi eq, %c16_i32, %c0_i32 : i32
    %c1_i32 = arith.constant 1 : i32
    %3 = arith.select %2, %c1_i32, %c16_i32 : i32
    %4 = vector.broadcast %3 : i32 to vector<32x1xi32>
    %5 = arith.remsi %1, %4 : vector<32x1xi32>
    %c0_i32_1 = arith.constant 0 : i32
    %6 = vector.broadcast %c0_i32_1 : i32 to vector<32x1xi32>
    %7 = arith.cmpi ne, %5, %6 : vector<32x1xi32>
    %c0_i32_2 = arith.constant 0 : i32
    %8 = vector.broadcast %c0_i32_2 : i32 to vector<32x1xi32>
    %9 = arith.cmpi slt, %5, %8 : vector<32x1xi32>
    %c0_i32_3 = arith.constant 0 : i32
    %10 = arith.cmpi slt, %3, %c0_i32_3 : i32
    %11 = vector.broadcast %10 : i1 to vector<32x1xi1>
    %12 = vector.broadcast %11 : vector<32x1xi1> to vector<32x1xi1>
    %13 = arith.xori %9, %12 : vector<32x1xi1>
    %14 = arith.andi %13, %7 : vector<32x1xi1>
    %15 = vector.broadcast %3 : i32 to vector<32x1xi32>
    %16 = arith.addi %5, %15 : vector<32x1xi32>
    %17 = arith.select %14, %16, %5 : vector<32x1xi1>, vector<32x1xi32>
    %c0_i32_4 = arith.constant 0 : i32
    %18 = vector.broadcast %c0_i32_4 : i32 to vector<32x1xi32>
    %19 = arith.cmpi eq, %17, %18 : vector<32x1xi32>
    %c1_i32_5 = arith.constant 1 : i32
    %20 = tpu.dynamic_rotate %0 by %c1_i32_5 dim 0 : vector<32x5xf32>, i32 -> vector<32x5xf32>
    %cst = arith.constant 0.000000e+00 : f32
    %21 = vector.shape_cast %19 : vector<32x1xi1> to vector<32x1xi1>
    %22 = vector.broadcast %21 : vector<32x1xi1> to vector<32x5xi1>
    %23 = vector.broadcast %cst : f32 to vector<32x5xf32>
    %24 = arith.select %22, %23, %20 : vector<32x5xi1>, vector<32x5xf32>
    %c15_i32 = arith.constant 15 : i32
    %25 = vector.broadcast %c15_i32 : i32 to vector<32x1xi32>
    %26 = arith.cmpi eq, %17, %25 : vector<32x1xi32>
    %c31_i32 = arith.constant 31 : i32
    %27 = tpu.dynamic_rotate %0 by %c31_i32 dim 0 : vector<32x5xf32>, i32 -> vector<32x5xf32>
    %cst_6 = arith.constant 0.000000e+00 : f32
    %28 = vector.shape_cast %26 : vector<32x1xi1> to vector<32x1xi1>
    %29 = vector.broadcast %28 : vector<32x1xi1> to vector<32x5xi1>
    %30 = vector.broadcast %cst_6 : f32 to vector<32x5xf32>
    %31 = arith.select %29, %30, %27 : vector<32x5xi1>, vector<32x5xf32>
    %c0_7 = arith.constant 0 : index
    %c0_8 = arith.constant 0 : index
    %32 = vector.load %arg3[%c0_7, %c0_8] : memref<5x64xf32, #tpu.memory_space<vmem>>, vector<5x64xf32>
    %cst_9 = arith.constant dense<0.000000e+00> : vector<32x64xf32>
    %33 = tpu.matmul %0, %32, %cst_9 {dimension_numbers = #tpu.dot_dimension_numbers<[1], [0], [0], [1], [0, 0, 1, 1], [], []>} : vector<32x5xf32>, vector<5x64xf32>, vector<32x64xf32> -> vector<32x64xf32>
    %c0_10 = arith.constant 0 : index
    %c0_11 = arith.constant 0 : index
    %34 = vector.load %arg2[%c0_10, %c0_11] : memref<5x64xf32, #tpu.memory_space<vmem>>, vector<5x64xf32>
    %cst_12 = arith.constant dense<0.000000e+00> : vector<32x64xf32>
    %35 = tpu.matmul %24, %34, %cst_12 {dimension_numbers = #tpu.dot_dimension_numbers<[1], [0], [0], [1], [0, 0, 1, 1], [], []>} : vector<32x5xf32>, vector<5x64xf32>, vector<32x64xf32> -> vector<32x64xf32>
    %36 = arith.addf %33, %35 : vector<32x64xf32>
    %c0_13 = arith.constant 0 : index
    %c0_14 = arith.constant 0 : index
    %37 = vector.load %arg4[%c0_13, %c0_14] : memref<5x64xf32, #tpu.memory_space<vmem>>, vector<5x64xf32>
    %cst_15 = arith.constant dense<0.000000e+00> : vector<32x64xf32>
    %38 = tpu.matmul %31, %37, %cst_15 {dimension_numbers = #tpu.dot_dimension_numbers<[1], [0], [0], [1], [0, 0, 1, 1], [], []>} : vector<32x5xf32>, vector<5x64xf32>, vector<32x64xf32> -> vector<32x64xf32>
    %39 = arith.addf %36, %38 : vector<32x64xf32>
    %c0_16 = arith.constant 0 : index
    %c0_17 = arith.constant 0 : index
    %40 = vector.load %arg5[%c0_16, %c0_17] : memref<1x64xf32, #tpu.memory_space<vmem>>, vector<1x64xf32>
    %41 = vector.broadcast %40 : vector<1x64xf32> to vector<32x64xf32>
    %42 = arith.mulf %39, %41 : vector<32x64xf32>
    %c0_18 = arith.constant 0 : index
    %c0_19 = arith.constant 0 : index
    %43 = vector.load %arg6[%c0_18, %c0_19] : memref<1x64xf32, #tpu.memory_space<vmem>>, vector<1x64xf32>
    %44 = vector.broadcast %43 : vector<1x64xf32> to vector<32x64xf32>
    %45 = arith.addf %42, %44 : vector<32x64xf32>
    %cst_20 = arith.constant 0.000000e+00 : f32
    %46 = vector.broadcast %cst_20 : f32 to vector<32x64xf32>
    %47 = arith.maximumf %45, %46 : vector<32x64xf32>
    %48 = vector.shape_cast %47 : vector<32x64xf32> to vector<16x2x64xf32>
    %cst_21 = arith.constant dense<0xFF800000> : vector<16x64xf32>
    %49 = vector.multi_reduction <maximumf>, %48, %cst_21 [1] : vector<16x2x64xf32> to vector<16x64xf32>
    %50 = tpu.iota {dimensions = array<i32: 0>} : vector<16x1xi32>
    %c8_i32 = arith.constant 8 : i32
    %c0_i32_22 = arith.constant 0 : i32
    %51 = arith.cmpi eq, %c8_i32, %c0_i32_22 : i32
    %c1_i32_23 = arith.constant 1 : i32
    %52 = arith.select %51, %c1_i32_23, %c8_i32 : i32
    %53 = vector.broadcast %52 : i32 to vector<16x1xi32>
    %54 = arith.remsi %50, %53 : vector<16x1xi32>
    %c0_i32_24 = arith.constant 0 : i32
    %55 = vector.broadcast %c0_i32_24 : i32 to vector<16x1xi32>
    %56 = arith.cmpi ne, %54, %55 : vector<16x1xi32>
    %c0_i32_25 = arith.constant 0 : i32
    %57 = vector.broadcast %c0_i32_25 : i32 to vector<16x1xi32>
    %58 = arith.cmpi slt, %54, %57 : vector<16x1xi32>
    %c0_i32_26 = arith.constant 0 : i32
    %59 = arith.cmpi slt, %52, %c0_i32_26 : i32
    %60 = vector.broadcast %59 : i1 to vector<16x1xi1>
    %61 = vector.broadcast %60 : vector<16x1xi1> to vector<16x1xi1>
    %62 = arith.xori %58, %61 : vector<16x1xi1>
    %63 = arith.andi %62, %56 : vector<16x1xi1>
    %64 = vector.broadcast %52 : i32 to vector<16x1xi32>
    %65 = arith.addi %54, %64 : vector<16x1xi32>
    %66 = arith.select %63, %65, %54 : vector<16x1xi1>, vector<16x1xi32>
    %c0_i32_27 = arith.constant 0 : i32
    %67 = vector.broadcast %c0_i32_27 : i32 to vector<16x1xi32>
    %68 = arith.cmpi eq, %66, %67 : vector<16x1xi32>
    %c1_i32_28 = arith.constant 1 : i32
    %69 = tpu.dynamic_rotate %49 by %c1_i32_28 dim 0 : vector<16x64xf32>, i32 -> vector<16x64xf32>
    %cst_29 = arith.constant 0.000000e+00 : f32
    %70 = vector.shape_cast %68 : vector<16x1xi1> to vector<16x1xi1>
    %71 = vector.broadcast %70 : vector<16x1xi1> to vector<16x64xi1>
    %72 = vector.broadcast %cst_29 : f32 to vector<16x64xf32>
    %73 = arith.select %71, %72, %69 : vector<16x64xi1>, vector<16x64xf32>
    %c7_i32 = arith.constant 7 : i32
    %74 = vector.broadcast %c7_i32 : i32 to vector<16x1xi32>
    %75 = arith.cmpi eq, %66, %74 : vector<16x1xi32>
    %c15_i32_30 = arith.constant 15 : i32
    %76 = tpu.dynamic_rotate %49 by %c15_i32_30 dim 0 : vector<16x64xf32>, i32 -> vector<16x64xf32>
    %cst_31 = arith.constant 0.000000e+00 : f32
    %77 = vector.shape_cast %75 : vector<16x1xi1> to vector<16x1xi1>
    %78 = vector.broadcast %77 : vector<16x1xi1> to vector<16x64xi1>
    %79 = vector.broadcast %cst_31 : f32 to vector<16x64xf32>
    %80 = arith.select %78, %79, %76 : vector<16x64xi1>, vector<16x64xf32>
    %81 = arith.truncf %49 : vector<16x64xf32> to vector<16x64xbf16>
    %c0_32 = arith.constant 0 : index
    %c0_33 = arith.constant 0 : index
    %82 = vector.load %arg8[%c0_32, %c0_33] : memref<64x128xbf16, #tpu.memory_space<vmem>>, vector<64x128xbf16>
    %cst_34 = arith.constant dense<0.000000e+00> : vector<16x128xf32>
    %83 = tpu.matmul %81, %82, %cst_34 {dimension_numbers = #tpu.dot_dimension_numbers<[1], [0], [0], [1], [0, 0, 1, 1], [], []>} : vector<16x64xbf16>, vector<64x128xbf16>, vector<16x128xf32> -> vector<16x128xf32>
    %84 = arith.truncf %73 : vector<16x64xf32> to vector<16x64xbf16>
    %c0_35 = arith.constant 0 : index
    %c0_36 = arith.constant 0 : index
    %85 = vector.load %arg7[%c0_35, %c0_36] : memref<64x128xbf16, #tpu.memory_space<vmem>>, vector<64x128xbf16>
    %cst_37 = arith.constant dense<0.000000e+00> : vector<16x128xf32>
    %86 = tpu.matmul %84, %85, %cst_37 {dimension_numbers = #tpu.dot_dimension_numbers<[1], [0], [0], [1], [0, 0, 1, 1], [], []>} : vector<16x64xbf16>, vector<64x128xbf16>, vector<16x128xf32> -> vector<16x128xf32>
    %87 = arith.addf %83, %86 : vector<16x128xf32>
    %88 = arith.truncf %80 : vector<16x64xf32> to vector<16x64xbf16>
    %c0_38 = arith.constant 0 : index
    %c0_39 = arith.constant 0 : index
    %89 = vector.load %arg9[%c0_38, %c0_39] : memref<64x128xbf16, #tpu.memory_space<vmem>>, vector<64x128xbf16>
    %cst_40 = arith.constant dense<0.000000e+00> : vector<16x128xf32>
    %90 = tpu.matmul %88, %89, %cst_40 {dimension_numbers = #tpu.dot_dimension_numbers<[1], [0], [0], [1], [0, 0, 1, 1], [], []>} : vector<16x64xbf16>, vector<64x128xbf16>, vector<16x128xf32> -> vector<16x128xf32>
    %91 = arith.addf %87, %90 : vector<16x128xf32>
    %c0_41 = arith.constant 0 : index
    %c0_42 = arith.constant 0 : index
    %92 = vector.load %arg10[%c0_41, %c0_42] : memref<1x128xf32, #tpu.memory_space<vmem>>, vector<1x128xf32>
    %93 = vector.broadcast %92 : vector<1x128xf32> to vector<16x128xf32>
    %94 = arith.mulf %91, %93 : vector<16x128xf32>
    %c0_43 = arith.constant 0 : index
    %c0_44 = arith.constant 0 : index
    %95 = vector.load %arg11[%c0_43, %c0_44] : memref<1x128xf32, #tpu.memory_space<vmem>>, vector<1x128xf32>
    %96 = vector.broadcast %95 : vector<1x128xf32> to vector<16x128xf32>
    %97 = arith.addf %94, %96 : vector<16x128xf32>
    %cst_45 = arith.constant 0.000000e+00 : f32
    %98 = vector.broadcast %cst_45 : f32 to vector<16x128xf32>
    %99 = arith.maximumf %97, %98 : vector<16x128xf32>
    %100 = vector.shape_cast %99 : vector<16x128xf32> to vector<8x2x128xf32>
    %cst_46 = arith.constant dense<0xFF800000> : vector<8x128xf32>
    %101 = vector.multi_reduction <maximumf>, %100, %cst_46 [1] : vector<8x2x128xf32> to vector<8x128xf32>
    %102 = tpu.iota {dimensions = array<i32: 0>} : vector<8x1xi32>
    %c4_i32 = arith.constant 4 : i32
    %c0_i32_47 = arith.constant 0 : i32
    %103 = arith.cmpi eq, %c4_i32, %c0_i32_47 : i32
    %c1_i32_48 = arith.constant 1 : i32
    %104 = arith.select %103, %c1_i32_48, %c4_i32 : i32
    %105 = vector.broadcast %104 : i32 to vector<8x1xi32>
    %106 = arith.remsi %102, %105 : vector<8x1xi32>
    %c0_i32_49 = arith.constant 0 : i32
    %107 = vector.broadcast %c0_i32_49 : i32 to vector<8x1xi32>
    %108 = arith.cmpi ne, %106, %107 : vector<8x1xi32>
    %c0_i32_50 = arith.constant 0 : i32
    %109 = vector.broadcast %c0_i32_50 : i32 to vector<8x1xi32>
    %110 = arith.cmpi slt, %106, %109 : vector<8x1xi32>
    %c0_i32_51 = arith.constant 0 : i32
    %111 = arith.cmpi slt, %104, %c0_i32_51 : i32
    %112 = vector.broadcast %111 : i1 to vector<8x1xi1>
    %113 = vector.broadcast %112 : vector<8x1xi1> to vector<8x1xi1>
    %114 = arith.xori %110, %113 : vector<8x1xi1>
    %115 = arith.andi %114, %108 : vector<8x1xi1>
    %116 = vector.broadcast %104 : i32 to vector<8x1xi32>
    %117 = arith.addi %106, %116 : vector<8x1xi32>
    %118 = arith.select %115, %117, %106 : vector<8x1xi1>, vector<8x1xi32>
    %c0_i32_52 = arith.constant 0 : i32
    %119 = vector.broadcast %c0_i32_52 : i32 to vector<8x1xi32>
    %120 = arith.cmpi eq, %118, %119 : vector<8x1xi32>
    %c1_i32_53 = arith.constant 1 : i32
    %121 = tpu.dynamic_rotate %101 by %c1_i32_53 dim 0 : vector<8x128xf32>, i32 -> vector<8x128xf32>
    %cst_54 = arith.constant 0.000000e+00 : f32
    %122 = vector.shape_cast %120 : vector<8x1xi1> to vector<8x1xi1>
    %123 = vector.broadcast %122 : vector<8x1xi1> to vector<8x128xi1>
    %124 = vector.broadcast %cst_54 : f32 to vector<8x128xf32>
    %125 = arith.select %123, %124, %121 : vector<8x128xi1>, vector<8x128xf32>
    %c3_i32 = arith.constant 3 : i32
    %126 = vector.broadcast %c3_i32 : i32 to vector<8x1xi32>
    %127 = arith.cmpi eq, %118, %126 : vector<8x1xi32>
    %c7_i32_55 = arith.constant 7 : i32
    %128 = tpu.dynamic_rotate %101 by %c7_i32_55 dim 0 : vector<8x128xf32>, i32 -> vector<8x128xf32>
    %cst_56 = arith.constant 0.000000e+00 : f32
    %129 = vector.shape_cast %127 : vector<8x1xi1> to vector<8x1xi1>
    %130 = vector.broadcast %129 : vector<8x1xi1> to vector<8x128xi1>
    %131 = vector.broadcast %cst_56 : f32 to vector<8x128xf32>
    %132 = arith.select %130, %131, %128 : vector<8x128xi1>, vector<8x128xf32>
    %133 = arith.truncf %101 : vector<8x128xf32> to vector<8x128xbf16>
    %c0_57 = arith.constant 0 : index
    %c0_58 = arith.constant 0 : index
    %134 = vector.load %arg13[%c0_57, %c0_58] : memref<128x256xbf16, #tpu.memory_space<vmem>>, vector<128x256xbf16>
    %cst_59 = arith.constant dense<0.000000e+00> : vector<8x256xf32>
    %135 = tpu.matmul %133, %134, %cst_59 {dimension_numbers = #tpu.dot_dimension_numbers<[1], [0], [0], [1], [0, 0, 1, 1], [], []>} : vector<8x128xbf16>, vector<128x256xbf16>, vector<8x256xf32> -> vector<8x256xf32>
    %136 = arith.truncf %125 : vector<8x128xf32> to vector<8x128xbf16>
    %c0_60 = arith.constant 0 : index
    %c0_61 = arith.constant 0 : index
    %137 = vector.load %arg12[%c0_60, %c0_61] : memref<128x256xbf16, #tpu.memory_space<vmem>>, vector<128x256xbf16>
    %cst_62 = arith.constant dense<0.000000e+00> : vector<8x256xf32>
    %138 = tpu.matmul %136, %137, %cst_62 {dimension_numbers = #tpu.dot_dimension_numbers<[1], [0], [0], [1], [0, 0, 1, 1], [], []>} : vector<8x128xbf16>, vector<128x256xbf16>, vector<8x256xf32> -> vector<8x256xf32>
    %139 = arith.addf %135, %138 : vector<8x256xf32>
    %140 = arith.truncf %132 : vector<8x128xf32> to vector<8x128xbf16>
    %c0_63 = arith.constant 0 : index
    %c0_64 = arith.constant 0 : index
    %141 = vector.load %arg14[%c0_63, %c0_64] : memref<128x256xbf16, #tpu.memory_space<vmem>>, vector<128x256xbf16>
    %cst_65 = arith.constant dense<0.000000e+00> : vector<8x256xf32>
    %142 = tpu.matmul %140, %141, %cst_65 {dimension_numbers = #tpu.dot_dimension_numbers<[1], [0], [0], [1], [0, 0, 1, 1], [], []>} : vector<8x128xbf16>, vector<128x256xbf16>, vector<8x256xf32> -> vector<8x256xf32>
    %143 = arith.addf %139, %142 : vector<8x256xf32>
    %c0_66 = arith.constant 0 : index
    %c0_67 = arith.constant 0 : index
    %144 = vector.load %arg15[%c0_66, %c0_67] : memref<1x256xf32, #tpu.memory_space<vmem>>, vector<1x256xf32>
    %145 = vector.broadcast %144 : vector<1x256xf32> to vector<8x256xf32>
    %146 = arith.mulf %143, %145 : vector<8x256xf32>
    %c0_68 = arith.constant 0 : index
    %c0_69 = arith.constant 0 : index
    %147 = vector.load %arg16[%c0_68, %c0_69] : memref<1x256xf32, #tpu.memory_space<vmem>>, vector<1x256xf32>
    %148 = vector.broadcast %147 : vector<1x256xf32> to vector<8x256xf32>
    %149 = arith.addf %146, %148 : vector<8x256xf32>
    %cst_70 = arith.constant 0.000000e+00 : f32
    %150 = vector.broadcast %cst_70 : f32 to vector<8x256xf32>
    %151 = arith.maximumf %149, %150 : vector<8x256xf32>
    %152 = vector.shape_cast %151 : vector<8x256xf32> to vector<4x2x256xf32>
    %cst_71 = arith.constant dense<0xFF800000> : vector<4x256xf32>
    %153 = vector.multi_reduction <maximumf>, %152, %cst_71 [1] : vector<4x2x256xf32> to vector<4x256xf32>
    %154 = arith.truncf %153 : vector<4x256xf32> to vector<4x256xbf16>
    %c0_72 = arith.constant 0 : index
    %c0_73 = arith.constant 0 : index
    %155 = vector.load %arg17[%c0_72, %c0_73] : memref<256x768xbf16, #tpu.memory_space<vmem>>, vector<256x768xbf16>
    %cst_74 = arith.constant dense<0.000000e+00> : vector<4x768xf32>
    %156 = tpu.matmul %154, %155, %cst_74 {dimension_numbers = #tpu.dot_dimension_numbers<[1], [0], [0], [1], [0, 0, 1, 1], [], []>} : vector<4x256xbf16>, vector<256x768xbf16>, vector<4x768xf32> -> vector<4x768xf32>
    %c0_75 = arith.constant 0 : index
    %c0_76 = arith.constant 0 : index
    %157 = vector.load %arg18[%c0_75, %c0_76] : memref<1x768xf32, #tpu.memory_space<vmem>>, vector<1x768xf32>
    %158 = vector.broadcast %157 : vector<1x768xf32> to vector<4x768xf32>
    %159 = arith.addf %156, %158 : vector<4x768xf32>
    %160 = vector.extract_strided_slice %159 {offsets = [0, 0], sizes = [4, 256], strides = [1, 1]} : vector<4x768xf32> to vector<4x256xf32>
    %161 = vector.shape_cast %160 : vector<4x256xf32> to vector<2x2x256xf32>
    %162 = vector.extract_strided_slice %159 {offsets = [0, 256], sizes = [4, 256], strides = [1, 1]} : vector<4x768xf32> to vector<4x256xf32>
    %163 = vector.shape_cast %162 : vector<4x256xf32> to vector<2x2x256xf32>
    %164 = vector.extract_strided_slice %159 {offsets = [0, 512], sizes = [4, 256], strides = [1, 1]} : vector<4x768xf32> to vector<4x256xf32>
    %165 = vector.shape_cast %164 : vector<4x256xf32> to vector<2x2x256xf32>
    %cst_77 = arith.constant 0.000000e+00 : f32
    %166 = vector.broadcast %cst_77 : f32 to vector<4x256xf32>
    %167 = vector.extract_strided_slice %161 {offsets = [0, 0, 0], sizes = [2, 2, 64], strides = [1, 1, 1]} : vector<2x2x256xf32> to vector<2x2x64xf32>
    %168 = arith.truncf %167 : vector<2x2x64xf32> to vector<2x2x64xbf16>
    %169 = vector.extract_strided_slice %163 {offsets = [0, 0, 0], sizes = [2, 2, 64], strides = [1, 1, 1]} : vector<2x2x256xf32> to vector<2x2x64xf32>
    %170 = arith.truncf %169 : vector<2x2x64xf32> to vector<2x2x64xbf16>
    %171 = vector.extract_strided_slice %165 {offsets = [0, 0, 0], sizes = [2, 2, 64], strides = [1, 1, 1]} : vector<2x2x256xf32> to vector<2x2x64xf32>
    %172 = arith.truncf %171 : vector<2x2x64xf32> to vector<2x2x64xbf16>
    "tpu.trace_start"() <{level = 10 : i32, message = "bqd,bkd->bqk"}> : () -> ()
    %cst_78 = arith.constant dense<0.000000e+00> : vector<2x2x2xf32>
    %173 = tpu.matmul %168, %170, %cst_78 {dimension_numbers = #tpu.dot_dimension_numbers<[2], [2], [1], [1], [0, 0, 0, 1, 1, 1], [0], [0]>} : vector<2x2x64xbf16>, vector<2x2x64xbf16>, vector<2x2x2xf32> -> vector<2x2x2xf32>
    "tpu.trace_stop"() : () -> ()
    %cst_79 = arith.constant 1.250000e-01 : f32
    %174 = vector.broadcast %cst_79 : f32 to vector<2x2x2xf32>
    %175 = arith.mulf %173, %174 : vector<2x2x2xf32>
    %cst_80 = arith.constant dense<0xFF800000> : vector<2x2xf32>
    %176 = vector.multi_reduction <maximumf>, %175, %cst_80 [2] : vector<2x2x2xf32> to vector<2x2xf32>
    %177 = vector.shape_cast %176 : vector<2x2xf32> to vector<2x2x1xf32>
    %178 = vector.broadcast %177 : vector<2x2x1xf32> to vector<2x2x2xf32>
    %179 = arith.subf %175, %178 : vector<2x2x2xf32>
    %180 = math.exp %179 : vector<2x2x2xf32>
    %cst_81 = arith.constant dense<0.000000e+00> : vector<2x2xf32>
    %181 = vector.multi_reduction <add>, %180, %cst_81 [2] : vector<2x2x2xf32> to vector<2x2xf32>
    %182 = vector.shape_cast %181 : vector<2x2xf32> to vector<2x2x1xf32>
    %183 = tpu.reciprocal %182 : vector<2x2x1xf32> -> vector<2x2x1xf32>
    %184 = vector.broadcast %183 : vector<2x2x1xf32> to vector<2x2x2xf32>
    %185 = arith.mulf %180, %184 : vector<2x2x2xf32>
    %186 = arith.truncf %185 : vector<2x2x2xf32> to vector<2x2x2xbf16>
    "tpu.trace_start"() <{level = 10 : i32, message = "bqk,bkd->bqd"}> : () -> ()
    %cst_82 = arith.constant dense<0.000000e+00> : vector<2x2x64xf32>
    %187 = tpu.matmul %186, %172, %cst_82 {dimension_numbers = #tpu.dot_dimension_numbers<[2], [1], [1], [2], [0, 0, 0, 1, 1, 2], [0], [0]>} : vector<2x2x2xbf16>, vector<2x2x64xbf16>, vector<2x2x64xf32> -> vector<2x2x64xf32>
    "tpu.trace_stop"() : () -> ()
    %188 = vector.shape_cast %187 : vector<2x2x64xf32> to vector<4x64xf32>
    %189 = arith.truncf %188 : vector<4x64xf32> to vector<4x64xbf16>
    %c0_83 = arith.constant 0 : index
    %c0_84 = arith.constant 0 : index
    %190 = vector.load %arg19[%c0_83, %c0_84] : memref<256x256xbf16, #tpu.memory_space<vmem>>, vector<64x256xbf16>
    %cst_85 = arith.constant dense<0.000000e+00> : vector<4x256xf32>
    %191 = tpu.matmul %189, %190, %cst_85 {dimension_numbers = #tpu.dot_dimension_numbers<[1], [0], [0], [1], [0, 0, 1, 1], [], []>} : vector<4x64xbf16>, vector<64x256xbf16>, vector<4x256xf32> -> vector<4x256xf32>
    %192 = arith.addf %166, %191 : vector<4x256xf32>
    %193 = vector.extract_strided_slice %161 {offsets = [0, 0, 64], sizes = [2, 2, 64], strides = [1, 1, 1]} : vector<2x2x256xf32> to vector<2x2x64xf32>
    %194 = arith.truncf %193 : vector<2x2x64xf32> to vector<2x2x64xbf16>
    %195 = vector.extract_strided_slice %163 {offsets = [0, 0, 64], sizes = [2, 2, 64], strides = [1, 1, 1]} : vector<2x2x256xf32> to vector<2x2x64xf32>
    %196 = arith.truncf %195 : vector<2x2x64xf32> to vector<2x2x64xbf16>
    %197 = vector.extract_strided_slice %165 {offsets = [0, 0, 64], sizes = [2, 2, 64], strides = [1, 1, 1]} : vector<2x2x256xf32> to vector<2x2x64xf32>
    %198 = arith.truncf %197 : vector<2x2x64xf32> to vector<2x2x64xbf16>
    "tpu.trace_start"() <{level = 10 : i32, message = "bqd,bkd->bqk"}> : () -> ()
    %cst_86 = arith.constant dense<0.000000e+00> : vector<2x2x2xf32>
    %199 = tpu.matmul %194, %196, %cst_86 {dimension_numbers = #tpu.dot_dimension_numbers<[2], [2], [1], [1], [0, 0, 0, 1, 1, 1], [0], [0]>} : vector<2x2x64xbf16>, vector<2x2x64xbf16>, vector<2x2x2xf32> -> vector<2x2x2xf32>
    "tpu.trace_stop"() : () -> ()
    %cst_87 = arith.constant 1.250000e-01 : f32
    %200 = vector.broadcast %cst_87 : f32 to vector<2x2x2xf32>
    %201 = arith.mulf %199, %200 : vector<2x2x2xf32>
    %cst_88 = arith.constant dense<0xFF800000> : vector<2x2xf32>
    %202 = vector.multi_reduction <maximumf>, %201, %cst_88 [2] : vector<2x2x2xf32> to vector<2x2xf32>
    %203 = vector.shape_cast %202 : vector<2x2xf32> to vector<2x2x1xf32>
    %204 = vector.broadcast %203 : vector<2x2x1xf32> to vector<2x2x2xf32>
    %205 = arith.subf %201, %204 : vector<2x2x2xf32>
    %206 = math.exp %205 : vector<2x2x2xf32>
    %cst_89 = arith.constant dense<0.000000e+00> : vector<2x2xf32>
    %207 = vector.multi_reduction <add>, %206, %cst_89 [2] : vector<2x2x2xf32> to vector<2x2xf32>
    %208 = vector.shape_cast %207 : vector<2x2xf32> to vector<2x2x1xf32>
    %209 = tpu.reciprocal %208 : vector<2x2x1xf32> -> vector<2x2x1xf32>
    %210 = vector.broadcast %209 : vector<2x2x1xf32> to vector<2x2x2xf32>
    %211 = arith.mulf %206, %210 : vector<2x2x2xf32>
    %212 = arith.truncf %211 : vector<2x2x2xf32> to vector<2x2x2xbf16>
    "tpu.trace_start"() <{level = 10 : i32, message = "bqk,bkd->bqd"}> : () -> ()
    %cst_90 = arith.constant dense<0.000000e+00> : vector<2x2x64xf32>
    %213 = tpu.matmul %212, %198, %cst_90 {dimension_numbers = #tpu.dot_dimension_numbers<[2], [1], [1], [2], [0, 0, 0, 1, 1, 2], [0], [0]>} : vector<2x2x2xbf16>, vector<2x2x64xbf16>, vector<2x2x64xf32> -> vector<2x2x64xf32>
    "tpu.trace_stop"() : () -> ()
    %214 = vector.shape_cast %213 : vector<2x2x64xf32> to vector<4x64xf32>
    %215 = arith.truncf %214 : vector<4x64xf32> to vector<4x64xbf16>
    %c64 = arith.constant 64 : index
    %c0_91 = arith.constant 0 : index
    %216 = vector.load %arg19[%c64, %c0_91] : memref<256x256xbf16, #tpu.memory_space<vmem>>, vector<64x256xbf16>
    %cst_92 = arith.constant dense<0.000000e+00> : vector<4x256xf32>
    %217 = tpu.matmul %215, %216, %cst_92 {dimension_numbers = #tpu.dot_dimension_numbers<[1], [0], [0], [1], [0, 0, 1, 1], [], []>} : vector<4x64xbf16>, vector<64x256xbf16>, vector<4x256xf32> -> vector<4x256xf32>
    %218 = arith.addf %192, %217 : vector<4x256xf32>
    %219 = vector.extract_strided_slice %161 {offsets = [0, 0, 128], sizes = [2, 2, 64], strides = [1, 1, 1]} : vector<2x2x256xf32> to vector<2x2x64xf32>
    %220 = arith.truncf %219 : vector<2x2x64xf32> to vector<2x2x64xbf16>
    %221 = vector.extract_strided_slice %163 {offsets = [0, 0, 128], sizes = [2, 2, 64], strides = [1, 1, 1]} : vector<2x2x256xf32> to vector<2x2x64xf32>
    %222 = arith.truncf %221 : vector<2x2x64xf32> to vector<2x2x64xbf16>
    %223 = vector.extract_strided_slice %165 {offsets = [0, 0, 128], sizes = [2, 2, 64], strides = [1, 1, 1]} : vector<2x2x256xf32> to vector<2x2x64xf32>
    %224 = arith.truncf %223 : vector<2x2x64xf32> to vector<2x2x64xbf16>
    "tpu.trace_start"() <{level = 10 : i32, message = "bqd,bkd->bqk"}> : () -> ()
    %cst_93 = arith.constant dense<0.000000e+00> : vector<2x2x2xf32>
    %225 = tpu.matmul %220, %222, %cst_93 {dimension_numbers = #tpu.dot_dimension_numbers<[2], [2], [1], [1], [0, 0, 0, 1, 1, 1], [0], [0]>} : vector<2x2x64xbf16>, vector<2x2x64xbf16>, vector<2x2x2xf32> -> vector<2x2x2xf32>
    "tpu.trace_stop"() : () -> ()
    %cst_94 = arith.constant 1.250000e-01 : f32
    %226 = vector.broadcast %cst_94 : f32 to vector<2x2x2xf32>
    %227 = arith.mulf %225, %226 : vector<2x2x2xf32>
    %cst_95 = arith.constant dense<0xFF800000> : vector<2x2xf32>
    %228 = vector.multi_reduction <maximumf>, %227, %cst_95 [2] : vector<2x2x2xf32> to vector<2x2xf32>
    %229 = vector.shape_cast %228 : vector<2x2xf32> to vector<2x2x1xf32>
    %230 = vector.broadcast %229 : vector<2x2x1xf32> to vector<2x2x2xf32>
    %231 = arith.subf %227, %230 : vector<2x2x2xf32>
    %232 = math.exp %231 : vector<2x2x2xf32>
    %cst_96 = arith.constant dense<0.000000e+00> : vector<2x2xf32>
    %233 = vector.multi_reduction <add>, %232, %cst_96 [2] : vector<2x2x2xf32> to vector<2x2xf32>
    %234 = vector.shape_cast %233 : vector<2x2xf32> to vector<2x2x1xf32>
    %235 = tpu.reciprocal %234 : vector<2x2x1xf32> -> vector<2x2x1xf32>
    %236 = vector.broadcast %235 : vector<2x2x1xf32> to vector<2x2x2xf32>
    %237 = arith.mulf %232, %236 : vector<2x2x2xf32>
    %238 = arith.truncf %237 : vector<2x2x2xf32> to vector<2x2x2xbf16>
    "tpu.trace_start"() <{level = 10 : i32, message = "bqk,bkd->bqd"}> : () -> ()
    %cst_97 = arith.constant dense<0.000000e+00> : vector<2x2x64xf32>
    %239 = tpu.matmul %238, %224, %cst_97 {dimension_numbers = #tpu.dot_dimension_numbers<[2], [1], [1], [2], [0, 0, 0, 1, 1, 2], [0], [0]>} : vector<2x2x2xbf16>, vector<2x2x64xbf16>, vector<2x2x64xf32> -> vector<2x2x64xf32>
    "tpu.trace_stop"() : () -> ()
    %240 = vector.shape_cast %239 : vector<2x2x64xf32> to vector<4x64xf32>
    %241 = arith.truncf %240 : vector<4x64xf32> to vector<4x64xbf16>
    %c128 = arith.constant 128 : index
    %c0_98 = arith.constant 0 : index
    %242 = vector.load %arg19[%c128, %c0_98] : memref<256x256xbf16, #tpu.memory_space<vmem>>, vector<64x256xbf16>
    %cst_99 = arith.constant dense<0.000000e+00> : vector<4x256xf32>
    %243 = tpu.matmul %241, %242, %cst_99 {dimension_numbers = #tpu.dot_dimension_numbers<[1], [0], [0], [1], [0, 0, 1, 1], [], []>} : vector<4x64xbf16>, vector<64x256xbf16>, vector<4x256xf32> -> vector<4x256xf32>
    %244 = arith.addf %218, %243 : vector<4x256xf32>
    %245 = vector.extract_strided_slice %161 {offsets = [0, 0, 192], sizes = [2, 2, 64], strides = [1, 1, 1]} : vector<2x2x256xf32> to vector<2x2x64xf32>
    %246 = arith.truncf %245 : vector<2x2x64xf32> to vector<2x2x64xbf16>
    %247 = vector.extract_strided_slice %163 {offsets = [0, 0, 192], sizes = [2, 2, 64], strides = [1, 1, 1]} : vector<2x2x256xf32> to vector<2x2x64xf32>
    %248 = arith.truncf %247 : vector<2x2x64xf32> to vector<2x2x64xbf16>
    %249 = vector.extract_strided_slice %165 {offsets = [0, 0, 192], sizes = [2, 2, 64], strides = [1, 1, 1]} : vector<2x2x256xf32> to vector<2x2x64xf32>
    %250 = arith.truncf %249 : vector<2x2x64xf32> to vector<2x2x64xbf16>
    "tpu.trace_start"() <{level = 10 : i32, message = "bqd,bkd->bqk"}> : () -> ()
    %cst_100 = arith.constant dense<0.000000e+00> : vector<2x2x2xf32>
    %251 = tpu.matmul %246, %248, %cst_100 {dimension_numbers = #tpu.dot_dimension_numbers<[2], [2], [1], [1], [0, 0, 0, 1, 1, 1], [0], [0]>} : vector<2x2x64xbf16>, vector<2x2x64xbf16>, vector<2x2x2xf32> -> vector<2x2x2xf32>
    "tpu.trace_stop"() : () -> ()
    %cst_101 = arith.constant 1.250000e-01 : f32
    %252 = vector.broadcast %cst_101 : f32 to vector<2x2x2xf32>
    %253 = arith.mulf %251, %252 : vector<2x2x2xf32>
    %cst_102 = arith.constant dense<0xFF800000> : vector<2x2xf32>
    %254 = vector.multi_reduction <maximumf>, %253, %cst_102 [2] : vector<2x2x2xf32> to vector<2x2xf32>
    %255 = vector.shape_cast %254 : vector<2x2xf32> to vector<2x2x1xf32>
    %256 = vector.broadcast %255 : vector<2x2x1xf32> to vector<2x2x2xf32>
    %257 = arith.subf %253, %256 : vector<2x2x2xf32>
    %258 = math.exp %257 : vector<2x2x2xf32>
    %cst_103 = arith.constant dense<0.000000e+00> : vector<2x2xf32>
    %259 = vector.multi_reduction <add>, %258, %cst_103 [2] : vector<2x2x2xf32> to vector<2x2xf32>
    %260 = vector.shape_cast %259 : vector<2x2xf32> to vector<2x2x1xf32>
    %261 = tpu.reciprocal %260 : vector<2x2x1xf32> -> vector<2x2x1xf32>
    %262 = vector.broadcast %261 : vector<2x2x1xf32> to vector<2x2x2xf32>
    %263 = arith.mulf %258, %262 : vector<2x2x2xf32>
    %264 = arith.truncf %263 : vector<2x2x2xf32> to vector<2x2x2xbf16>
    "tpu.trace_start"() <{level = 10 : i32, message = "bqk,bkd->bqd"}> : () -> ()
    %cst_104 = arith.constant dense<0.000000e+00> : vector<2x2x64xf32>
    %265 = tpu.matmul %264, %250, %cst_104 {dimension_numbers = #tpu.dot_dimension_numbers<[2], [1], [1], [2], [0, 0, 0, 1, 1, 2], [0], [0]>} : vector<2x2x2xbf16>, vector<2x2x64xbf16>, vector<2x2x64xf32> -> vector<2x2x64xf32>
    "tpu.trace_stop"() : () -> ()
    %266 = vector.shape_cast %265 : vector<2x2x64xf32> to vector<4x64xf32>
    %267 = arith.truncf %266 : vector<4x64xf32> to vector<4x64xbf16>
    %c192 = arith.constant 192 : index
    %c0_105 = arith.constant 0 : index
    %268 = vector.load %arg19[%c192, %c0_105] : memref<256x256xbf16, #tpu.memory_space<vmem>>, vector<64x256xbf16>
    %cst_106 = arith.constant dense<0.000000e+00> : vector<4x256xf32>
    %269 = tpu.matmul %267, %268, %cst_106 {dimension_numbers = #tpu.dot_dimension_numbers<[1], [0], [0], [1], [0, 0, 1, 1], [], []>} : vector<4x64xbf16>, vector<64x256xbf16>, vector<4x256xf32> -> vector<4x256xf32>
    %270 = arith.addf %244, %269 : vector<4x256xf32>
    %271 = arith.addf %153, %270 : vector<4x256xf32>
    %c0_107 = arith.constant 0 : index
    %c0_108 = arith.constant 0 : index
    %272 = vector.load %arg20[%c0_107, %c0_108] : memref<1x256xf32, #tpu.memory_space<vmem>>, vector<1x256xf32>
    %273 = vector.broadcast %272 : vector<1x256xf32> to vector<4x256xf32>
    %274 = arith.addf %271, %273 : vector<4x256xf32>
    %275 = vector.shape_cast %274 : vector<4x256xf32> to vector<2x2x256xf32>
    %cst_109 = arith.constant dense<0.000000e+00> : vector<2x256xf32>
    %276 = vector.multi_reduction <add>, %275, %cst_109 [1] : vector<2x2x256xf32> to vector<2x256xf32>
    %cst_110 = arith.constant 2.000000e+00 : f32
    %277 = vector.broadcast %cst_110 : f32 to vector<2x256xf32>
    %278 = arith.divf %276, %277 : vector<2x256xf32>
    %279 = arith.truncf %278 : vector<2x256xf32> to vector<2x256xbf16>
    %c0_111 = arith.constant 0 : index
    %c0_112 = arith.constant 0 : index
    %280 = vector.load %arg21[%c0_111, %c0_112] : memref<256x256xbf16, #tpu.memory_space<vmem>>, vector<256x256xbf16>
    %cst_113 = arith.constant dense<0.000000e+00> : vector<2x256xf32>
    %281 = tpu.matmul %279, %280, %cst_113 {dimension_numbers = #tpu.dot_dimension_numbers<[1], [0], [0], [1], [0, 0, 1, 1], [], []>} : vector<2x256xbf16>, vector<256x256xbf16>, vector<2x256xf32> -> vector<2x256xf32>
    %c0_114 = arith.constant 0 : index
    %c0_115 = arith.constant 0 : index
    %282 = vector.load %arg22[%c0_114, %c0_115] : memref<1x256xf32, #tpu.memory_space<vmem>>, vector<1x256xf32>
    %283 = vector.broadcast %282 : vector<1x256xf32> to vector<2x256xf32>
    %284 = arith.addf %281, %283 : vector<2x256xf32>
    %cst_116 = arith.constant 0.000000e+00 : f32
    %285 = vector.broadcast %cst_116 : f32 to vector<2x256xf32>
    %286 = arith.maximumf %284, %285 : vector<2x256xf32>
    %287 = arith.truncf %286 : vector<2x256xf32> to vector<2x256xbf16>
    %c0_117 = arith.constant 0 : index
    %c0_118 = arith.constant 0 : index
    %288 = vector.load %arg23[%c0_117, %c0_118] : memref<256x256xbf16, #tpu.memory_space<vmem>>, vector<256x256xbf16>
    %cst_119 = arith.constant dense<0.000000e+00> : vector<2x256xf32>
    %289 = tpu.matmul %287, %288, %cst_119 {dimension_numbers = #tpu.dot_dimension_numbers<[1], [0], [0], [1], [0, 0, 1, 1], [], []>} : vector<2x256xbf16>, vector<256x256xbf16>, vector<2x256xf32> -> vector<2x256xf32>
    %c0_120 = arith.constant 0 : index
    %c0_121 = arith.constant 0 : index
    %290 = vector.load %arg24[%c0_120, %c0_121] : memref<1x256xf32, #tpu.memory_space<vmem>>, vector<1x256xf32>
    %291 = vector.broadcast %290 : vector<1x256xf32> to vector<2x256xf32>
    %292 = arith.addf %289, %291 : vector<2x256xf32>
    %c0_122 = arith.constant 0 : index
    %c0_123 = arith.constant 0 : index
    %293 = vector.load %arg25[%c0_122, %c0_123] : memref<2x256xf32, #tpu.memory_space<vmem>>, vector<2x256xf32>
    tpu.vector_store %arg25[%c0_122, %c0_123], %292 {strides = array<i32>} : memref<2x256xf32, #tpu.memory_space<vmem>>, vector<2x256xf32>,
    return
  }
  func.func @transform_0(%arg0: i32) -> (i32, i32) {
    %c0_i32 = arith.constant 0 : i32
    %c0_i32_0 = arith.constant 0 : i32
    return %arg0, %c0_i32 : i32, i32
  }
  func.func @transform_1(%arg0: i32) -> (i32, i32) {
    %c0_i32 = arith.constant 0 : i32
    %c0_i32_0 = arith.constant 0 : i32
    %c0_i32_1 = arith.constant 0 : i32
    return %c0_i32, %c0_i32_0 : i32, i32
  }
  func.func @transform_2(%arg0: i32) -> (i32, i32) {
    %c0_i32 = arith.constant 0 : i32
    %c0_i32_0 = arith.constant 0 : i32
    %c0_i32_1 = arith.constant 0 : i32
    return %c0_i32, %c0_i32_0 : i32, i32
  }
  func.func @transform_3(%arg0: i32) -> (i32, i32) {
    %c0_i32 = arith.constant 0 : i32
    %c0_i32_0 = arith.constant 0 : i32
    %c0_i32_1 = arith.constant 0 : i32
    return %c0_i32, %c0_i32_0 : i32, i32
  }
  func.func @transform_4(%arg0: i32) -> (i32, i32) {
    %c0_i32 = arith.constant 0 : i32
    %c0_i32_0 = arith.constant 0 : i32
    %c0_i32_1 = arith.constant 0 : i32
    return %c0_i32, %c0_i32_0 : i32, i32
  }
  func.func @transform_5(%arg0: i32) -> (i32, i32) {
    %c0_i32 = arith.constant 0 : i32
    %c0_i32_0 = arith.constant 0 : i32
    %c0_i32_1 = arith.constant 0 : i32
    return %c0_i32, %c0_i32_0 : i32, i32
  }
  func.func @transform_6(%arg0: i32) -> (i32, i32) {
    %c0_i32 = arith.constant 0 : i32
    %c0_i32_0 = arith.constant 0 : i32
    %c0_i32_1 = arith.constant 0 : i32
    return %c0_i32, %c0_i32_0 : i32, i32
  }
  func.func @transform_7(%arg0: i32) -> (i32, i32) {
    %c0_i32 = arith.constant 0 : i32
    %c0_i32_0 = arith.constant 0 : i32
    %c0_i32_1 = arith.constant 0 : i32
    return %c0_i32, %c0_i32_0 : i32, i32
  }
  func.func @transform_8(%arg0: i32) -> (i32, i32) {
    %c0_i32 = arith.constant 0 : i32
    %c0_i32_0 = arith.constant 0 : i32
    %c0_i32_1 = arith.constant 0 : i32
    return %c0_i32, %c0_i32_0 : i32, i32
  }
  func.func @transform_9(%arg0: i32) -> (i32, i32) {
    %c0_i32 = arith.constant 0 : i32
    %c0_i32_0 = arith.constant 0 : i32
    %c0_i32_1 = arith.constant 0 : i32
    return %c0_i32, %c0_i32_0 : i32, i32
  }
  func.func @transform_10(%arg0: i32) -> (i32, i32) {
    %c0_i32 = arith.constant 0 : i32
    %c0_i32_0 = arith.constant 0 : i32
    %c0_i32_1 = arith.constant 0 : i32
    return %c0_i32, %c0_i32_0 : i32, i32
  }
  func.func @transform_11(%arg0: i32) -> (i32, i32) {
    %c0_i32 = arith.constant 0 : i32
    %c0_i32_0 = arith.constant 0 : i32
    %c0_i32_1 = arith.constant 0 : i32
    return %c0_i32, %c0_i32_0 : i32, i32
  }
  func.func @transform_12(%arg0: i32) -> (i32, i32) {
    %c0_i32 = arith.constant 0 : i32
    %c0_i32_0 = arith.constant 0 : i32
    %c0_i32_1 = arith.constant 0 : i32
    return %c0_i32, %c0_i32_0 : i32, i32
  }
  func.func @transform_13(%arg0: i32) -> (i32, i32) {
    %c0_i32 = arith.constant 0 : i32
    %c0_i32_0 = arith.constant 0 : i32
    %c0_i32_1 = arith.constant 0 : i32
    return %c0_i32, %c0_i32_0 : i32, i32
  }
  func.func @transform_14(%arg0: i32) -> (i32, i32) {
    %c0_i32 = arith.constant 0 : i32
    %c0_i32_0 = arith.constant 0 : i32
    %c0_i32_1 = arith.constant 0 : i32
    return %c0_i32, %c0_i32_0 : i32, i32
  }
  func.func @transform_15(%arg0: i32) -> (i32, i32) {
    %c0_i32 = arith.constant 0 : i32
    %c0_i32_0 = arith.constant 0 : i32
    %c0_i32_1 = arith.constant 0 : i32
    return %c0_i32, %c0_i32_0 : i32, i32
  }
  func.func @transform_16(%arg0: i32) -> (i32, i32) {
    %c0_i32 = arith.constant 0 : i32
    %c0_i32_0 = arith.constant 0 : i32
    %c0_i32_1 = arith.constant 0 : i32
    return %c0_i32, %c0_i32_0 : i32, i32
  }
  func.func @transform_17(%arg0: i32) -> (i32, i32) {
    %c0_i32 = arith.constant 0 : i32
    %c0_i32_0 = arith.constant 0 : i32
    %c0_i32_1 = arith.constant 0 : i32
    return %c0_i32, %c0_i32_0 : i32, i32
  }
  func.func @transform_18(%arg0: i32) -> (i32, i32) {
    %c0_i32 = arith.constant 0 : i32
    %c0_i32_0 = arith.constant 0 : i32
    %c0_i32_1 = arith.constant 0 : i32
    return %c0_i32, %c0_i32_0 : i32, i32
  }
  func.func @transform_19(%arg0: i32) -> (i32, i32) {
    %c0_i32 = arith.constant 0 : i32
    %c0_i32_0 = arith.constant 0 : i32
    %c0_i32_1 = arith.constant 0 : i32
    return %c0_i32, %c0_i32_0 : i32, i32
  }
  func.func @transform_20(%arg0: i32) -> (i32, i32) {
    %c0_i32 = arith.constant 0 : i32
    %c0_i32_0 = arith.constant 0 : i32
    %c0_i32_1 = arith.constant 0 : i32
    return %c0_i32, %c0_i32_0 : i32, i32
  }
  func.func @transform_21(%arg0: i32) -> (i32, i32) {
    %c0_i32 = arith.constant 0 : i32
    %c0_i32_0 = arith.constant 0 : i32
    %c0_i32_1 = arith.constant 0 : i32
    return %c0_i32, %c0_i32_0 : i32, i32
  }
  func.func @transform_22(%arg0: i32) -> (i32, i32) {
    %c0_i32 = arith.constant 0 : i32
    %c0_i32_0 = arith.constant 0 : i32
    %c0_i32_1 = arith.constant 0 : i32
    return %c0_i32, %c0_i32_0 : i32, i32
  }
  func.func @transform_23(%arg0: i32) -> (i32, i32) {
    %c0_i32 = arith.constant 0 : i32
    %c0_i32_0 = arith.constant 0 : i32
    %c0_i32_1 = arith.constant 0 : i32
    return %c0_i32, %c0_i32_0 : i32, i32
  }
  func.func @transform_24(%arg0: i32) -> (i32, i32) {
    %c0_i32 = arith.constant 0 : i32
    %c0_i32_0 = arith.constant 0 : i32
    return %arg0, %c0_i32 : i32, i32
  }
}

</mosaic_0001>

<bundles_post_ra>
// kernel: tpu_custom_call.1
= control target key start
LH: loop header
LB: loop body
LE: loop exit
PB: predicated region body
PF: predicated region fallthrough
CT: control target
= control target key end

     0   :  { %s6948_s0 = inlined_call_operand.vmem [shape: f32[32,5], index: 0, kind: input, shape index: {}]   ;;  %s6949_s1 = inlined_call_operand.vmem [shape: f32[5,64], index: 1, kind: input, shape index: {}]   ;;  %s6950_s2 = inlined_call_operand.vmem [shape: f32[5,64], index: 2, kind: input, shape index: {}]   ;;  %s6951_s3 = inlined_call_operand.hbm [shape: f32[5,64], index: 3, kind: input, shape index: {}]   ;;  %s6952_s4 = inlined_call_operand.hbm [shape: f32[1,64], index: 4, kind: input, shape index: {}]   ;;  %s6953_s5 = inlined_call_operand.hbm [shape: f32[1,64], index: 5, kind: input, shape index: {}]   ;;  %s6954_s6 = inlined_call_operand.vmem [shape: bf16[64,128], index: 6, kind: input, shape index: {}]   ;;  %s6955_s7 = inlined_call_operand.hbm [shape: bf16[64,128], index: 7, kind: input, shape index: {}]   ;;  %s6956_s8 = inlined_call_operand.hbm [shape: bf16[64,128], index: 8, kind: input, shape index: {}]   ;;  %s6957_s9 = inlined_call_operand.hbm [shape: f32[1,128], index: 9, kind: input, shape index: {}]   ;;  %s6958_s10 = inlined_call_operand.hbm [shape: f32[1,128], index: 10, kind: input, shape index: {}]   ;;  %s6959_s11 = inlined_call_operand.hbm [shape: bf16[128,256], index: 11, kind: input, shape index: {}]   ;;  %s6960_s12 = inlined_call_operand.hbm [shape: bf16[128,256], index: 12, kind: input, shape index: {}]   ;;  %s6961_s13 = inlined_call_operand.hbm [shape: bf16[128,256], index: 13, kind: input, shape index: {}]   ;;  %s6962_s14 = inlined_call_operand.vmem [shape: f32[1,256], index: 14, kind: input, shape index: {}]   ;;  %s6963_s15 = inlined_call_operand.vmem [shape: f32[1,256], index: 15, kind: input, shape index: {}]   ;;  %s6964_s16 = inlined_call_operand.hbm [shape: bf16[256,768], index: 16, kind: input, shape index: {}]   ;;  %s6965_s17 = inlined_call_operand.vmem [shape: f32[1,768], index: 17, kind: input, shape index: {}]   ;;  %s6966_s18 = inlined_call_operand.hbm [shape: bf16[256,256], index: 18, kind: input, shape index: {}]   ;;  %s6967_s19 = inlined_call_operand.vmem [shape: f32[1,256], index: 19, kind: input, shape index: {}]   ;;  %s6968_s20 = inlined_call_operand.hbm [shape: bf16[256,256], index: 20, kind: input, shape index: {}]   ;;  %s6969_s21 = inlined_call_operand.vmem [shape: f32[1,256], index: 21, kind: input, shape index: {}]   ;;  %s6970_s22 = inlined_call_operand.hbm [shape: bf16[256,256], index: 22, kind: input, shape index: {}]   ;;  %s6971_s23 = inlined_call_operand.vmem [shape: f32[1,256], index: 23, kind: input, shape index: {}]   ;;  %s6972_s24 = inlined_call_operand.hbm [shape: f32[2,256], index: 24, kind: output, shape index: {}]  }
   0x1   :  { %6975 = sst [smem:[#allocation35_spill]] %s6948_s0 }
   0x2   :  { %6976 = sst [smem:[#allocation36_spill]] %s6949_s1 }
   0x3   :  { %6977 = sst [smem:[#allocation37_spill]] %s6950_s2 }
   0x4   :  { %6978 = sst [smem:[#allocation38_spill]] %s6951_s3 }
   0x5   :  { %6979 = sst [smem:[#allocation39_spill]] %s6952_s4 }
   0x6   :  { %6980 = sst [smem:[#allocation40_spill]] %s6953_s5 }
   0x7   :  { %6981 = sst [smem:[#allocation41_spill]] %s6954_s6 }
   0x8   :  { %6982 = sst [smem:[#allocation42_spill]] %s6955_s7 }
   0x9   :  { %6983 = sst [smem:[#allocation43_spill]] %s6956_s8 }
   0xa   :  { %29 = vsyncpa [#allocation3], 0 }
   0xb   :  { %30 = vsyncpa [#allocation6], 0 }
   0xc   :  { %31 = vsyncpa [#allocation9], 0 }
   0xd   :  { %32 = vsyncpa [#allocation12], 0 }
   0xe   :  { %33 = vsyncpa [#allocation15], 0 }
   0xf   :  { %34 = vsyncpa [#allocation18], 0 }
  0x10   :  { %35 = vsyncpa [#allocation21], 0 }
  0x11   :  { %36 = vsyncpa [#allocation24], 0 }
  0x12   :  { %37 = vsyncpa [#allocation4], 0  ;;  %s6140_s5 = smov [#allocation5]   ;;  %s6141_s27 = smov [#allocation8]  }
  0x13   :  { %s60_s26 = sshll.u32 %s6140_s5, 4  ;;  %s81_s28 = sshll.u32 %s6141_s27, 4  ;;  %s61_s26 = int_to_ptr.vmem [resolvable:$true] %s60_s26  ;;  %s82_s28 = int_to_ptr.vmem [resolvable:$true] %s81_s28 }
  0x14   :  { %s5830_s6 = scalar_lea.vmem %s61_s26, 16  ;;  %s5834_s2 = scalar_lea.vmem %s61_s26, 32 }
  0x15   :  { %p5831_p0 = scmp.ne.s32.totalorder %s61_s26, %s5830_s6  ;;  %p5835_p1 = scmp.lt.s32.totalorder %s61_s26, %s61_s26 }
  0x16   :  { %p5836_p2 = scmp.lt.s32.totalorder %s5834_s2, %s5830_s6 }
  0x18   :  { %p5837_p3 = por %p5836_p2, %p5835_p1 }
  0x1a   :  { %p5838_p4 = pnand %p5837_p3, %p5831_p0 }
  0x1c   :  { %5841 = shalt.err (!%p5838_p4)
}
  0x1d   :  { %s6984_s7 = sld [smem:[#allocation39_spill]]  ;;  %s5850_s30 = scalar_lea.vmem %s82_s28, 512 }
  0x1e   :  { %p5851_p5 = scmp.ne.s32.totalorder %s82_s28, %s5850_s30  ;;  %p5855_p6 = scmp.lt.s32.totalorder %s82_s28, %s82_s28 }
  0x1f   :  { %p5856_p7 = scmp.lt.s32.totalorder %s5850_s30, %s5850_s30 }
  0x21   :  { %p5857_p8 = por %p5856_p7, %p5855_p6 }
  0x23   :  { %63 = dma.hbm_to_vmem [thread:$0]  %s6984_s7, 16, %s61_s26, [#allocation6]  }
  0x24   :  { %p5858_p9 = pnand %p5857_p8, %p5851_p5 }
  0x26   :  { %5861 = shalt.err (!%p5858_p9)
}
  0x27   :  { %s6142_s3 = smov 64   ;;  %s6143_s25 = smov 4  }
  0x28   :  { %s6985_s1 = sld [smem:[#allocation42_spill]]  ;;  %s6144_s5 = smov [#allocation11]  }
  0x29   :  { %s106_s27 = sshll.u32 %s6144_s5, 4  ;;  %s6145_s6 = smov [#allocation14]   ;;  %s107_s27 = int_to_ptr.vmem [resolvable:$true] %s106_s27 }
  0x2a   :  { %s125_s26 = sshll.u32 %s6145_s6, 4  ;;  %s5870_s2 = scalar_lea.vmem %s107_s27, 16  ;;  %s126_s26 = int_to_ptr.vmem [resolvable:$true] %s125_s26 }
  0x2b   :  { %p5871_p10 = scmp.ne.s32.totalorder %s107_s27, %s5870_s2  ;;  %s5874_s29 = scalar_lea.vmem %s107_s27, 32 }
  0x2c   :  { %p5875_p11 = scmp.lt.s32.totalorder %s107_s27, %s107_s27  ;;  %p5876_p12 = scmp.lt.s32.totalorder %s5874_s29, %s5870_s2 }
  0x2e   :  { %87 = dma.hbm_to_vmem [thread:$0]  %s6985_s1, 512, %s82_s28, [#allocation9], %s6142_s3, %s6142_s3, %s6143_s25  }
  0x2f   :  { %p5877_p13 = por %p5876_p12, %p5875_p11 }
  0x31   :  { %p5878_p0 = pnand %p5877_p13, %p5871_p10 }
  0x33   :  { %5881 = shalt.err (!%p5878_p0)
}
  0x34   :  { %109 = dma.hbm_to_vmem [thread:$0]  %s6957_s9, 16, %s107_s27, [#allocation12]  }
  0x35   :  { %s5890_s30 = scalar_lea.vmem %s126_s26, 2048  ;;  %p5895_p2 = scmp.lt.s32.totalorder %s126_s26, %s126_s26 }
  0x36   :  { %p5891_p1 = scmp.ne.s32.totalorder %s126_s26, %s5890_s30  ;;  %p5896_p3 = scmp.lt.s32.totalorder %s5890_s30, %s5890_s30 }
  0x38   :  { %p5897_p4 = por %p5896_p3, %p5895_p2 }
  0x3a   :  { %p5898_p5 = pnand %p5897_p4, %p5891_p1 }
  0x3c   :  { %5901 = shalt.err (!%p5898_p5)
}
  0x3d   :  { %s6146_s28 = smov 128   ;;  %s6147_s8 = smov 8  }
  0x3e   :  { %131 = dma.hbm_to_vmem [thread:$0]  %s6959_s11, 2048, %s126_s26, [#allocation15], %s6146_s28, %s6146_s28, %s6147_s8  }
  0x3f   :  { %s6148_s5 = smov [#allocation17]   ;;  %s6149_s2 = smov [#allocation20]  }
  0x40   :  { %s149_s6 = sshll.u32 %s6148_s5, 4  ;;  %s179_s9 = sshll.u32 %s6149_s2, 4  ;;  %s150_s6 = int_to_ptr.vmem [resolvable:$true] %s149_s6  ;;  %s180_s9 = int_to_ptr.vmem [resolvable:$true] %s179_s9 }
  0x41   :  { %s5910_s27 = scalar_lea.vmem %s150_s6, 2048  ;;  %p5915_p7 = scmp.lt.s32.totalorder %s150_s6, %s150_s6 }
  0x42   :  { %p5911_p6 = scmp.ne.s32.totalorder %s150_s6, %s5910_s27  ;;  %p5916_p8 = scmp.lt.s32.totalorder %s5910_s27, %s5910_s27 }
  0x44   :  { %p5917_p9 = por %p5916_p8, %p5915_p7 }
  0x46   :  { %p5918_p10 = pnand %p5917_p9, %p5911_p6 }
  0x48   :  { %5921 = shalt.err (!%p5918_p10)
}
  0x49   :  { %155 = dma.hbm_to_vmem [thread:$0]  %s6961_s13, 2048, %s150_s6, [#allocation18], %s6146_s28, %s6146_s28, %s6147_s8  }
  0x4a   :  { %s5930_s11 = scalar_lea.vmem %s180_s9, 4096  ;;  %p5935_p12 = scmp.lt.s32.totalorder %s180_s9, %s180_s9 }
  0x4b   :  { %p5931_p11 = scmp.ne.s32.totalorder %s180_s9, %s5930_s11  ;;  %p5936_p13 = scmp.lt.s32.totalorder %s5930_s11, %s5930_s11 }
  0x4d   :  { %p5937_p0 = por %p5936_p13, %p5935_p12 }
  0x4f   :  { %p5938_p1 = pnand %p5937_p0, %p5931_p11 }
  0x51   :  { %5941 = shalt.err (!%p5938_p1)
}
  0x52   :  { %185 = dma.hbm_to_vmem [thread:$0]  %s6966_s18, 4096, %s180_s9, [#allocation21], %s6146_s28, %s6146_s28, %s6147_s8  }
  0x53   :  { %s6150_s30 = smov [#allocation2]   ;;  %s6151_s1 = smov [#allocation7]  }
  0x54   :  { %s50_s4 = sshll.u32 %s6150_s30, 4  ;;  %s70_s5 = sshll.u32 %s6151_s1, 4  ;;  %s51_s4 = int_to_ptr.vmem [resolvable:$true] %s50_s4  ;;  %s71_s5 = int_to_ptr.vmem [resolvable:$true] %s70_s5 }
  0x55   :  { %s5950_s13 = scalar_lea.vmem %s51_s4, 128  ;;  %p5955_p3 = scmp.lt.s32.totalorder %s51_s4, %s51_s4 }
  0x56   :  { %p5951_p2 = scmp.ne.s32.totalorder %s51_s4, %s5950_s13  ;;  %p5956_p4 = scmp.lt.s32.totalorder %s5950_s13, %s5950_s13 }
  0x58   :  { %p5957_p5 = por %p5956_p4, %p5955_p3 }
  0x5a   :  { %p5958_p6 = pnand %p5957_p5, %p5951_p2 }
  0x5c   :  { %5961 = shalt.err (!%p5958_p6)
}
  0x5d   :  { %s6986_s27 = sld [smem:[#allocation38_spill]]  ;;  %s5970_s29 = scalar_lea.vmem %s71_s5, 16 }
  0x5e   :  { %p5971_p7 = scmp.ne.s32.totalorder %s71_s5, %s5970_s29  ;;  %s5974_s18 = scalar_lea.vmem %s71_s5, 32 }
  0x5f   :  { %p5975_p8 = scmp.lt.s32.totalorder %s71_s5, %s71_s5  ;;  %p5976_p9 = scmp.lt.s32.totalorder %s5974_s18, %s5970_s29 }
  0x61   :  { %p5977_p10 = por %p5976_p9, %p5975_p8 }
  0x63   :  { %53 = dma.hbm_to_vmem [thread:$0]  %s6986_s27, 128, %s51_s4, [#allocation3]  }
  0x64   :  { %p5978_p11 = pnand %p5977_p10, %p5971_p7 }
  0x66   :  { %5981 = shalt.err (!%p5978_p11)
}
  0x67   :  { %s6987_s11 = sld [smem:[#allocation40_spill]]  ;;  %s6152_s26 = smov [#allocation10]  }
  0x68   :  { %s93_s7 = sshll.u32 %s6152_s26, 4  ;;  %s6153_s30 = smov [#allocation13]   ;;  %s94_s7 = int_to_ptr.vmem [resolvable:$true] %s93_s7 }
  0x69   :  { %s116_s1 = sshll.u32 %s6153_s30, 4  ;;  %s5990_s13 = scalar_lea.vmem %s94_s7, 512  ;;  %s117_s1 = int_to_ptr.vmem [resolvable:$true] %s116_s1 }
  0x6a   :  { %p5991_p12 = scmp.ne.s32.totalorder %s94_s7, %s5990_s13  ;;  %p5995_p13 = scmp.lt.s32.totalorder %s94_s7, %s94_s7 }
  0x6b   :  { %p5996_p0 = scmp.lt.s32.totalorder %s5990_s13, %s5990_s13 }
  0x6d   :  { %73 = dma.hbm_to_vmem [thread:$0]  %s6987_s11, 16, %s71_s5, [#allocation6]  }
  0x6e   :  { %p5997_p1 = por %p5996_p0, %p5995_p13 }
  0x70   :  { %p5998_p2 = pnand %p5997_p1, %p5991_p12 }
  0x72   :  { %6001 = shalt.err (!%p5998_p2)
}
  0x73   :  { %s6988_s2 = sld [smem:[#allocation43_spill]]  ;;  %s6010_s5 = scalar_lea.vmem %s117_s1, 16 }
  0x74   :  { %p6011_p3 = scmp.ne.s32.totalorder %s117_s1, %s6010_s5  ;;  %s6014_s27 = scalar_lea.vmem %s117_s1, 32 }
  0x75   :  { %p6015_p4 = scmp.lt.s32.totalorder %s117_s1, %s117_s1  ;;  %p6016_p5 = scmp.lt.s32.totalorder %s6014_s27, %s6010_s5 }
  0x77   :  { %p6017_p6 = por %p6016_p5, %p6015_p4 }
  0x79   :  { %99 = dma.hbm_to_vmem [thread:$0]  %s6988_s2, 512, %s94_s7, [#allocation9], %s6142_s3, %s6142_s3, %s6143_s25  }
  0x7a   :  { %p6018_p7 = pnand %p6017_p6, %p6011_p3 }
  0x7c   :  { %6021 = shalt.err (!%p6018_p7)
}
  0x7d   :  { %119 = dma.hbm_to_vmem [thread:$0]  %s6958_s10, 16, %s117_s1, [#allocation12]  }
  0x7e   :  { %s6154_s9 = smov [#allocation16]   ;;  %s6155_s11 = smov [#allocation19]  }
  0x7f   :  { %s137_s0 = sshll.u32 %s6154_s9, 4  ;;  %s165_s26 = sshll.u32 %s6155_s11, 4  ;;  %s138_s0 = int_to_ptr.vmem [resolvable:$true] %s137_s0  ;;  %s166_s26 = int_to_ptr.vmem [resolvable:$true] %s165_s26 }
  0x80   :  { %s6030_s30 = scalar_lea.vmem %s138_s0, 2048  ;;  %p6035_p9 = scmp.lt.s32.totalorder %s138_s0, %s138_s0 }
  0x81   :  { %p6031_p8 = scmp.ne.s32.totalorder %s138_s0, %s6030_s30  ;;  %p6036_p10 = scmp.lt.s32.totalorder %s6030_s30, %s6030_s30 }
  0x83   :  { %p6037_p11 = por %p6036_p10, %p6035_p9 }
  0x85   :  { %p6038_p12 = pnand %p6037_p11, %p6031_p8 }
  0x87   :  { %6041 = shalt.err (!%p6038_p12)
}
  0x88   :  { %143 = dma.hbm_to_vmem [thread:$0]  %s6960_s12, 2048, %s138_s0, [#allocation15], %s6146_s28, %s6146_s28, %s6147_s8  }
  0x89   :  { %s6050_s10 = scalar_lea.vmem %s166_s26, 12288  ;;  %p6055_p0 = scmp.lt.s32.totalorder %s166_s26, %s166_s26 }
  0x8a   :  { %p6051_p13 = scmp.ne.s32.totalorder %s166_s26, %s6050_s10  ;;  %p6056_p1 = scmp.lt.s32.totalorder %s6050_s10, %s6050_s10 }
  0x8c   :  { %p6057_p2 = por %p6056_p1, %p6055_p0 }
  0x8e   :  { %p6058_p3 = pnand %p6057_p2, %p6051_p13 }
  0x90   :  { %6061 = shalt.err (!%p6058_p3)
}
  0x91   :  { %s6156_s1 = smov 384   ;;  %s6157_s13 = smov 24  }
  0x92   :  { %171 = dma.hbm_to_vmem [thread:$0]  %s6964_s16, 12288, %s166_s26, [#allocation18], %s6156_s1, %s6156_s1, %s6157_s13  }
  0x93   :  { %s6158_s2 = smov [#allocation22]   ;;  %s6159_s27 = smov [#allocation23]  }
  0x94   :  { %s193_s5 = sshll.u32 %s6158_s2, 4  ;;  %s207_s29 = sshll.u32 %s6159_s27, 4  ;;  %s194_s5 = int_to_ptr.vmem [resolvable:$true] %s193_s5  ;;  %s208_s29 = int_to_ptr.vmem [resolvable:$true] %s207_s29 }
  0x95   :  { %s6070_s12 = scalar_lea.vmem %s194_s5, 4096  ;;  %p6075_p5 = scmp.lt.s32.totalorder %s194_s5, %s194_s5 }
  0x96   :  { %p6071_p4 = scmp.ne.s32.totalorder %s194_s5, %s6070_s12  ;;  %p6076_p6 = scmp.lt.s32.totalorder %s6070_s12, %s6070_s12 }
  0x98   :  { %p6077_p7 = por %p6076_p6, %p6075_p5 }
  0x9a   :  { %p6078_p8 = pnand %p6077_p7, %p6071_p4 }
  0x9c   :  { %6081 = shalt.err (!%p6078_p8)
}
  0x9d   :  { %199 = dma.hbm_to_vmem [thread:$0]  %s6968_s20, 4096, %s194_s5, [#allocation21], %s6146_s28, %s6146_s28, %s6147_s8  }
  0x9e   :  { %s6090_s16 = scalar_lea.vmem %s208_s29, 4096  ;;  %p6095_p10 = scmp.lt.s32.totalorder %s208_s29, %s208_s29 }
  0x9f   :  { %p6091_p9 = scmp.ne.s32.totalorder %s208_s29, %s6090_s16  ;;  %p6096_p11 = scmp.lt.s32.totalorder %s6090_s16, %s6090_s16 }
  0xa1   :  { %p6097_p12 = por %p6096_p11, %p6095_p10 }
  0xa3   :  { %p6098_p13 = pnand %p6097_p12, %p6091_p9 }
  0xa5   :  { %6101 = shalt.err (!%p6098_p13)
}
  0xa6   :  { %213 = dma.hbm_to_vmem [thread:$0]  %s6970_s22, 4096, %s208_s29, [#allocation24], %s6146_s28, %s6146_s28, %s6147_s8  }
  0xa7   :  { %6122 = dma.done.wait [#allocation3], 128  }
  0xa8   :  { %6123 = vsyncadd [#allocation3], 4294967168 }
  0xa9   :  { %6124 = dma.done.wait [#allocation6], 32  }
  0xaa   :  { %6125 = vsyncadd [#allocation6], 4294967264 }
  0xab   :  { %6126 = dma.done.wait [#allocation9], 1024  }
  0xac   :  { %6127 = vsyncadd [#allocation9], 4294966272 }
  0xad   :  { %6128 = dma.done.wait [#allocation12], 32  }
  0xae   :  { %6129 = vsyncadd [#allocation12], 4294967264 }
  0xaf   :  { %6130 = dma.done.wait [#allocation15], 4096  }
  0xb0   :  { %6131 = vsyncadd [#allocation15], 4294963200 }
  0xb1   :  { %6132 = dma.done.wait [#allocation18], 14336  }
  0xb2   :  { %6133 = vsyncadd [#allocation18], 4294952960 }
  0xb3   :  { %6134 = dma.done.wait [#allocation21], 8192  }
  0xb4   :  { %6135 = vsyncadd [#allocation21], 4294959104 }
  0xb5   :  { %6136 = dma.done.wait [#allocation24], 4096  }
  0xb6   :  { %6137 = vsyncadd [#allocation24], 4294963200  ;;  %v263_v0 = vlaneseq  ;;  %vm381_vm0 = vcmask 1044480   ;;  %vm368_vm2 = vcmask 39936   ;;  %s6989_s28 = sld [smem:[#allocation36_spill]]  ;;  %v6160_v40 = vmov 0.0  }
  0xb7   :  { %s6990_s30 = sld [smem:[#allocation37_spill]]  ;;  %v570_v13 = vld [vmem:[#allocation2] sm:$0x1f]  ;;  %v5423_v45 = vld [vmem:[#allocation8 + $0x8] sm:$0xff]   ;;  %v5425_v47 = vld [vmem:[#allocation8] sm:$0xff]   ;;  %vm6161_vm8 = vmmov 0  }
  0xb8   :  { %v6356_v1 = vshrl.u32 %v263_v0, 7  ;;  %s6991_s10 = sld [smem:[#allocation35_spill]]  ;;  %v5419_v41 = vld [vmem:[#allocation8 + $0x18] sm:$0xff]   ;;  %v5421_v43 = vld [vmem:[#allocation8 + $0x10] sm:$0xff]   ;;  %v6162_v52 = vmov 1983009808  }
  0xb9   :  { %s6998_s12 = sld [smem:[#allocation41_spill]]  ;;  %v707_v53 = vunpack.c.l.s4 %v6162_v52  ;;  %v6462_v58 = vld [vmem:[#allocation5] ss:$0 sm:$0xff]  ;;  %v6464_v62 = vld [vmem:[#allocation7] ss:$0 sm:$0xff]  ;;  %vm789_vm9 = vcmask 517120  }
  0xba   :  { %v272_v2 = vand.u32 15, %v6356_v1  ;;  %v266_v3 = vadd.s32 16, %v6356_v1  ;;  %v6361_v4 = vadd.s32 8, %v6356_v1  ;;  %vm324_vm1 = vcmp.lt.s32.totalorder %v6356_v1, 1 }
  0xbb   :  { %vm349_vm3 = vcmp.lt.s32.totalorder %v6356_v1, 7  ;;  %v267_v22 = vadd.s32 24, %v6356_v1  ;;  %v708_v59 = vunpack.c.0.s8 %v707_v53  ;;  %vm944_vm10 = vcmask 1041409  }
  0xbc   :  { %v286_v5 = vand.u32 15, %v266_v3  ;;  %v367_v6 = vld [vmem:[%s6989_s28] sm:$0x1f]  ;;  %vm6379_vm4 = vcmp.eq.s32.totalorder %v272_v2, 0  ;;  %v279_v18 = vand.u32 15, %v6361_v4  ;;  %vm946_vm11 = vcmask 1042434  }
  0xbd   :  { %v366_v7 = vld [vmem:[%s6990_s30] sm:$0x1f]  ;;  %5227 = vmatprep.subr.msk.mxu0 %vm381_vm0, %v367_v6  ;;  %v293_v32 = vand.u32 15, %v267_v22  ;;  %vm948_vm12 = vcmask 1043459   ;;  %vm950_vm13 = vcmask 1044484   ;;  %vm952_vm14 = vcmask 1045509  }
  0xbe   :  { %v259_v8 = vld [vmem:[%s6991_s10] sm:$0xff]  ;;  %5235 = vmatprep.subr.msk.mxu1 %vm381_vm0, %v366_v7  ;;  %v262_v9 = vld [vmem:[%s6991_s10 + $0x18] sm:$0xff]  ;;  %v260_v12 = vld [vmem:[%s6991_s10 + $0x8] sm:$0xff]  ;;  %5228 = vmatpush3.msk.msra.mxu0 %vm381_vm0, %v367_v6  ;;  %vm6394_vm5 = vcmp.eq.s32.totalorder %v286_v5, 0  ;;  %vm6412_vm6 = vcmp.eq.s32.totalorder %v279_v18, 15  ;;  %v6468_v5 = vsub.s32 %v708_v59, %v6356_v1  ;;  %vm954_vm15 = vcmask 1046534  }
  0xbf   :  { %v320_v11 = vrot.slane %v259_v8, 7  ;;  %v323_v14 = vrot.slane %v262_v9, 7  ;;  %5236 = vmatpush3.msk.msra.mxu1 %vm381_vm0, %v366_v7  ;;  %v321_v15 = vrot.slane %v260_v12, 7  ;;  %v261_v16 = vld [vmem:[%s6991_s10 + $0x10] sm:$0xff]  ;;  %v346_v17 = vrot.slane %v260_v12, 1  ;;  %5237 = vmatprep.mubr.msk.f32.mxu1 %vm368_vm2, %v259_v8  ;;  %v5418_v39 = vld [vmem:[%s6998_s12 + $0x18] sm:$0xff]  }
  0xc0   :  { %5243 = vmatprep.subr.msk.mxu0 %vm381_vm0, %v570_v13  ;;  %v322_v20 = vrot.slane %v261_v16, 7  ;;  %v347_v21 = vrot.slane %v261_v16, 1  ;;  %5238 = vmatmul.mubr.msk.f32.vlgmr.msra.gmra.mxu1 %vm368_vm2, %v260_v12  ;;  %v345_v25 = vrot.slane %v259_v8, 1  ;;  %v348_v31 = vrot.slane %v262_v9, 1  ;;  %v5420_v42 = vld [vmem:[%s6998_s12 + $0x10] sm:$0xff]   ;;  %v5422_v44 = vld [vmem:[%s6998_s12 + $0x8] sm:$0xff]  }
  0xc1   :  { %v328_v23 = vsel %vm324_vm1, %v323_v14, %v320_v11  ;;  %v327_v24 = vsel %vm324_vm1, %v320_v11, %v321_v15  ;;  %5240 = vmatprep.mubr.msk.f32.mxu1 %vm368_vm2, %v261_v16  ;;  %vm344_vm7 = vcmp.eq.s32.totalorder %v293_v32, 15  ;;  %5251 = vmatprep.subr.bf16.mxu1 %v6160_v40  ;;  %v5424_v46 = vld [vmem:[%s6998_s12] sm:$0xff]  }
  0xc2   :  { %v337_v26 = vsel %vm6379_vm4, 0.0, %v328_v23  ;;  %v326_v27 = vsel %vm324_vm1, %v321_v15, %v322_v20  ;;  %v351_v30 = vsel %vm349_vm3, %v346_v17, %v347_v21  ;;  %v325_v33 = vsel %vm324_vm1, %v322_v20, %v323_v14  ;;  %5252 = vmatpush3.bf16.msra.mxu1 %v5418_v39 }
  0xc3   :  { %5229 = vmatprep.mubr.msk.f32.mxu0 %vm368_vm2, %v337_v26  ;;  %v339_v28 = vsel %vm6394_vm5, 0.0, %v326_v27  ;;  %v352_v34 = vsel %vm349_vm3, %v345_v25, %v346_v17  ;;  %v363_v35 = vsel %vm6412_vm6, 0.0, %v351_v30  ;;  %v350_v36 = vsel %vm349_vm3, %v347_v21, %v348_v31  ;;  %5253 = vmatprep.subr.bf16.mxu1 %v6160_v40 }
  0xc4   :  { %5230 = vmatmul.mubr.msk.f32.vlgmr.msra.gmra.mxu0 %vm368_vm2, %v327_v24  ;;  %5241 = vmatmul.mubr.msk.f32.gmra.mxu1 %vm368_vm2, %v262_v9  ;;  %v353_v37 = vsel %vm349_vm3, %v348_v31, %v345_v25  ;;  %vm1046_vm5 = vcmask 523264  }
  0xc5   :  { %5244 = vmatpush3.msk.msra.mxu0 %vm381_vm0, %v570_v13  ;;  %5232 = vmatprep.mubr.msk.f32.mxu0 %vm368_vm2, %v339_v28  ;;  %v365_v38 = vsel %vm344_vm7, 0.0, %v353_v37  ;;  %vm956_vm0 = vcmask 1047559  }
  0xc6   :  { %5263 = vmatprep.subr.bf16.mxu0 %v6160_v40  ;;  %5254 = vmatpush3.bf16.msra.mxu1 %v5420_v42 }
  0xc7   :  { %5255 = vmatprep.subr.bf16.mxu1 %v6160_v40  ;;  %5259 = vmatprep.mubr.msk.bf16.mxu1 %vm6161_vm8, %v6160_v40 }
  0xc8   :  { %5233 = vmatmul.mubr.msk.f32.gmra.mxu0 %vm368_vm2, %v325_v33 }
  0xc9   :  { %5245 = vmatprep.mubr.msk.f32.mxu0 %vm368_vm2, %v352_v34 }
  0xca   :  { %5256 = vmatpush3.bf16.msra.mxu1 %v5422_v44 }
  0xcb   :  { %5257 = vmatprep.subr.bf16.mxu1 %v6160_v40 }
  0xcc   :  { %5246 = vmatmul.mubr.msk.f32.vlgmr.msra.gmra.mxu0 %vm368_vm2, %v363_v35 }
  0xcd   :  { %5248 = vmatprep.mubr.msk.f32.mxu0 %vm368_vm2, %v350_v36  ;;  %5264 = vmatpush3.bf16.msra.mxu0 %v5419_v41 }
  0xce   :  { %5265 = vmatprep.subr.bf16.mxu0 %v6160_v40  ;;  %5258 = vmatpush3.bf16.msra.mxu1 %v5424_v46 }
  0xcf   :  { %5275 = vmatprep.subr.bf16.mxu1 %v6160_v40 }
  0xd0   :  { %5249 = vmatmul.mubr.msk.f32.gmra.mxu0 %vm368_vm2, %v365_v38 }
  0xd1   :  { %5266 = vmatpush3.bf16.msra.mxu0 %v5421_v43  ;;  %5271 = vmatprep.mubr.msk.bf16.mxu0 %vm6161_vm8, %v6160_v40 }
  0xd2   :  { %5267 = vmatprep.subr.bf16.mxu0 %v6160_v40 }
  0xd5   :  { %5268 = vmatpush3.bf16.msra.mxu0 %v5423_v45 }
  0xd6   :  { %5269 = vmatprep.subr.bf16.mxu0 %v6160_v40 }
  0xd9   :  { %5270 = vmatpush3.bf16.msra.mxu0 %v5425_v47 }
 0x180   :  { %v5239_v49 = vpop.f32.mrf.mxu1 }
 0x182   :  { %v551_v54 = vpop.f32.mrf.mxu1 }
 0x184   :  { %v5231_v48 = vpop.f32.mrf.mxu0  ;;  %v5242_v0 = vpop.f32.mrf.mxu1 }
 0x185   :  { %v557_v56 = vadd.f32 %v5239_v49, %v5231_v48 }
 0x186   :  { %v451_v50 = vpop.f32.mrf.mxu0  ;;  %v561_v31 = vpop.f32.mrf.mxu1 }
 0x187   :  { %v552_v60 = vadd.f32 %v551_v54, %v451_v50 }
 0x188   :  { %v5234_v51 = vpop.f32.mrf.mxu0 }
 0x189   :  { %v567_v9 = vadd.f32 %v5242_v0, %v5234_v51 }
 0x18a   :  { %v461_v55 = vpop.f32.mrf.mxu0 }
 0x18b   :  { %v562_v46 = vadd.f32 %v561_v31, %v461_v55 }
 0x18c   :  { %v5247_v57 = vpop.f32.mrf.mxu0 }
 0x18d   :  { %v672_v61 = vadd.f32 %v5247_v57, %v557_v56 }
 0x18e   :  { %v652_v63 = vpop.f32.mrf.mxu0 }
 0x18f   :  { %v683_v2 = vmul.f32 %v6462_v58, %v672_v61  ;;  %v671_v3 = vadd.f32 %v652_v63, %v552_v60 }
 0x190   :  { %v5250_v8 = vpop.f32.mrf.mxu0 }
 0x191   :  { %v694_v6 = vadd.f32 %v6464_v62, %v683_v2  ;;  %v682_v7 = vmul.f32 %v6462_v58, %v671_v3  ;;  %v674_v12 = vadd.f32 %v5250_v8, %v567_v9 }
 0x192   :  { %v662_v45 = vpop.f32.mrf.mxu0 }
 0x193   :  { %v698_v10 = vmax.f32 %v694_v6, 0.0  ;;  %v693_v11 = vadd.f32 %v6464_v62, %v682_v7  ;;  %v685_v22 = vmul.f32 %v6462_v58, %v674_v12  ;;  %v673_v56 = vadd.f32 %v662_v45, %v562_v46 }
 0x195   :  { %v722_v13 = vcombine.high %v698_v10, %v698_v10  ;;  %v729_v14 = vrot.slane %v698_v10, %v6468_v5  ;;  %v697_v15 = vmax.f32 %v693_v11, 0.0  ;;  %v696_v54 = vadd.f32 %v6464_v62, %v685_v22 }
 0x196   :  { %v684_v7 = vmul.f32 %v6462_v58, %v673_v56 }
 0x197   :  { %v736_v16 = vrot.slane %v722_v13, %v6468_v5  ;;  %v737_v17 = vcombine.high %v729_v14, %v729_v14  ;;  %v818_v18 = vsel %vm789_vm9, %v729_v14, -inf  ;;  %v705_v19 = vcombine.high %v697_v15, %v697_v15 }
 0x198   :  { %v819_v20 = vrot.slane %v818_v18, 4  ;;  %v712_v21 = vrot.slane %v697_v15, %v6468_v5  ;;  %v700_v55 = vmax.f32 %v696_v54, 0.0  ;;  %v913_v15 = vand.u32 7, %v6361_v4  ;;  %v5435_v4 = vld [vmem:[#allocation16 + $0x74] ss:$8 sps:$4 sm:$0xff]  }
 0x199   :  { %v738_v23 = vcombine.high %v736_v16, %v736_v16  ;;  %v825_v24 = vsel %vm789_vm9, %v737_v17, -inf  ;;  %v832_v25 = vsel %vm789_vm9, %v736_v16, -inf  ;;  %v719_v26 = vrot.slane %v705_v19, %v6468_v5 }
 0x19a   :  { %v820_v27 = vmax.f32 %v818_v18, %v819_v20  ;;  %v826_v28 = vrot.slane %v825_v24, 4  ;;  %v833_v29 = vrot.slane %v832_v25, 4  ;;  %v720_v30 = vcombine.high %v712_v21, %v712_v21 }
 0x19b   :  { %v839_v32 = vsel %vm789_vm9, %v738_v23, -inf  ;;  %v721_v33 = vcombine.high %v719_v26, %v719_v26  ;;  %v790_v34 = vsel %vm789_vm9, %v712_v21, -inf  ;;  %v804_v35 = vsel %vm789_vm9, %v719_v26, -inf }
 0x19c   :  { %v821_v36 = vrot.slane %v820_v27, 2  ;;  %v827_v37 = vmax.f32 %v825_v24, %v826_v28  ;;  %v834_v38 = vmax.f32 %v832_v25, %v833_v29  ;;  %v840_v39 = vrot.slane %v839_v32, 4 }
 0x19d   :  { %v791_v41 = vrot.slane %v790_v34, 4  ;;  %v797_v42 = vsel %vm789_vm9, %v720_v30, -inf  ;;  %v805_v43 = vrot.slane %v804_v35, 4  ;;  %v811_v44 = vsel %vm789_vm9, %v721_v33, -inf }
 0x19e   :  { %v828_v47 = vrot.slane %v827_v37, 2  ;;  %v841_v48 = vmax.f32 %v839_v32, %v840_v39  ;;  %v835_v49 = vrot.slane %v834_v38, 2  ;;  %v798_v51 = vrot.slane %v797_v42, 4 }
 0x19f   :  { %v792_v50 = vmax.f32 %v790_v34, %v791_v41  ;;  %v812_v52 = vrot.slane %v811_v44, 4  ;;  %v806_v53 = vmax.f32 %v804_v35, %v805_v43  ;;  %v822_v57 = vmax.f32 %v820_v27, %v821_v36 }
 0x1a0   :  { %v842_v59 = vrot.slane %v841_v48, 2  ;;  %v799_v60 = vmax.f32 %v797_v42, %v798_v51  ;;  %v829_v63 = vmax.f32 %v827_v37, %v828_v47  ;;  %v836_v0 = vmax.f32 %v834_v38, %v835_v49 }
 0x1a1   :  { %v813_v61 = vmax.f32 %v811_v44, %v812_v52  ;;  %v793_v2 = vrot.slane %v792_v50, 2  ;;  %v807_v6 = vrot.slane %v806_v53, 2  ;;  %v823_v8 = vrot.slane %v822_v57, 1 }
 0x1a2   :  { %v800_v3 = vrot.slane %v799_v60, 2  ;;  %v843_v9 = vmax.f32 %v841_v48, %v842_v59  ;;  %v830_v12 = vrot.slane %v829_v63, 1  ;;  %v837_v13 = vrot.slane %v836_v0, 1 }
 0x1a3   :  { %v814_v10 = vrot.slane %v813_v61, 2  ;;  %v794_v14 = vmax.f32 %v792_v50, %v793_v2  ;;  %v808_v16 = vmax.f32 %v806_v53, %v807_v6  ;;  %v756_v17 = vcombine.high %v700_v55, %v700_v55 }
 0x1a4   :  { %v801_v11 = vmax.f32 %v799_v60, %v800_v3  ;;  %v695_v18 = vadd.f32 %v6464_v62, %v684_v7  ;;  %v6490_v19 = vmax.f32 %v822_v57, %v823_v8  ;;  %v844_v20 = vrot.slane %v843_v9, 1 }
 0x1a5   :  { %v815_v21 = vmax.f32 %v813_v61, %v814_v10  ;;  %v763_v58 = vrot.slane %v700_v55, %v6468_v5  ;;  %v770_v23 = vrot.slane %v756_v17, %v6468_v5  ;;  %v6494_v24 = vmax.f32 %v829_v63, %v830_v12 }
 0x1a6   :  { %v802_v22 = vrot.slane %v801_v11, 1  ;;  %v6496_v25 = vmax.f32 %v836_v0, %v837_v13  ;;  %v795_v26 = vrot.slane %v794_v14, 1  ;;  %v906_v27 = vand.u32 7, %v6356_v1 }
 0x1a7   :  { %v809_v28 = vrot.slane %v808_v16, 1  ;;  %v771_v62 = vcombine.high %v763_v58, %v763_v58  ;;  %v772_v29 = vcombine.high %v770_v23, %v770_v23  ;;  %v699_v30 = vmax.f32 %v695_v18, 0.0 }
 0x1a8   :  { %v6499_v31 = vmax.f32 %v843_v9, %v844_v20  ;;  %v993_v32 = vpack.c.bf16 %v6490_v19, %v6490_v19  ;;  %v816_v33 = vrot.slane %v815_v21, 1  ;;  %v874_v34 = vsel %vm789_vm9, %v763_v58, -inf }
 0x1a9   :  { %v803_v35 = vmax.f32 %v801_v11, %v802_v22  ;;  %v875_v36 = vrot.slane %v874_v34, 4  ;;  %v881_v37 = vsel %vm789_vm9, %v771_v62, -inf  ;;  %v888_v38 = vsel %vm789_vm9, %v770_v23, -inf }
 0x1aa   :  { %v994_v39 = vpack.c.bf16 %v6494_v24, %v6494_v24  ;;  %v796_v41 = vmax.f32 %v794_v14, %v795_v26  ;;  %v882_v42 = vrot.slane %v881_v37, 4  ;;  %v889_v43 = vrot.slane %v888_v38, 4 }
 0x1ab   :  { %v810_v44 = vmax.f32 %v808_v16, %v809_v28  ;;  %v876_v45 = vmax.f32 %v874_v34, %v875_v36  ;;  %v895_v46 = vsel %vm789_vm9, %v772_v29, -inf  ;;  %v739_v47 = vcombine.high %v699_v30, %v699_v30 }
 0x1ac   :  { %v817_v48 = vmax.f32 %v815_v21, %v816_v33  ;;  %v883_v49 = vmax.f32 %v881_v37, %v882_v42  ;;  %v890_v50 = vmax.f32 %v888_v38, %v889_v43  ;;  %v896_v51 = vrot.slane %v895_v46, 4 }
 0x1ad   :  { %v945_v52 = vsel %vm944_vm10, %v803_v35, %v796_v41  ;;  %v990_v53 = vpack.c.bf16 %v803_v35, %v803_v35  ;;  %v746_v54 = vrot.slane %v699_v30, %v6468_v5  ;;  %v753_v56 = vrot.slane %v739_v47, %v6468_v5 }
 0x1ae   :  { %v989_v57 = vpack.c.bf16 %v796_v41, %v796_v41  ;;  %v877_v59 = vrot.slane %v876_v45, 2  ;;  %v884_v60 = vrot.slane %v883_v49, 2  ;;  %v897_v61 = vmax.f32 %v895_v46, %v896_v51 }
 0x1af   :  { %v991_v63 = vpack.c.bf16 %v810_v44, %v810_v44  ;;  %v754_v0 = vcombine.high %v746_v54, %v746_v54  ;;  %v755_v2 = vcombine.high %v753_v56, %v753_v56  ;;  %v846_v3 = vsel %vm789_vm9, %v746_v54, -inf }
 0x1b0   :  { %v947_v6 = vsel %vm946_vm11, %v810_v44, %v945_v52  ;;  %v992_v55 = vpack.c.bf16 %v817_v48, %v817_v48  ;;  %v891_v7 = vrot.slane %v890_v50, 2  ;;  %v847_v8 = vrot.slane %v846_v3, 4 }
 0x1b1   :  { %v1108_v9 = vunpack.c.l.b16 %v990_v53  ;;  %v853_v10 = vsel %vm789_vm9, %v754_v0, -inf  ;;  %v860_v11 = vsel %vm789_vm9, %v753_v56, -inf  ;;  %v867_v12 = vsel %vm789_vm9, %v755_v2, -inf }
 0x1b2   :  { %v878_v13 = vmax.f32 %v876_v45, %v877_v59  ;;  %v885_v14 = vmax.f32 %v883_v49, %v884_v60  ;;  %v898_v16 = vrot.slane %v897_v61, 2  ;;  %v848_v17 = vmax.f32 %v846_v3, %v847_v8 }
 0x1b3   :  { %v1107_v18 = vunpack.c.l.b16 %v989_v57  ;;  %v854_v20 = vrot.slane %v853_v10, 4  ;;  %v861_v21 = vrot.slane %v860_v11, 4  ;;  %v868_v22 = vrot.slane %v867_v12, 4 }
 0x1b4   :  { %v949_v58 = vsel %vm948_vm12, %v817_v48, %v947_v6  ;;  %v1109_v23 = vunpack.c.l.b16 %v991_v63  ;;  %v892_v26 = vmax.f32 %v890_v50, %v891_v7  ;;  %v849_v28 = vrot.slane %v848_v17, 2 }
 0x1b5   :  { %v1123_v62 = vsel %vm944_vm10, %v1108_v9, %v1107_v18  ;;  %v855_v29 = vmax.f32 %v853_v10, %v854_v20  ;;  %v862_v30 = vmax.f32 %v860_v11, %v861_v21  ;;  %v869_v33 = vmax.f32 %v867_v12, %v868_v22 }
 0x1b6   :  { %v879_v34 = vrot.slane %v878_v13, 1  ;;  %v886_v35 = vrot.slane %v885_v14, 1  ;;  %v899_v36 = vmax.f32 %v897_v61, %v898_v16  ;;  %v850_v37 = vmax.f32 %v848_v17, %v849_v28 }
 0x1b7   :  { %v995_v38 = vpack.c.bf16 %v6496_v25, %v6496_v25  ;;  %v856_v41 = vrot.slane %v855_v29, 2  ;;  %v863_v42 = vrot.slane %v862_v30, 2  ;;  %v870_v43 = vrot.slane %v869_v33, 2 }
 0x1b8   :  { %v951_v44 = vsel %vm950_vm13, %v6490_v19, %v949_v58  ;;  %v1110_v45 = vunpack.c.l.b16 %v992_v55  ;;  %v893_v46 = vrot.slane %v892_v26, 1  ;;  %v851_v47 = vrot.slane %v850_v37, 1 }
 0x1b9   :  { %v1124_v48 = vsel %vm946_vm11, %v1109_v23, %v1123_v62  ;;  %v857_v49 = vmax.f32 %v855_v29, %v856_v41  ;;  %v864_v50 = vmax.f32 %v862_v30, %v863_v42  ;;  %v871_v51 = vmax.f32 %v869_v33, %v870_v43 }
 0x1ba   :  { %v880_v52 = vmax.f32 %v878_v13, %v879_v34  ;;  %v887_v53 = vmax.f32 %v885_v14, %v886_v35  ;;  %v900_v54 = vrot.slane %v899_v36, 1  ;;  %v852_v56 = vmax.f32 %v850_v37, %v851_v47 }
 0x1bb   :  { %v953_v57 = vsel %vm952_vm14, %v6494_v24, %v951_v44  ;;  %v858_v59 = vrot.slane %v857_v49, 1  ;;  %v865_v60 = vrot.slane %v864_v50, 1  ;;  %v872_v61 = vrot.slane %v871_v51, 1 }
 0x1bc   :  { %v1111_v63 = vunpack.c.l.b16 %v993_v32  ;;  %v1112_v0 = vunpack.c.l.b16 %v994_v39  ;;  %v894_v2 = vmax.f32 %v892_v26, %v893_v46  ;;  %v997_v3 = vpack.c.bf16 %v852_v56, %v852_v56  ;;  %v5462_v26 = vld [vmem:[#allocation14 + $0x24] ss:$8 sps:$4 sm:$0xff]  }
 0x1bd   :  { %v1125_v6 = vsel %vm948_vm12, %v1110_v45, %v1124_v48  ;;  %v859_v55 = vmax.f32 %v857_v49, %v858_v59  ;;  %v866_v7 = vmax.f32 %v864_v50, %v865_v60  ;;  %v873_v8 = vmax.f32 %v871_v51, %v872_v61  ;;  %v5426_v59 = vld [vmem:[#allocation10 + $0x18] sm:$0xff]  }
 0x1be   :  { %vm6535_vm2 = vcmp.eq.s32.totalorder %v913_v15, 0  ;;  %v901_v10 = vmax.f32 %v899_v36, %v900_v54  ;;  %v1001_v19 = vpack.c.bf16 %v880_v52, %v880_v52  ;;  %v1002_v32 = vpack.c.bf16 %v887_v53, %v887_v53 }
 0x1bf   :  { %v955_v24 = vsel %vm954_vm15, %v6496_v25, %v953_v57  ;;  %v958_v39 = vsel %vm944_vm10, %v859_v55, %v852_v56  ;;  %v998_v11 = vpack.c.bf16 %v859_v55, %v859_v55  ;;  %v999_v12 = vpack.c.bf16 %v866_v7, %v866_v7 }
 0x1c0   :  { %v1000_v13 = vpack.c.bf16 %v873_v8, %v873_v8  ;;  %v1003_v14 = vpack.c.bf16 %v894_v2, %v894_v2  ;;  %v959_v16 = vsel %vm946_vm11, %v866_v7, %v958_v39  ;;  %v1115_v17 = vunpack.c.l.b16 %v997_v3  ;;  %v5429_v7 = vld [vmem:[#allocation10] sm:$0xff]   ;;  %v5441_v39 = vld [vmem:[#allocation16 + $0x64] ss:$8 sps:$4 sm:$0xff]  }
 0x1c1   :  { %v1126_v18 = vsel %vm950_vm13, %v1111_v63, %v1125_v6  ;;  %v960_v20 = vsel %vm948_vm12, %v873_v8, %v959_v16  ;;  %v1116_v21 = vunpack.c.l.b16 %v998_v11  ;;  %v1117_v22 = vunpack.c.l.b16 %v999_v12  ;;  %v5427_v63 = vld [vmem:[#allocation10 + $0x10] sm:$0xff]   ;;  %v5439_v11 = vld [vmem:[#allocation16 + $0x60] ss:$8 sps:$4 sm:$0xff]   ;;  %v5444_v12 = vld [vmem:[#allocation14 + $0x54] ss:$8 sps:$4 sm:$0xff]  }
 0x1c2   :  { %v1118_v58 = vunpack.c.l.b16 %v1000_v13  ;;  %v996_v23 = vpack.c.bf16 %v6499_v31, %v6499_v31  ;;  %v961_v25 = vsel %vm950_vm13, %v880_v52, %v960_v20  ;;  %vm6550_vm4 = vcmp.eq.s32.totalorder %v906_v27, 0  ;;  %v5442_v13 = vld [vmem:[#allocation14 + $0x50] ss:$8 sps:$4 sm:$0xff]   ;;  %v5453_v20 = vld [vmem:[#allocation16 + $0x44] ss:$8 sps:$4 sm:$0xff]  }
 0x1c3   :  { %v957_v28 = vsel %vm956_vm0, %v6499_v31, %v955_v24  ;;  %v1004_v62 = vpack.c.bf16 %v901_v10, %v901_v10  ;;  %v962_v29 = vsel %vm952_vm14, %v887_v53, %v961_v25  ;;  %v1130_v30 = vsel %vm944_vm10, %v1116_v21, %v1115_v17  ;;  %v5436_v24 = vld [vmem:[#allocation14 + $0x60] ss:$8 sps:$4 sm:$0xff]   ;;  %v5445_v16 = vld [vmem:[#allocation16 + $0x50] ss:$8 sps:$4 sm:$0xff]   ;;  %v5450_v17 = vld [vmem:[#allocation14 + $0x44] ss:$8 sps:$4 sm:$0xff]  }
 0x1c4   :  { %v1127_v33 = vsel %vm952_vm14, %v1112_v0, %v1126_v18  ;;  %v1113_v34 = vunpack.c.l.b16 %v995_v38  ;;  %v1119_v35 = vunpack.c.l.b16 %v1001_v19  ;;  %v1131_v36 = vsel %vm946_vm11, %v1117_v22, %v1130_v30  ;;  %v5430_v19 = vld [vmem:[#allocation14 + $0x70] ss:$8 sps:$4 sm:$0xff]   ;;  %v5448_v18 = vld [vmem:[#allocation14 + $0x40] ss:$8 sps:$4 sm:$0xff]   ;;  %v5456_v22 = vld [vmem:[#allocation14 + $0x34] ss:$8 sps:$4 sm:$0xff]  }
 0x1c5   :  { %v963_v37 = vsel %vm954_vm15, %v894_v2, %v962_v29  ;;  %v1120_v41 = vunpack.c.l.b16 %v1002_v32  ;;  %v1121_v42 = vunpack.c.l.b16 %v1003_v14  ;;  %v1132_v43 = vsel %vm948_vm12, %v1118_v58, %v1131_v36  ;;  %v5428_v2 = vld [vmem:[#allocation10 + $0x8] sm:$0xff]   ;;  %v5447_v14 = vld [vmem:[#allocation16 + $0x54] ss:$8 sps:$4 sm:$0xff]   ;;  %v5454_v58 = vld [vmem:[#allocation14 + $0x30] ss:$8 sps:$4 sm:$0xff]  }
 0x1c6   :  { %v964_v44 = vsel %vm956_vm0, %v901_v10, %v963_v37  ;;  %v967_v31 = vrot.slane %v957_v28, 7  ;;  %v1128_v46 = vsel %vm954_vm15, %v1113_v34, %v1127_v33  ;;  %v1133_v47 = vsel %vm950_vm13, %v1119_v35, %v1132_v43  ;;  %v5438_v32 = vld [vmem:[#allocation14 + $0x64] ss:$8 sps:$4 sm:$0xff]   ;;  %v5451_v21 = vld [vmem:[#allocation16 + $0x40] ss:$8 sps:$4 sm:$0xff]  }
 0x1c7   :  { %v968_v45 = vrot.slane %v964_v44, 7  ;;  %v1114_v48 = vunpack.c.l.b16 %v996_v23  ;;  %v1122_v49 = vunpack.c.l.b16 %v1004_v62  ;;  %v1134_v38 = vsel %vm952_vm14, %v1120_v41, %v1133_v47  ;;  %v5459_v23 = vld [vmem:[#allocation16 + $0x34] ss:$8 sps:$4 sm:$0xff]   ;;  %v5457_v25 = vld [vmem:[#allocation16 + $0x30] ss:$8 sps:$4 sm:$0xff]  }
 0x1c8   :  { %v1135_v52 = vsel %vm954_vm15, %v1121_v42, %v1134_v38  ;;  %v980_v0 = vrot.slane %v964_v44, 1  ;;  %v979_v3 = vrot.slane %v957_v28, 1  ;;  %vm978_vm6 = vcmp.eq.s32.totalorder %v913_v15, 7  ;;  %v5433_v15 = vld [vmem:[#allocation16 + $0x70] ss:$8 sps:$4 sm:$0xff]  }
 0x1c9   :  { %v969_v50 = vsel %vm324_vm1, %v967_v31, %v968_v45  ;;  %v970_v51 = vsel %vm324_vm1, %v968_v45, %v967_v31  ;;  %v1129_v56 = vsel %vm956_vm0, %v1114_v48, %v1128_v46  ;;  %v1136_v57 = vsel %vm956_vm0, %v1122_v49, %v1135_v52  ;;  %v5460_v28 = vld [vmem:[#allocation14 + $0x20] ss:$8 sps:$4 sm:$0xff]   ;;  %v5465_v62 = vld [vmem:[#allocation16 + $0x24] ss:$8 sps:$4 sm:$0xff]   ;;  %v5468_v30 = vld [vmem:[#allocation14 + $0x14] ss:$8 sps:$4 sm:$0xff]  }
 0x1ca   :  { %v975_v53 = vsel %vm6550_vm4, 0.0, %v970_v51  ;;  %v976_v54 = vsel %vm6535_vm2, 0.0, %v969_v50  ;;  %v1137_v61 = vpack.c.b16 %v1136_v57, %v1129_v56  ;;  %vm977_vm1 = vcmp.eq.s32.totalorder %v906_v27, 7  ;;  %v5432_v27 = vld [vmem:[#allocation14 + $0x74] ss:$8 sps:$4 sm:$0xff]  }
 0x1cb   :  { %v1013_v60 = vpack.c.bf16 %v976_v54, %v975_v53  ;;  %v981_v6 = vsel %vm349_vm3, %v979_v3, %v980_v0  ;;  %v982_v55 = vsel %vm349_vm3, %v980_v0, %v979_v3  ;;  %1565 = vmatprep.subr.bf16.mxu0 %v5432_v27  ;;  %v5463_v29 = vld [vmem:[#allocation16 + $0x20] ss:$8 sps:$4 sm:$0xff]   ;;  %v5466_v33 = vld [vmem:[#allocation14 + $0x10] ss:$8 sps:$4 sm:$0xff]   ;;  %v5471_v34 = vld [vmem:[#allocation16 + $0x14] ss:$8 sps:$4 sm:$0xff]  }
 0x1cc   :  { %5272 = vmatmul.mubr.msk.bf16.vlgmr.msra.gmra.mxu0 %vm1046_vm5, %v1137_v61  ;;  %v987_v8 = vsel %vm977_vm1, 0.0, %v981_v6  ;;  %v988_v9 = vsel %vm978_vm6, 0.0, %v982_v55  ;;  %v5469_v35 = vld [vmem:[#allocation16 + $0x10] ss:$8 sps:$4 sm:$0xff]   ;;  %v5472_v36 = vld [vmem:[#allocation14] ss:$8 sps:$4 sm:$0xff]  }
 0x1cd   :  { %5260 = vmatmul.mubr.msk.bf16.vlgmr.msra.gmra.mxu1 %vm1046_vm5, %v1013_v60  ;;  %v1206_v10 = vpack.c.bf16 %v988_v9, %v987_v8  ;;  %1566 = vmatpush1.bf16.msra.mxu0 %v5430_v19  ;;  %v5474_v37 = vld [vmem:[#allocation14 + $0x4] ss:$8 sps:$4 sm:$0xff]   ;;  %v5475_v42 = vld [vmem:[#allocation16] ss:$8 sps:$4 sm:$0xff]   ;;  %v5480_v43 = vld [vmem:[#allocation17 + $0x74] ss:$8 sps:$4 sm:$0xff]  }
 0x1ce   :  { %5276 = vmatpush3.bf16.msra.mxu1 %v5426_v59  ;;  %5283 = vmatprep.mubr.msk.bf16.mxu1 %vm6161_vm8, %v6160_v40  ;;  %v5477_v41 = vld [vmem:[#allocation16 + $0x4] ss:$8 sps:$4 sm:$0xff]   ;;  %v6163_v44 = vmov 0   ;;  %v4890_v53 = vld [vmem:[#allocation11] ss:$0 sm:$0xff]  ;;  %vm1349_vm3 = vcmask 1041408  }
 0x1cf   :  { %5277 = vmatprep.subr.bf16.mxu1 %v6160_v40  ;;  %1567 = vmatprep.subr.bf16.mxu0 %v5438_v32  ;;  %v4891_v56 = vld [vmem:[#allocation13] ss:$0 sm:$0xff] }
 0x1d0   :  { %1597 = vmatprep.mubr.bf16.mxu0 %v6163_v44 }
 0x1d1   :  { %1568 = vmatpush1.bf16.msra.mxu0 %v5436_v24 }
 0x1d2   :  { %5278 = vmatpush3.bf16.msra.mxu1 %v5427_v63  ;;  %1569 = vmatprep.subr.bf16.mxu0 %v5444_v12 }
 0x1d3   :  { %5279 = vmatprep.subr.bf16.mxu1 %v6160_v40 }
 0x1d5   :  { %1570 = vmatpush1.bf16.msra.mxu0 %v5442_v13 }
 0x1d6   :  { %5280 = vmatpush3.bf16.msra.mxu1 %v5428_v2  ;;  %1571 = vmatprep.subr.bf16.mxu0 %v5450_v17 }
 0x1d7   :  { %5281 = vmatprep.subr.bf16.mxu1 %v6160_v40 }
 0x1d9   :  { %1572 = vmatpush1.bf16.msra.mxu0 %v5448_v18 }
 0x1da   :  { %5282 = vmatpush3.bf16.msra.mxu1 %v5429_v7  ;;  %1573 = vmatprep.subr.bf16.mxu0 %v5456_v22 }
 0x1db   :  { %1711 = vmatprep.subr.bf16.mxu1 %v5435_v4 }
 0x1dd   :  { %5284 = vmatmul.mubr.msk.bf16.vlgmr.msra.gmra.mxu1 %vm1046_vm5, %v1206_v10  ;;  %1574 = vmatpush1.bf16.msra.mxu0 %v5454_v58 }
 0x1de   :  { %1712 = vmatpush1.bf16.msra.mxu1 %v5433_v15  ;;  %1575 = vmatprep.subr.bf16.mxu0 %v5462_v26 }
 0x1df   :  { %1713 = vmatprep.subr.bf16.mxu1 %v5441_v39  ;;  %1743 = vmatprep.mubr.bf16.mxu1 %v6163_v44 }
 0x1e1   :  { %1576 = vmatpush1.bf16.msra.mxu0 %v5460_v28 }
 0x1e2   :  { %1714 = vmatpush1.bf16.msra.mxu1 %v5439_v11  ;;  %1577 = vmatprep.subr.bf16.mxu0 %v5468_v30 }
 0x1e3   :  { %1715 = vmatprep.subr.bf16.mxu1 %v5447_v14 }
 0x1e5   :  { %1578 = vmatpush1.bf16.msra.mxu0 %v5466_v33 }
 0x1e6   :  { %1716 = vmatpush1.bf16.msra.mxu1 %v5445_v16  ;;  %1579 = vmatprep.subr.bf16.mxu0 %v5474_v37 }
 0x1e7   :  { %1717 = vmatprep.subr.bf16.mxu1 %v5453_v20 }
 0x1e9   :  { %1580 = vmatpush1.bf16.msra.mxu0 %v5472_v36 }
 0x1ea   :  { %1718 = vmatpush1.bf16.msra.mxu1 %v5451_v21  ;;  %1849 = vmatprep.subr.bf16.mxu0 %v5480_v43 }
 0x1eb   :  { %1719 = vmatprep.subr.bf16.mxu1 %v5459_v23 }
 0x1ee   :  { %1720 = vmatpush1.bf16.msra.mxu1 %v5457_v25 }
 0x1ef   :  { %1721 = vmatprep.subr.bf16.mxu1 %v5465_v62 }
 0x1f2   :  { %1722 = vmatpush1.bf16.msra.mxu1 %v5463_v29 }
 0x1f3   :  { %1723 = vmatprep.subr.bf16.mxu1 %v5471_v34 }
 0x1f6   :  { %1724 = vmatpush1.bf16.msra.mxu1 %v5469_v35 }
 0x1f7   :  { %1725 = vmatprep.subr.bf16.mxu1 %v5477_v41 }
 0x1fa   :  { %1726 = vmatpush1.bf16.msra.mxu1 %v5475_v42 }
 0x28c   :  { %v1199_v45 = vpop.f32.mrf.mxu0 }
 0x28d   :  { %v1084_v31 = vpop.f32.mrf.mxu1 }
 0x28e   :  { %v5273_v47 = vpop.f32.mrf.mxu0  ;;  %v1200_v51 = vadd.f32 %v1199_v45, %v1084_v31 }
 0x28f   :  { %v5261_v46 = vpop.f32.mrf.mxu1 }
 0x290   :  { %v1202_v49 = vpop.f32.mrf.mxu0 }
 0x291   :  { %v1087_v48 = vpop.f32.mrf.mxu1 }
 0x292   :  { %v5274_v50 = vpop.f32.mrf.mxu0  ;;  %v1203_v59 = vadd.f32 %v1202_v49, %v1087_v48 }
 0x293   :  { %v5262_v38 = vpop.f32.mrf.mxu1 }
 0x29d   :  { %v1276_v52 = vpop.f32.mrf.mxu1 }
 0x29e   :  { %v1283_v54 = vadd.f32 %v1276_v52, %v1200_v51 }
 0x29f   :  { %v5285_v57 = vpop.f32.mrf.mxu1 }
 0x2a0   :  { %v1292_v60 = vmul.f32 %v4890_v53, %v1283_v54 }
 0x2a1   :  { %v1279_v61 = vpop.f32.mrf.mxu1 }
 0x2a2   :  { %v1301_v63 = vadd.f32 %v4891_v56, %v1292_v60  ;;  %v1284_v0 = vadd.f32 %v1279_v61, %v1203_v59 }
 0x2a3   :  { %v5286_v2 = vpop.f32.mrf.mxu1 }
 0x2a4   :  { %v1303_v3 = vmax.f32 %v1301_v63, 0.0  ;;  %v1293_v6 = vmul.f32 %v4890_v53, %v1284_v0 }
 0x2a6   :  { %v1307_v55 = vcombine.high %v1303_v3, %v1303_v3  ;;  %v1314_v7 = vrot.slane %v1303_v3, %v6468_v5  ;;  %v1302_v8 = vadd.f32 %v4891_v56, %v1293_v6 }
 0x2a8   :  { %v1321_v9 = vrot.slane %v1307_v55, %v6468_v5  ;;  %v1322_v10 = vcombine.high %v1314_v7, %v1314_v7  ;;  %v1350_v27 = vsel %vm1349_vm3, %v1314_v7, -inf  ;;  %v1304_v19 = vmax.f32 %v1302_v8, 0.0 }
 0x2a9   :  { %v1351_v4 = vrot.slane %v1350_v27, 4 }
 0x2aa   :  { %v1323_v15 = vcombine.high %v1321_v9, %v1321_v9  ;;  %v1357_v32 = vsel %vm1349_vm3, %v1322_v10, -inf  ;;  %v1364_v24 = vsel %vm1349_vm3, %v1321_v9, -inf  ;;  %v1324_v39 = vcombine.high %v1304_v19, %v1304_v19 }
 0x2ab   :  { %v1352_v11 = vmax.f32 %v1350_v27, %v1351_v4  ;;  %v1358_v12 = vrot.slane %v1357_v32, 4  ;;  %v1365_v13 = vrot.slane %v1364_v24, 4  ;;  %v1331_v14 = vrot.slane %v1304_v19, %v6468_v5 }
 0x2ac   :  { %v1371_v16 = vsel %vm1349_vm3, %v1323_v15, -inf  ;;  %v1338_v17 = vrot.slane %v1324_v39, %v6468_v5 }
 0x2ad   :  { %v1353_v18 = vrot.slane %v1352_v11, 2  ;;  %v1359_v20 = vmax.f32 %v1357_v32, %v1358_v12  ;;  %v1366_v21 = vmax.f32 %v1364_v24, %v1365_v13  ;;  %v1372_v22 = vrot.slane %v1371_v16, 4 }
 0x2ae   :  { %v1339_v58 = vcombine.high %v1331_v14, %v1331_v14  ;;  %v1340_v23 = vcombine.high %v1338_v17, %v1338_v17  ;;  %v1378_v25 = vsel %vm1349_vm3, %v1331_v14, -inf  ;;  %v1392_v26 = vsel %vm1349_vm3, %v1338_v17, -inf }
 0x2af   :  { %v1354_v28 = vmax.f32 %v1352_v11, %v1353_v18  ;;  %v1360_v62 = vrot.slane %v1359_v20, 2  ;;  %v1367_v29 = vrot.slane %v1366_v21, 2  ;;  %v1373_v30 = vmax.f32 %v1371_v16, %v1372_v22 }
 0x2b0   :  { %v1379_v33 = vrot.slane %v1378_v25, 4  ;;  %v1385_v34 = vsel %vm1349_vm3, %v1339_v58, -inf  ;;  %v1393_v35 = vrot.slane %v1392_v26, 4  ;;  %v1399_v36 = vsel %vm1349_vm3, %v1340_v23, -inf }
 0x2b1   :  { %v1355_v37 = vrot.slane %v1354_v28, 1  ;;  %v1361_v41 = vmax.f32 %v1359_v20, %v1360_v62  ;;  %v1368_v42 = vmax.f32 %v1366_v21, %v1367_v29  ;;  %v1374_v43 = vrot.slane %v1373_v30, 2 }
 0x2b2   :  { %v1380_v31 = vmax.f32 %v1378_v25, %v1379_v33  ;;  %v1386_v45 = vrot.slane %v1385_v34, 4  ;;  %v1394_v46 = vmax.f32 %v1392_v26, %v1393_v35  ;;  %v1400_v47 = vrot.slane %v1399_v36, 4 }
 0x2b3   :  { %v1356_v48 = vmax.f32 %v1354_v28, %v1355_v37  ;;  %v1362_v49 = vrot.slane %v1361_v41, 1  ;;  %v1369_v38 = vrot.slane %v1368_v42, 1  ;;  %v1375_v50 = vmax.f32 %v1373_v30, %v1374_v43  ;;  %v5478_v43 = vld [vmem:[#allocation17 + $0x70] ss:$8 sps:$4 sm:$0xff]  }
 0x2b4   :  { %v1381_v51 = vrot.slane %v1380_v31, 2  ;;  %v1387_v52 = vmax.f32 %v1385_v34, %v1386_v45  ;;  %v1395_v53 = vrot.slane %v1394_v46, 2  ;;  %v1401_v54 = vmax.f32 %v1399_v36, %v1400_v47  ;;  %v5544_v30 = vld [vmem:[#allocation19] ss:$24 sps:$4 sm:$0xff]  }
 0x2b5   :  { %v1363_v56 = vmax.f32 %v1361_v41, %v1362_v49  ;;  %v1370_v57 = vmax.f32 %v1368_v42, %v1369_v38  ;;  %v1376_v59 = vrot.slane %v1375_v50, 1  ;;  %v1444_v60 = vpack.c.bf16 %v1356_v48, %v1356_v48 }
 0x2b6   :  { %v1382_v61 = vmax.f32 %v1380_v31, %v1381_v51  ;;  %v1388_v63 = vrot.slane %v1387_v52, 2  ;;  %v1396_v0 = vmax.f32 %v1394_v46, %v1395_v53  ;;  %v1402_v2 = vrot.slane %v1401_v54, 2  ;;  %v5486_v51 = vld [vmem:[#allocation17 + $0x54] ss:$8 sps:$4 sm:$0xff]   ;;  %v5489_v53 = vld [vmem:[#allocation17 + $0x44] ss:$8 sps:$4 sm:$0xff]  }
 0x2b7   :  { %v1377_v3 = vmax.f32 %v1375_v50, %v1376_v59  ;;  %v1427_v6 = vsel %vm944_vm10, %v1363_v56, %v1356_v48  ;;  %v1445_v55 = vpack.c.bf16 %v1363_v56, %v1363_v56  ;;  %v1446_v7 = vpack.c.bf16 %v1370_v57, %v1370_v57  ;;  %v5483_v48 = vld [vmem:[#allocation17 + $0x64] ss:$8 sps:$4 sm:$0xff]   ;;  %v5481_v50 = vld [vmem:[#allocation17 + $0x60] ss:$8 sps:$4 sm:$0xff]   ;;  %v5492_v56 = vld [vmem:[#allocation17 + $0x34] ss:$8 sps:$4 sm:$0xff]  }
 0x2b8   :  { %v1428_v8 = vsel %vm946_vm11, %v1370_v57, %v1427_v6  ;;  %v1614_v9 = vunpack.c.l.b16 %v1444_v60  ;;  %v1383_v10 = vrot.slane %v1382_v61, 1  ;;  %v1389_v27 = vmax.f32 %v1387_v52, %v1388_v63  ;;  %v5484_v52 = vld [vmem:[#allocation17 + $0x50] ss:$8 sps:$4 sm:$0xff]   ;;  %v5495_v59 = vld [vmem:[#allocation17 + $0x24] ss:$8 sps:$4 sm:$0xff]  }
 0x2b9   :  { %v1447_v19 = vpack.c.bf16 %v1377_v3, %v1377_v3  ;;  %v1615_v4 = vunpack.c.l.b16 %v1445_v55  ;;  %v1616_v15 = vunpack.c.l.b16 %v1446_v7  ;;  %v1397_v32 = vrot.slane %v1396_v0, 1  ;;  %v5490_v57 = vld [vmem:[#allocation17 + $0x30] ss:$8 sps:$4 sm:$0xff]   ;;  %v5493_v60 = vld [vmem:[#allocation17 + $0x20] ss:$8 sps:$4 sm:$0xff]  }
 0x2ba   :  { %v1384_v24 = vmax.f32 %v1382_v61, %v1383_v10  ;;  %v1390_v39 = vrot.slane %v1389_v27, 1  ;;  %v1403_v11 = vmax.f32 %v1401_v54, %v1402_v2  ;;  %v1429_v12 = vsel %vm948_vm12, %v1377_v3, %v1428_v8  ;;  %v5487_v54 = vld [vmem:[#allocation17 + $0x40] ss:$8 sps:$4 sm:$0xff]   ;;  %v5498_v61 = vld [vmem:[#allocation17 + $0x14] ss:$8 sps:$4 sm:$0xff]  }
 0x2bb   :  { %v1617_v13 = vunpack.c.l.b16 %v1447_v19  ;;  %v1622_v14 = vsel %vm944_vm10, %v1615_v4, %v1614_v9  ;;  %v1398_v16 = vmax.f32 %v1396_v0, %v1397_v32  ;;  %v1410_v17 = vand.u32 3, %v6356_v1  ;;  %v5496_v63 = vld [vmem:[#allocation17 + $0x10] ss:$8 sps:$4 sm:$0xff]   ;;  %v5501_v0 = vld [vmem:[#allocation17 + $0x4] ss:$8 sps:$4 sm:$0xff]  }
 0x2bc   :  { %v1391_v18 = vmax.f32 %v1389_v27, %v1390_v39  ;;  %v1404_v20 = vrot.slane %v1403_v11, 1  ;;  %v1430_v21 = vsel %vm950_vm13, %v1384_v24, %v1429_v12  ;;  %v1448_v22 = vpack.c.bf16 %v1384_v24, %v1384_v24  ;;  %v5499_v2 = vld [vmem:[#allocation17] ss:$8 sps:$4 sm:$0xff]   ;;  %v5504_v7 = vld [vmem:[#allocation19 + $0x154] ss:$24 sps:$4 sm:$0xff]  }
 0x2bd   :  { %v1450_v58 = vpack.c.bf16 %v1398_v16, %v1398_v16  ;;  %v1623_v23 = vsel %vm946_vm11, %v1616_v15, %v1622_v14  ;;  %vm6616_vm7 = vcmp.ne.s32.totalorder %v1410_v17, 0  ;;  %v5502_v55 = vld [vmem:[#allocation19 + $0x150] ss:$24 sps:$4 sm:$0xff]   ;;  %v5507_v9 = vld [vmem:[#allocation19 + $0x15c] ss:$24 sps:$4 sm:$0xff]   ;;  %2680 = vmatprep.subr.bf16.mxu1 %v5504_v7 }
 0x2be   :  { %v1618_v25 = vunpack.c.l.b16 %v1448_v22  ;;  %v1405_v26 = vmax.f32 %v1403_v11, %v1404_v20  ;;  %v1431_v28 = vsel %vm952_vm14, %v1391_v18, %v1430_v21  ;;  %v1449_v62 = vpack.c.bf16 %v1391_v18, %v1391_v18  ;;  %vm4910_vm9 = vmpackc.low %vm6616_vm7, %vm6616_vm7  ;;  %v5505_v8 = vld [vmem:[#allocation19 + $0x158] ss:$24 sps:$4 sm:$0xff]   ;;  %v5510_v10 = vld [vmem:[#allocation19 + $0x124] ss:$24 sps:$4 sm:$0xff]  }
 0x2bf   :  { %v1432_v29 = vsel %vm954_vm15, %v1398_v16, %v1431_v28  ;;  %v1620_v33 = vunpack.c.l.b16 %v1450_v58  ;;  %v1624_v34 = vsel %vm948_vm12, %v1617_v13, %v1623_v23  ;;  %v5513_v27 = vld [vmem:[#allocation19 + $0x12c] ss:$24 sps:$4 sm:$0xff]   ;;  %v5508_v19 = vld [vmem:[#allocation19 + $0x120] ss:$24 sps:$4 sm:$0xff]   ;;  %v5519_v32 = vld [vmem:[#allocation19 + $0xfc] ss:$24 sps:$4 sm:$0xff]  }
 0x2c0   :  { %v1433_v35 = vsel %vm956_vm0, %v1405_v26, %v1432_v29  ;;  %v1451_v36 = vpack.c.bf16 %v1405_v26, %v1405_v26  ;;  %v1619_v37 = vunpack.c.l.b16 %v1449_v62  ;;  %v1625_v41 = vsel %vm950_vm13, %v1618_v25, %v1624_v34  ;;  %v5511_v4 = vld [vmem:[#allocation19 + $0x128] ss:$24 sps:$4 sm:$0xff]   ;;  %v5516_v15 = vld [vmem:[#allocation19 + $0xf4] ss:$24 sps:$4 sm:$0xff]   ;;  %v5517_v39 = vld [vmem:[#allocation19 + $0xf8] ss:$24 sps:$4 sm:$0xff]  }
 0x2c1   :  { %v1435_v42 = vrot.slane %v1433_v35, 7  ;;  %v1440_v3 = vrot.slane %v1433_v35, 1  ;;  %vm5164_vm13 = vcmp.ne.s32.totalorder %v1410_v17, 3  ;;  %v5514_v24 = vld [vmem:[#allocation19 + $0xf0] ss:$24 sps:$4 sm:$0xff]  }
 0x2c2   :  { %v1621_v31 = vunpack.c.l.b16 %v1451_v36  ;;  %v1626_v45 = vsel %vm952_vm14, %v1619_v37, %v1625_v41  ;;  %vm4947_vm14 = vmpackc.low %vm5164_vm13, %vm5164_vm13  ;;  %v5522_v11 = vld [vmem:[#allocation19 + $0xc4] ss:$24 sps:$4 sm:$0xff]   ;;  %v5520_v13 = vld [vmem:[#allocation19 + $0xc0] ss:$24 sps:$4 sm:$0xff]  }
 0x2c3   :  { %v4911_v46 = vpack.c.bf16 %v1435_v42, %v1435_v42  ;;  %v1627_v47 = vsel %vm954_vm15, %v1620_v33, %v1626_v45  ;;  %v4948_v6 = vpack.c.bf16 %v1440_v3, %v1440_v3  ;;  %v5525_v12 = vld [vmem:[#allocation19 + $0xcc] ss:$24 sps:$4 sm:$0xff]   ;;  %v5523_v14 = vld [vmem:[#allocation19 + $0xc8] ss:$24 sps:$4 sm:$0xff]   ;;  %v5531_v17 = vld [vmem:[#allocation19 + $0x9c] ss:$24 sps:$4 sm:$0xff]  }
 0x2c4   :  { %v1628_v49 = vsel %vm956_vm0, %v1621_v31, %v1627_v47  ;;  %v5528_v16 = vld [vmem:[#allocation19 + $0x94] ss:$24 sps:$4 sm:$0xff]   ;;  %v5526_v18 = vld [vmem:[#allocation19 + $0x90] ss:$24 sps:$4 sm:$0xff]   ;;  %v5534_v21 = vld [vmem:[#allocation19 + $0x64] ss:$24 sps:$4 sm:$0xff]  }
 0x2c5   :  { %4912 = vmatmul.mubr.msk.bf16.vlgmr.msra.gmra.mxu0 %vm4910_vm9, %v4911_v46  ;;  %v1629_v38 = vpack.c.b16 %v1628_v49, %v1628_v49  ;;  %v5529_v20 = vld [vmem:[#allocation19 + $0x98] ss:$24 sps:$4 sm:$0xff]   ;;  %v5537_v58 = vld [vmem:[#allocation19 + $0x6c] ss:$24 sps:$4 sm:$0xff]   ;;  %v5535_v23 = vld [vmem:[#allocation19 + $0x68] ss:$24 sps:$4 sm:$0xff]  }
 0x2c6   :  { %1850 = vmatpush1.bf16.msra.mxu0 %v5478_v43  ;;  %1881 = vmatprep.mubr.bf16.mxu0 %v6163_v44  ;;  %v5532_v22 = vld [vmem:[#allocation19 + $0x60] ss:$24 sps:$4 sm:$0xff]   ;;  %v5540_v25 = vld [vmem:[#allocation19 + $0x34] ss:$24 sps:$4 sm:$0xff]   ;;  %v5538_v26 = vld [vmem:[#allocation19 + $0x30] ss:$24 sps:$4 sm:$0xff]  }
 0x2c7   :  { %1744 = vmatmul.mubr.bf16.vlgmr.msra.gmra.mxu1 %v1629_v38  ;;  %1851 = vmatprep.subr.bf16.mxu0 %v5483_v48  ;;  %v5543_v28 = vld [vmem:[#allocation19 + $0x3c] ss:$24 sps:$4 sm:$0xff]   ;;  %v5541_v62 = vld [vmem:[#allocation19 + $0x38] ss:$24 sps:$4 sm:$0xff]   ;;  %v5549_v33 = vld [vmem:[#allocation19 + $0xc] ss:$24 sps:$4 sm:$0xff]  }
 0x2c8   :  { %2681 = vmatpush1.bf16.msra.mxu1 %v5502_v55  ;;  %v5546_v29 = vld [vmem:[#allocation19 + $0x4] ss:$24 sps:$4 sm:$0xff]   ;;  %v5547_v34 = vld [vmem:[#allocation19 + $0x8] ss:$24 sps:$4 sm:$0xff]   ;;  %v5552_v35 = vld [vmem:[#allocation19 + $0x2d4] ss:$24 sps:$4 sm:$0xff]  }
 0x2c9   :  { %2682 = vmatprep.subr.bf16.mxu1 %v5510_v10  ;;  %v5550_v36 = vld [vmem:[#allocation19 + $0x2d0] ss:$24 sps:$4 sm:$0xff]   ;;  %v5555_v37 = vld [vmem:[#allocation19 + $0x2dc] ss:$24 sps:$4 sm:$0xff]   ;;  %v5556_v43 = vld [vmem:[#allocation19 + $0x2a0] ss:$24 sps:$4 sm:$0xff]  }
 0x2ca   :  { %1852 = vmatpush1.bf16.msra.mxu0 %v5481_v50  ;;  %v5553_v41 = vld [vmem:[#allocation19 + $0x2d8] ss:$24 sps:$4 sm:$0xff]   ;;  %v5558_v42 = vld [vmem:[#allocation19 + $0x2a4] ss:$24 sps:$4 sm:$0xff]   ;;  %v5559_v45 = vld [vmem:[#allocation19 + $0x2a8] ss:$24 sps:$4 sm:$0xff]  }
 0x2cb   :  { %1853 = vmatprep.subr.bf16.mxu0 %v5486_v51  ;;  %v5561_v31 = vld [vmem:[#allocation19 + $0x2ac] ss:$24 sps:$4 sm:$0xff]   ;;  %v5562_v47 = vld [vmem:[#allocation19 + $0x270] ss:$24 sps:$4 sm:$0xff]   ;;  %v5567_v48 = vld [vmem:[#allocation19 + $0x27c] ss:$24 sps:$4 sm:$0xff]  }
 0x2cc   :  { %2683 = vmatpush1.bf16.msra.mxu1 %v5508_v19  ;;  %v5564_v46 = vld [vmem:[#allocation19 + $0x274] ss:$24 sps:$4 sm:$0xff]   ;;  %v5565_v49 = vld [vmem:[#allocation19 + $0x278] ss:$24 sps:$4 sm:$0xff]   ;;  %v5570_v38 = vld [vmem:[#allocation19 + $0x244] ss:$24 sps:$4 sm:$0xff]  }
 0x2cd   :  { %2684 = vmatprep.subr.bf16.mxu1 %v5516_v15  ;;  %v5568_v50 = vld [vmem:[#allocation19 + $0x240] ss:$24 sps:$4 sm:$0xff]   ;;  %v5573_v51 = vld [vmem:[#allocation19 + $0x24c] ss:$24 sps:$4 sm:$0xff]   ;;  %v5586_v3 = vld [vmem:[#allocation19 + $0x1b0] ss:$24 sps:$4 sm:$0xff]  }
 0x2ce   :  { %1854 = vmatpush1.bf16.msra.mxu0 %v5484_v52  ;;  %v5571_v52 = vld [vmem:[#allocation19 + $0x248] ss:$24 sps:$4 sm:$0xff]   ;;  %v5594_v55 = vld [vmem:[#allocation19 + $0x184] ss:$24 sps:$4 sm:$0xff]   ;;  %vm2967_vm15 = vcmask 15360  }
 0x2cf   :  { %1855 = vmatprep.subr.bf16.mxu0 %v5489_v53  ;;  %v5576_v53 = vld [vmem:[#allocation19 + $0x214] ss:$24 sps:$4 sm:$0xff]   ;;  %v5600_v10 = vld [vmem:[#allocation19 + $0x164] ss:$24 sps:$4 sm:$0xff]  }
 0x2d0   :  { %2685 = vmatpush1.bf16.msra.mxu1 %v5514_v24  ;;  %v5597_v7 = vld [vmem:[#allocation19 + $0x18c] ss:$24 sps:$4 sm:$0xff]  }
 0x2d1   :  { %2686 = vmatprep.subr.bf16.mxu1 %v5522_v11 }
 0x2d2   :  { %1856 = vmatpush1.bf16.msra.mxu0 %v5487_v54  ;;  %v5574_v54 = vld [vmem:[#allocation19 + $0x210] ss:$24 sps:$4 sm:$0xff]  }
 0x2d3   :  { %1857 = vmatprep.subr.bf16.mxu0 %v5492_v56  ;;  %v5577_v56 = vld [vmem:[#allocation19 + $0x218] ss:$24 sps:$4 sm:$0xff]  }
 0x2d4   :  { %2687 = vmatpush1.bf16.msra.mxu1 %v5520_v13  ;;  %v1892_v13 = vld [vmem:[%s6962_s14] sm:$0x3] }
 0x2d5   :  { %2688 = vmatprep.subr.bf16.mxu1 %v5528_v16  ;;  %v1906_v16 = vld [vmem:[%s6963_s15] sm:$0x3] }
 0x2d6   :  { %1858 = vmatpush1.bf16.msra.mxu0 %v5490_v57  ;;  %v5579_v57 = vld [vmem:[#allocation19 + $0x21c] ss:$24 sps:$4 sm:$0xff]  }
 0x2d7   :  { %1859 = vmatprep.subr.bf16.mxu0 %v5495_v59  ;;  %v5582_v59 = vld [vmem:[#allocation19 + $0x1e4] ss:$24 sps:$4 sm:$0xff]  }
 0x2d8   :  { %2689 = vmatpush1.bf16.msra.mxu1 %v5526_v18 }
 0x2d9   :  { %2690 = vmatprep.subr.bf16.mxu1 %v5534_v21 }
 0x2da   :  { %1860 = vmatpush1.bf16.msra.mxu0 %v5493_v60  ;;  %v5580_v60 = vld [vmem:[#allocation19 + $0x1e0] ss:$24 sps:$4 sm:$0xff]  }
 0x2db   :  { %1861 = vmatprep.subr.bf16.mxu0 %v5498_v61  ;;  %v5585_v61 = vld [vmem:[#allocation19 + $0x1ec] ss:$24 sps:$4 sm:$0xff]  }
 0x2dc   :  { %2691 = vmatpush1.bf16.msra.mxu1 %v5532_v22 }
 0x2dd   :  { %2692 = vmatprep.subr.bf16.mxu1 %v5540_v25 }
 0x2de   :  { %1862 = vmatpush1.bf16.msra.mxu0 %v5496_v63  ;;  %v5583_v63 = vld [vmem:[#allocation19 + $0x1e8] ss:$24 sps:$4 sm:$0xff]  }
 0x2df   :  { %1863 = vmatprep.subr.bf16.mxu0 %v5501_v0  ;;  %v5588_v0 = vld [vmem:[#allocation19 + $0x1b4] ss:$24 sps:$4 sm:$0xff]  }
 0x2e0   :  { %2693 = vmatpush1.bf16.msra.mxu1 %v5538_v26 }
 0x2e1   :  { %2694 = vmatprep.subr.bf16.mxu1 %v5546_v29 }
 0x2e2   :  { %1864 = vmatpush1.bf16.msra.mxu0 %v5499_v2  ;;  %v5591_v2 = vld [vmem:[#allocation19 + $0x1bc] ss:$24 sps:$4 sm:$0xff]  }
 0x2e3   :  { %2721 = vmatprep.subr.bf16.mxu0 %v5507_v9  ;;  %v5595_v9 = vld [vmem:[#allocation19 + $0x188] ss:$24 sps:$4 sm:$0xff]  }
 0x2e4   :  { %2695 = vmatpush1.bf16.msra.mxu1 %v5544_v30 }
 0x2e5   :  { %4949 = vmatmul.mubr.msk.bf16.vlgmr.msra.gmra.mxu0 %vm4947_vm14, %v4948_v6  ;;  %2696 = vmatprep.subr.bf16.mxu1 %v5552_v35  ;;  %v5589_v6 = vld [vmem:[#allocation19 + $0x1b8] ss:$24 sps:$4 sm:$0xff]  }
 0x2e6   :  { %2722 = vmatpush1.bf16.msra.mxu0 %v5505_v8  ;;  %v5592_v8 = vld [vmem:[#allocation19 + $0x180] ss:$24 sps:$4 sm:$0xff]  }
 0x2e7   :  { %2723 = vmatprep.subr.bf16.mxu0 %v5513_v27 }
 0x2e8   :  { %2697 = vmatpush2.bf16.msra.mxu1 %v5550_v36 }
 0x2e9   :  { %2698 = vmatprep.subr.bf16.mxu1 %v5558_v42 }
 0x2ea   :  { %2724 = vmatpush1.bf16.msra.mxu0 %v5511_v4 }
 0x2eb   :  { %2725 = vmatprep.subr.bf16.mxu0 %v5519_v32 }
 0x2ec   :  { %2699 = vmatpush2.bf16.msra.mxu1 %v5556_v43 }
 0x2ed   :  { %2700 = vmatprep.subr.bf16.mxu1 %v5564_v46 }
 0x2ee   :  { %2726 = vmatpush1.bf16.msra.mxu0 %v5517_v39 }
 0x2ef   :  { %2727 = vmatprep.subr.bf16.mxu0 %v5525_v12  ;;  %v6632_v12 = vsub.s32 0, %v6356_v1 }
 0x2f0   :  { %2701 = vmatpush2.bf16.msra.mxu1 %v5562_v47 }
 0x2f1   :  { %2702 = vmatprep.subr.bf16.mxu1 %v5570_v38  ;;  %v1897_v18 = vrot.slane %v1892_v13, %v6632_v12 }
 0x2f2   :  { %2728 = vmatpush1.bf16.msra.mxu0 %v5523_v14  ;;  %v6638_v14 = vsub.s32 1, %v6356_v1 }
 0x2f3   :  { %2729 = vmatprep.subr.bf16.mxu0 %v5531_v17 }
 0x2f4   :  { %2703 = vmatpush2.bf16.msra.mxu1 %v5568_v50 }
 0x2f5   :  { %2704 = vmatprep.subr.bf16.mxu1 %v5576_v53 }
 0x2f6   :  { %2730 = vmatpush1.bf16.msra.mxu0 %v5529_v20 }
 0x2f7   :  { %2731 = vmatprep.subr.bf16.mxu0 %v5537_v58  ;;  %v1911_v58 = vrot.slane %v1906_v16, %v6632_v12 }
 0x2f8   :  { %2705 = vmatpush2.bf16.msra.mxu1 %v5574_v54 }
 0x2f9   :  { %2706 = vmatprep.subr.bf16.mxu1 %v5582_v59 }
 0x2fa   :  { %2732 = vmatpush1.bf16.msra.mxu0 %v5535_v23  ;;  %v1901_v23 = vrot.slane %v1892_v13, %v6638_v14 }
 0x2fb   :  { %2733 = vmatprep.subr.bf16.mxu0 %v5543_v28 }
 0x2fc   :  { %2707 = vmatpush2.bf16.msra.mxu1 %v5580_v60 }
 0x2fd   :  { %2708 = vmatprep.subr.bf16.mxu1 %v5588_v0 }
 0x2fe   :  { %2734 = vmatpush1.bf16.msra.mxu0 %v5541_v62  ;;  %v1915_v62 = vrot.slane %v1906_v16, %v6638_v14 }
 0x2ff   :  { %2735 = vmatprep.subr.bf16.mxu0 %v5549_v33 }
 0x300   :  { %2709 = vmatpush2.bf16.msra.mxu1 %v5586_v3 }
 0x301   :  { %2710 = vmatprep.subr.bf16.mxu1 %v5594_v55 }
 0x302   :  { %2736 = vmatpush1.bf16.msra.mxu0 %v5547_v34 }
 0x303   :  { %2737 = vmatprep.subr.bf16.mxu0 %v5555_v37 }
 0x304   :  { %2711 = vmatpush2.bf16.msra.mxu1 %v5592_v8 }
 0x305   :  { %2762 = vmatprep.subr.bf16.mxu1 %v5600_v10 }
 0x306   :  { %2738 = vmatpush2.bf16.msra.mxu0 %v5553_v41 }
 0x307   :  { %2739 = vmatprep.subr.bf16.mxu0 %v5561_v31 }
 0x30a   :  { %2740 = vmatpush2.bf16.msra.mxu0 %v5559_v45 }
 0x30b   :  { %2741 = vmatprep.subr.bf16.mxu0 %v5567_v48 }
 0x30e   :  { %2742 = vmatpush2.bf16.msra.mxu0 %v5565_v49 }
 0x30f   :  { %2743 = vmatprep.subr.bf16.mxu0 %v5573_v51 }
 0x312   :  { %2744 = vmatpush2.bf16.msra.mxu0 %v5571_v52 }
 0x313   :  { %2745 = vmatprep.subr.bf16.mxu0 %v5579_v57 }
 0x316   :  { %2746 = vmatpush2.bf16.msra.mxu0 %v5577_v56 }
 0x317   :  { %2747 = vmatprep.subr.bf16.mxu0 %v5585_v61 }
 0x31a   :  { %2748 = vmatpush2.bf16.msra.mxu0 %v5583_v63 }
 0x31b   :  { %2749 = vmatprep.subr.bf16.mxu0 %v5591_v2 }
 0x31e   :  { %2750 = vmatpush2.bf16.msra.mxu0 %v5589_v6 }
 0x31f   :  { %2751 = vmatprep.subr.bf16.mxu0 %v5597_v7 }
 0x322   :  { %2752 = vmatpush2.bf16.msra.mxu0 %v5595_v9 }
 0x323   :  { %5287 = vmatprep.subr.bf16.mxu0 %v6160_v40 }
 0x385   :  { %v1599_v27 = vpop.f32.mrf.mxu0 }
 0x387   :  { %v1601_v19 = vpop.f32.mrf.mxu0  ;;  %v1745_v4 = vpop.f32.mrf.mxu1 }
 0x388   :  { %v1746_v17 = vadd.f32 %v1745_v4, %v1599_v27 }
 0x389   :  { %v1603_v15 = vpop.f32.mrf.mxu0  ;;  %v1747_v32 = vpop.f32.mrf.mxu1 }
 0x38a   :  { %v1748_v21 = vadd.f32 %v1747_v32, %v1601_v19 }
 0x38b   :  { %v1604_v24 = vpop.f32.mrf.mxu0  ;;  %v1749_v39 = vpop.f32.mrf.mxu1 }
 0x38d   :  { %v1750_v11 = vpop.f32.mrf.mxu1 }
 0x3a5   :  { %v1883_v20 = vpop.f32.mrf.mxu0 }
 0x3a6   :  { %v1890_v22 = vadd.f32 %v1883_v20, %v1746_v17 }
 0x3a7   :  { %v1885_v25 = vpop.f32.mrf.mxu0 }
 0x3a8   :  { %v1904_v26 = vmul.f32 %v1897_v18, %v1890_v22  ;;  %v1891_v28 = vadd.f32 %v1885_v25, %v1748_v21 }
 0x3a9   :  { %v1887_v29 = vpop.f32.mrf.mxu0 }
 0x3aa   :  { %v1918_v30 = vadd.f32 %v1911_v58, %v1904_v26  ;;  %v1905_v33 = vmul.f32 %v1901_v23, %v1891_v28 }
 0x3ab   :  { %v1888_v34 = vpop.f32.mrf.mxu0 }
 0x3ac   :  { %v1919_v35 = vadd.f32 %v1915_v62, %v1905_v33  ;;  %v1920_v36 = vmax.f32 %v1918_v30, 0.0 }
 0x3ae   :  { %v1921_v37 = vmax.f32 %v1919_v35, 0.0 }
 0x3b0   :  { %v1924_v41 = vcombine.low %v1920_v36, %v1921_v37  ;;  %v1925_v42 = vcombine.high %v1920_v36, %v1921_v37 }
 0x3b2   :  { %v1932_v43 = vrot.slane %v1924_v41, %v6468_v5  ;;  %v1939_v31 = vrot.slane %v1925_v42, %v6468_v5 }
 0x3b4   :  { %v1940_v45 = vcombine.high %v1932_v43, %v1932_v43  ;;  %v1941_v46 = vcombine.high %v1939_v31, %v1939_v31  ;;  %v1948_v47 = vrot.slane %v1932_v43, %v6468_v5  ;;  %v1964_v48 = vrot.slane %v1939_v31, %v6468_v5 }
 0x3b6   :  { %v1949_v49 = vcombine.high %v1948_v47, %v1948_v47  ;;  %v1956_v38 = vrot.slane %v1940_v45, %v6468_v5  ;;  %v1965_v50 = vcombine.high %v1964_v48, %v1964_v48  ;;  %v1972_v51 = vrot.slane %v1941_v46, %v6468_v5 }
 0x3b7   :  { %v1982_v52 = vsel %vm1349_vm3, %v1948_v47, -inf  ;;  %v2010_v53 = vsel %vm1349_vm3, %v1964_v48, -inf }
 0x3b8   :  { %v1957_v54 = vcombine.high %v1956_v38, %v1956_v38  ;;  %v1973_v56 = vcombine.high %v1972_v51, %v1972_v51  ;;  %v1983_v57 = vrot.slane %v1982_v52, 4  ;;  %v1989_v59 = vsel %vm1349_vm3, %v1949_v49, -inf }
 0x3b9   :  { %v1990_v60 = vrot.slane %v1989_v59, 4  ;;  %v1996_v61 = vsel %vm1349_vm3, %v1956_v38, -inf  ;;  %v2011_v63 = vrot.slane %v2010_v53, 4  ;;  %v2017_v0 = vsel %vm1349_vm3, %v1965_v50, -inf }
 0x3ba   :  { %v1984_v2 = vmax.f32 %v1982_v52, %v1983_v57  ;;  %v1997_v3 = vrot.slane %v1996_v61, 4  ;;  %v2003_v6 = vsel %vm1349_vm3, %v1957_v54, -inf  ;;  %v2018_v55 = vrot.slane %v2017_v0, 4 }
 0x3bb   :  { %v1991_v7 = vmax.f32 %v1989_v59, %v1990_v60  ;;  %v2004_v8 = vrot.slane %v2003_v6, 4  ;;  %v2012_v9 = vmax.f32 %v2010_v53, %v2011_v63  ;;  %v2024_v10 = vsel %vm1349_vm3, %v1972_v51, -inf }
 0x3bc   :  { %v1985_v27 = vrot.slane %v1984_v2, 2  ;;  %v1998_v19 = vmax.f32 %v1996_v61, %v1997_v3  ;;  %v2019_v4 = vmax.f32 %v2017_v0, %v2018_v55  ;;  %v2025_v15 = vrot.slane %v2024_v10, 4 }
 0x3bd   :  { %v1992_v32 = vrot.slane %v1991_v7, 2  ;;  %v2005_v24 = vmax.f32 %v2003_v6, %v2004_v8  ;;  %v2013_v39 = vrot.slane %v2012_v9, 2  ;;  %v2031_v11 = vsel %vm1349_vm3, %v1973_v56, -inf }
 0x3be   :  { %v1986_v13 = vmax.f32 %v1984_v2, %v1985_v27  ;;  %v1999_v16 = vrot.slane %v1998_v19, 2  ;;  %v2026_v17 = vmax.f32 %v2024_v10, %v2025_v15  ;;  %v2020_v18 = vrot.slane %v2019_v4, 2 }
 0x3bf   :  { %v2014_v20 = vmax.f32 %v2012_v9, %v2013_v39  ;;  %v1993_v21 = vmax.f32 %v1991_v7, %v1992_v32  ;;  %v2006_v22 = vrot.slane %v2005_v24, 2  ;;  %v2032_v58 = vrot.slane %v2031_v11, 4 }
 0x3c0   :  { %v1987_v23 = vrot.slane %v1986_v13, 1  ;;  %v2000_v25 = vmax.f32 %v1998_v19, %v1999_v16  ;;  %v2027_v26 = vrot.slane %v2026_v17, 2  ;;  %v2021_v28 = vmax.f32 %v2019_v4, %v2020_v18  ;;  %v5606_v16 = vld [vmem:[#allocation19 + $0x104] ss:$24 sps:$4 sm:$0xff]   ;;  %v5609_v18 = vld [vmem:[#allocation19 + $0xd4] ss:$24 sps:$4 sm:$0xff]  }
 0x3c1   :  { %v2015_v62 = vrot.slane %v2014_v20, 1  ;;  %v1994_v29 = vrot.slane %v1993_v21, 1  ;;  %v2007_v30 = vmax.f32 %v2005_v24, %v2006_v22  ;;  %v2033_v33 = vmax.f32 %v2031_v11, %v2032_v58  ;;  %v5598_v24 = vld [vmem:[#allocation19 + $0x160] ss:$24 sps:$4 sm:$0xff]   ;;  %v5603_v11 = vld [vmem:[#allocation19 + $0x134] ss:$24 sps:$4 sm:$0xff]  }
 0x3c2   :  { %v6661_v34 = vmax.f32 %v1986_v13, %v1987_v23  ;;  %v2001_v35 = vrot.slane %v2000_v25, 1  ;;  %v2022_v36 = vrot.slane %v2021_v28, 1  ;;  %v2028_v37 = vmax.f32 %v2026_v17, %v2027_v26  ;;  %v5601_v13 = vld [vmem:[#allocation19 + $0x130] ss:$24 sps:$4 sm:$0xff]   ;;  %v5604_v17 = vld [vmem:[#allocation19 + $0x100] ss:$24 sps:$4 sm:$0xff]  }
 0x3c3   :  { %v6663_v41 = vmax.f32 %v1993_v21, %v1994_v29  ;;  %v2008_v42 = vrot.slane %v2007_v30, 1  ;;  %v2034_v43 = vrot.slane %v2033_v33, 2  ;;  %v6665_v31 = vmax.f32 %v2014_v20, %v2015_v62  ;;  %v5607_v20 = vld [vmem:[#allocation19 + $0xd0] ss:$24 sps:$4 sm:$0xff]   ;;  %v5612_v21 = vld [vmem:[#allocation19 + $0xa4] ss:$24 sps:$4 sm:$0xff]  }
 0x3c4   :  { %v6667_v45 = vmax.f32 %v2021_v28, %v2022_v36  ;;  %v6669_v46 = vmax.f32 %v2000_v25, %v2001_v35  ;;  %v2029_v47 = vrot.slane %v2028_v37, 1  ;;  %v2038_v48 = vpack.c.bf16 %v6661_v34, %v6661_v34  ;;  %v5610_v22 = vld [vmem:[#allocation19 + $0xa0] ss:$24 sps:$4 sm:$0xff]   ;;  %v5615_v58 = vld [vmem:[#allocation19 + $0x74] ss:$24 sps:$4 sm:$0xff]  }
 0x3c5   :  { %v6673_v49 = vmax.f32 %v2007_v30, %v2008_v42  ;;  %v2035_v38 = vmax.f32 %v2033_v33, %v2034_v43  ;;  %v2039_v50 = vpack.c.bf16 %v6663_v41, %v6663_v41  ;;  %v2042_v51 = vpack.c.bf16 %v6665_v31, %v6665_v31  ;;  %v5613_v23 = vld [vmem:[#allocation19 + $0x70] ss:$24 sps:$4 sm:$0xff]   ;;  %v5618_v25 = vld [vmem:[#allocation19 + $0x44] ss:$24 sps:$4 sm:$0xff]   ;;  %v5616_v26 = vld [vmem:[#allocation19 + $0x40] ss:$24 sps:$4 sm:$0xff]  }
 0x3c6   :  { %v2043_v52 = vpack.c.bf16 %v6667_v45, %v6667_v45  ;;  %v6681_v53 = vmax.f32 %v2028_v37, %v2029_v47  ;;  %v2040_v54 = vpack.c.bf16 %v6669_v46, %v6669_v46  ;;  %v2182_v60 = vunpack.c.l.b16 %v2038_v48  ;;  %v5621_v28 = vld [vmem:[#allocation19 + $0x14] ss:$24 sps:$4 sm:$0xff]   ;;  %v5619_v62 = vld [vmem:[#allocation19 + $0x10] ss:$24 sps:$4 sm:$0xff]   ;;  %v5624_v29 = vld [vmem:[#allocation19 + $0x2e4] ss:$24 sps:$4 sm:$0xff]  }
 0x3c7   :  { %v2036_v56 = vrot.slane %v2035_v38, 1  ;;  %v2041_v57 = vpack.c.bf16 %v6673_v49, %v6673_v49  ;;  %v2183_v0 = vunpack.c.l.b16 %v2039_v50  ;;  %v2186_v3 = vunpack.c.l.b16 %v2042_v51  ;;  %v5622_v30 = vld [vmem:[#allocation19 + $0x2e0] ss:$24 sps:$4 sm:$0xff]   ;;  %v5627_v33 = vld [vmem:[#allocation19 + $0x2b4] ss:$24 sps:$4 sm:$0xff]  }
 0x3c8   :  { %v2044_v59 = vpack.c.bf16 %v6681_v53, %v6681_v53  ;;  %v2184_v61 = vunpack.c.l.b16 %v2040_v54  ;;  %v2187_v6 = vunpack.c.l.b16 %v2043_v52  ;;  %v5625_v35 = vld [vmem:[#allocation19 + $0x2b0] ss:$24 sps:$4 sm:$0xff]   ;;  %v5630_v36 = vld [vmem:[#allocation19 + $0x284] ss:$24 sps:$4 sm:$0xff]   ;;  %v5628_v37 = vld [vmem:[#allocation19 + $0x280] ss:$24 sps:$4 sm:$0xff]  }
 0x3c9   :  { %v6689_v63 = vmax.f32 %v2035_v38, %v2036_v56  ;;  %v2185_v2 = vunpack.c.l.b16 %v2041_v57  ;;  %v5633_v42 = vld [vmem:[#allocation19 + $0x254] ss:$24 sps:$4 sm:$0xff]   ;;  %v5631_v43 = vld [vmem:[#allocation19 + $0x250] ss:$24 sps:$4 sm:$0xff]   ;;  %v5636_v47 = vld [vmem:[#allocation19 + $0x224] ss:$24 sps:$4 sm:$0xff]  }
 0x3ca   :  { %v2190_v55 = vsel %vm944_vm10, %v2184_v61, %v2182_v60  ;;  %v2188_v27 = vunpack.c.l.b16 %v2044_v59  ;;  %v5634_v48 = vld [vmem:[#allocation19 + $0x220] ss:$24 sps:$4 sm:$0xff]   ;;  %v5639_v38 = vld [vmem:[#allocation19 + $0x1f4] ss:$24 sps:$4 sm:$0xff]   ;;  %v5637_v50 = vld [vmem:[#allocation19 + $0x1f0] ss:$24 sps:$4 sm:$0xff]  }
 0x3cb   :  { %v2045_v7 = vpack.c.bf16 %v6689_v63, %v6689_v63  ;;  %v2193_v8 = vsel %vm944_vm10, %v2185_v2, %v2183_v0  ;;  %v2191_v9 = vsel %vm946_vm11, %v2186_v3, %v2190_v55  ;;  %v5642_v51 = vld [vmem:[#allocation19 + $0x1c4] ss:$24 sps:$4 sm:$0xff]   ;;  %v5640_v52 = vld [vmem:[#allocation19 + $0x1c0] ss:$24 sps:$4 sm:$0xff]   ;;  %v5645_v54 = vld [vmem:[#allocation19 + $0x194] ss:$24 sps:$4 sm:$0xff]  }
 0x3cc   :  { %v2194_v10 = vsel %vm946_vm11, %v2187_v6, %v2193_v8  ;;  %v2192_v4 = vsel %vm948_vm12, %v2188_v27, %v2191_v9  ;;  %v5643_v56 = vld [vmem:[#allocation19 + $0x190] ss:$24 sps:$4 sm:$0xff]   ;;  %v2154_v57 = vsub.s32 2, %v6356_v1  ;;  %v2158_v59 = vsub.s32 3, %v6356_v1 }
 0x3cd   :  { %v2189_v19 = vunpack.c.l.b16 %v2045_v7  ;;  %v6699_v39 = vpack.c.b16 %v2192_v4, %v2192_v4  ;;  %v2142_v60 = vld [vmem:[%s6965_s17] sm:$0x3f]  ;;  %vm2971_vm11 = vcmask 1040384  }
 0x3ce   :  { %v2147_v61 = vrot.slane %v2142_v60, %v6632_v12  ;;  %v2155_v0 = vrot.slane %v2142_v60, %v2154_v57  ;;  %v2151_v2 = vrot.slane %v2142_v60, %v6638_v14  ;;  %v2159_v3 = vrot.slane %v2142_v60, %v2158_v59 }
 0x3cf   :  { %v2195_v15 = vsel %vm948_vm12, %v2189_v19, %v2194_v10  ;;  %vm2942_vm12 = vcmask 9216  }
 0x3d0   :  { %v2197_v32 = vpack.c.b16 %v2195_v15, %v2195_v15 }
 0x3d2   :  { %2712 = vmatprep.mubr.bf16.mxu1 %v2197_v32  ;;  %2753 = vmatprep.mubr.bf16.mxu0 %v2197_v32 }
 0x3d3   :  { %2713 = vmatmul.mubr.bf16.vlgmr.msra.gmra.mxu1 %v6699_v39  ;;  %2754 = vmatmul.mubr.bf16.vlgmr.msra.gmra.mxu0 %v6699_v39 }
 0x3d4   :  { %2763 = vmatpush1.bf16.msra.mxu1 %v5598_v24  ;;  %2794 = vmatprep.mubr.bf16.mxu1 %v2197_v32 }
 0x3d5   :  { %2764 = vmatprep.subr.bf16.mxu1 %v5603_v11  ;;  %5289 = vmatprep.mubr.msk.bf16.mxu0 %vm6161_vm8, %v6160_v40 }
 0x3d8   :  { %2765 = vmatpush1.bf16.msra.mxu1 %v5601_v13 }
 0x3d9   :  { %2766 = vmatprep.subr.bf16.mxu1 %v5606_v16 }
 0x3dc   :  { %2767 = vmatpush1.bf16.msra.mxu1 %v5604_v17 }
 0x3dd   :  { %2768 = vmatprep.subr.bf16.mxu1 %v5609_v18 }
 0x3e0   :  { %2769 = vmatpush1.bf16.msra.mxu1 %v5607_v20 }
 0x3e1   :  { %2770 = vmatprep.subr.bf16.mxu1 %v5612_v21 }
 0x3e4   :  { %2771 = vmatpush1.bf16.msra.mxu1 %v5610_v22 }
 0x3e5   :  { %2772 = vmatprep.subr.bf16.mxu1 %v5615_v58 }
 0x3e8   :  { %2773 = vmatpush1.bf16.msra.mxu1 %v5613_v23 }
 0x3e9   :  { %2774 = vmatprep.subr.bf16.mxu1 %v5618_v25 }
 0x3ec   :  { %2775 = vmatpush1.bf16.msra.mxu1 %v5616_v26 }
 0x3ed   :  { %2776 = vmatprep.subr.bf16.mxu1 %v5621_v28 }
 0x3f0   :  { %2777 = vmatpush1.bf16.msra.mxu1 %v5619_v62 }
 0x3f1   :  { %2778 = vmatprep.subr.bf16.mxu1 %v5624_v29 }
 0x3f4   :  { %2779 = vmatpush2.bf16.msra.mxu1 %v5622_v30 }
 0x3f5   :  { %2780 = vmatprep.subr.bf16.mxu1 %v5627_v33  ;;  %v2162_v33 = vsub.s32 4, %v6356_v1 }
 0x3f8   :  { %2781 = vmatpush2.bf16.msra.mxu1 %v5625_v35  ;;  %v2166_v35 = vsub.s32 5, %v6356_v1 }
 0x3f9   :  { %2782 = vmatprep.subr.bf16.mxu1 %v5630_v36  ;;  %v2163_v36 = vrot.slane %v2142_v60, %v2162_v33 }
 0x3fc   :  { %2783 = vmatpush2.bf16.msra.mxu1 %v5628_v37  ;;  %v2167_v37 = vrot.slane %v2142_v60, %v2166_v35 }
 0x3fd   :  { %2784 = vmatprep.subr.bf16.mxu1 %v5633_v42 }
 0x400   :  { %2785 = vmatpush2.bf16.msra.mxu1 %v5631_v43 }
 0x401   :  { %2786 = vmatprep.subr.bf16.mxu1 %v5636_v47 }
 0x404   :  { %2787 = vmatpush2.bf16.msra.mxu1 %v5634_v48 }
 0x405   :  { %2788 = vmatprep.subr.bf16.mxu1 %v5639_v38 }
 0x408   :  { %2789 = vmatpush2.bf16.msra.mxu1 %v5637_v50 }
 0x409   :  { %2790 = vmatprep.subr.bf16.mxu1 %v5642_v51 }
 0x40c   :  { %2791 = vmatpush2.bf16.msra.mxu1 %v5640_v52 }
 0x40d   :  { %2792 = vmatprep.subr.bf16.mxu1 %v5645_v54 }
 0x410   :  { %2793 = vmatpush2.bf16.msra.mxu1 %v5643_v56 }
 0x411   :  { %5323 = vmatprep.subr.bf16.mxu1 %v6160_v40 }
 0x413   :  { %2795 = vmatmul.mubr.bf16.vlgmr.msra.gmra.mxu1 %v6699_v39 }
 0x414   :  { %5325 = vmatprep.mubr.msk.bf16.mxu1 %vm6161_vm8, %v6160_v40 }
 0x493   :  { %v2714_v6 = vpop.f32.mrf.mxu1  ;;  %v2755_v55 = vpop.f32.mrf.mxu0 }
 0x494   :  { %v2715_v9 = vadd.f32 %v2714_v6, %v2147_v61  ;;  %v2756_v10 = vadd.f32 %v2755_v55, %v2155_v0 }
 0x495   :  { %v2716_v7 = vpop.f32.mrf.mxu1  ;;  %v2757_v8 = vpop.f32.mrf.mxu0 }
 0x496   :  { %v2717_v27 = vadd.f32 %v2716_v7, %v2151_v2  ;;  %v2758_v19 = vadd.f32 %v2757_v8, %v2159_v3 }
 0x497   :  { %v2718_v4 = vpop.f32.mrf.mxu1  ;;  %v2759_v15 = vpop.f32.mrf.mxu0 }
 0x498   :  { %v2805_v32 = vcombine.low %v2715_v9, %v2717_v27  ;;  %v2818_v24 = vcombine.low %v2756_v10, %v2758_v19 }
 0x499   :  { %v2719_v39 = vpop.f32.mrf.mxu1  ;;  %v2760_v11 = vpop.f32.mrf.mxu0 }
 0x49a   :  { %v2812_v13 = vrot.slane %v2805_v32, %v6468_v5  ;;  %v6718_v16 = vrot.slane %v2818_v24, %v6468_v5 }
 0x49c   :  { %v2844_v17 = vpack.c.bf16 %v6718_v16, %v6718_v16  ;;  %v3503_v18 = vrot.slane %v2812_v13, %v6468_v5  ;;  %v2826_v20 = vcombine.high %v6718_v16, %v6718_v16  ;;  %v2842_v28 = vpack.c.bf16 %v2812_v13, %v2812_v13 }
 0x49d   :  { %v6741_v29 = vcombine.high %v2812_v13, %v2812_v13 }
 0x49e   :  { %v2852_v21 = vsel %vm1046_vm5, %v2844_v17, 0  ;;  %v3531_v22 = vrot.slane %v2826_v20, %v6468_v5  ;;  %v6728_v58 = vcombine.high %v3503_v18, %v3503_v18  ;;  %v6732_v25 = vpack.c.bf16 %v2826_v20, %v2826_v20 }
 0x49f   :  { %5288 = vmatpush3.bf16.xpose.msra.mxu0 %v2852_v21  ;;  %v2843_v30 = vpack.c.bf16 %v6741_v29, %v6741_v29 }
 0x4a0   :  { %5293 = vmatprep.subr.bf16.mxu0 %v6160_v40  ;;  %v6730_v23 = vcombine.high %v3531_v22, %v3531_v22  ;;  %v2898_v62 = vsel %vm1046_vm5, %v6732_v25, 0 }
 0x4a2   :  { %v5408_v26 = vpack.i.bf16 %v6730_v23, %v6728_v58 }
 0x4a6   :  { %5290 = vmatmul.mubr.msk.bf16.vlgmr.msra.gmra.mxu0 %vm1046_vm5, %v2842_v28 }
 0x4a7   :  { %5294 = vmatpush3.bf16.xpose.msra.mxu0 %v2898_v62  ;;  %5295 = vmatprep.mubr.msk.bf16.mxu0 %vm6161_vm8, %v6160_v40 }
 0x4a8   :  { %5299 = vmatprep.subr.bf16.mxu0 %v6160_v40 }
 0x4ae   :  { %5296 = vmatmul.mubr.msk.bf16.vlgmr.msra.gmra.mxu0 %vm1046_vm5, %v2843_v30 }
 0x4af   :  { %5301 = vmatprep.mubr.msk.bf16.mxu0 %vm6161_vm8, %v6160_v40 }
 0x4d3   :  { %v2796_v42 = vpop.f32.mrf.mxu1 }
 0x4d4   :  { %v2797_v47 = vadd.f32 %v2796_v42, %v2163_v36 }
 0x4d5   :  { %v2798_v43 = vpop.f32.mrf.mxu1 }
 0x4d6   :  { %v2799_v48 = vadd.f32 %v2798_v43, %v2167_v37 }
 0x4d7   :  { %v2800_v38 = vpop.f32.mrf.mxu1 }
 0x4d8   :  { %v2831_v50 = vcombine.low %v2797_v47, %v2799_v48 }
 0x4d9   :  { %v2801_v51 = vpop.f32.mrf.mxu1 }
 0x4da   :  { %v2838_v52 = vrot.slane %v2831_v50, %v6468_v5 }
 0x4dc   :  { %v6752_v54 = vpack.c.bf16 %v2838_v52, %v2838_v52  ;;  %v2839_v56 = vcombine.high %v2838_v52, %v2838_v52  ;;  %v3543_v57 = vrot.slane %v2838_v52, %v6468_v5 }
 0x4de   :  { %v2973_v1 = vsel %vm2971_vm11, %v6752_v54, 0  ;;  %v3551_v59 = vrot.slane %v2839_v56, %v6468_v5  ;;  %v6761_v61 = vcombine.high %v3543_v57, %v3543_v57  ;;  %v2847_v37 = vpack.c.bf16 %v2839_v56, %v2839_v56 }
 0x4df   :  { %5300 = vmatpush3.bf16.msra.mxu0 %v2973_v1 }
 0x4e0   :  { %5305 = vmatprep.subr.bf16.mxu0 %v6160_v40  ;;  %v6759_v60 = vcombine.high %v3551_v59, %v3551_v59  ;;  %v3019_v43 = vsel %vm2971_vm11, %v2847_v37, 0 }
 0x4e2   :  { %v5413_v0 = vpack.i.bf16 %v6759_v60, %v6761_v61 }
 0x566   :  { %v2888_v2 = vpop.f32.mrf.mxu0 }
 0x567   :  { %v2940_v3 = vmul.f32 0.125, %v2888_v2 }
 0x568   :  { %v5291_v6 = vpop.f32.mrf.mxu0 }
 0x569   :  { %v2943_v55 = vsel %vm2942_vm12, %v2940_v3, -inf }
 0x56a   :  { %2944 = vmax.xlane.f32.xlu0 %v2943_v55  ;;  %v2891_v7 = vpop.f32.mrf.mxu0 }
 0x56c   :  { %v5292_v8 = vpop.f32.mrf.mxu0 }
 0x56e   :  { %v2934_v9 = vpop.f32.mrf.mxu0 }
 0x56f   :  { %v2941_v10 = vmul.f32 0.125, %v2934_v9 }
 0x570   :  { %v5297_v27 = vpop.f32.mrf.mxu0 }
 0x571   :  { %v2946_v19 = vsel %vm2942_vm12, %v2941_v10, -inf }
 0x572   :  { %2947 = vmax.xlane.f32.xlu0 %v2946_v19  ;;  %v2937_v4 = vpop.f32.mrf.mxu0 }
 0x574   :  { %v5298_v15 = vpop.f32.mrf.mxu0 }
 0x588   :  { %3085 = vrot.lane.b32.xlu0 %v2844_v17, %s6142_s3 }
 0x5f3   :  { %v2945_v32 = vpop.xlane.xlu0 %2944 }
 0x5f4   :  { %v2949_v24 = vsub.f32 %v2940_v3, %v2945_v32 }
 0x5f6   :  { %v2951_v39 = vmul.f32 1.442695, %v2949_v24 }
 0x5f8   :  { %5790 = vpow2.f32 %v2951_v39 }
 0x5fb   :  { %v2948_v11 = vpop.xlane.xlu0 %2947 }
 0x5fc   :  { %v2950_v13 = vsub.f32 %v2941_v10, %v2948_v11 }
 0x5fe   :  { %v2953_v18 = vmul.f32 1.442695, %v2950_v13 }
 0x600   :  { %5792 = vpow2.f32 %v2953_v18 }
 0x605   :  { %v5791_v20 = vpop.eup %5790 }
 0x606   :  { %v2955_v21 = vsel %vm2942_vm12, %v5791_v20, 0.0 }
 0x607   :  { %2956 = vadd.xlane.f32.xlu1 %v2955_v21 }
 0x60d   :  { %v5793_v22 = vpop.eup %5792 }
 0x60e   :  { %v2958_v62 = vsel %vm2942_vm12, %v5793_v22, 0.0 }
 0x60f   :  { %2959 = vadd.xlane.f32.xlu1 %v2958_v62 }
 0x620   :  { %3082 = vrot.lane.b32.xlu1 %v2842_v28, %s6142_s3 }
 0x624   :  { %3137 = vrot.lane.b32.xlu1 %v6732_v25, %s6142_s3 }
 0x628   :  { %3134 = vrot.lane.b32.xlu1 %v2843_v30, %s6142_s3  ;;  %v3086_v30 = vpop.permute.xlu0 %3085 }
 0x629   :  { %v3091_v38 = vsel %vm1046_vm5, %v3086_v30, 0 }
 0x690   :  { %v2957_v17 = vpop.xlane.xlu1 %2956 }
 0x691   :  { %5794 = vrcp.f32 %v2957_v17 }
 0x698   :  { %v2960_v33 = vpop.xlane.xlu1 %2959 }
 0x699   :  { %5796 = vrcp.f32 %v2960_v33 }
 0x69c   :  { %v3083_v48 = vpop.permute.xlu1 %3082 }
 0x69e   :  { %v5795_v35 = vpop.eup %5794 }
 0x69f   :  { %v2963_v36 = vmul.f32 %v5795_v35, %v5791_v20 }
 0x6a0   :  { %v3138_v50 = vpop.permute.xlu1 %3137 }
 0x6a1   :  { %v2965_v42 = vpack.c.bf16 %v2963_v36, %v2963_v36  ;;  %v3143_v51 = vsel %vm1046_vm5, %v3138_v50, 0 }
 0x6a3   :  { %5302 = vmatmul.mubr.msk.bf16.vlgmr.msra.gmra.mxu0 %vm2967_vm15, %v2965_v42 }
 0x6a4   :  { %5306 = vmatpush3.bf16.msra.mxu0 %v3019_v43  ;;  %5307 = vmatprep.mubr.msk.bf16.mxu0 %vm6161_vm8, %v6160_v40  ;;  %v3135_v52 = vpop.permute.xlu1 %3134 }
 0x6a5   :  { %5311 = vmatprep.subr.bf16.mxu0 %v6160_v40 }
 0x6a6   :  { %v5797_v25 = vpop.eup %5796 }
 0x6a7   :  { %v2964_v28 = vmul.f32 %v5797_v25, %v5793_v22 }
 0x6a9   :  { %v2966_v47 = vpack.c.bf16 %v2964_v28, %v2964_v28 }
 0x6ab   :  { %5308 = vmatmul.mubr.msk.bf16.vlgmr.msra.gmra.mxu0 %vm2967_vm15, %v2966_v47  ;;  %v5660_v47 = vld [vmem:[#allocation20 + $0x74] ss:$8 sps:$4 sm:$0xff]  }
 0x6ac   :  { %5312 = vmatpush3.bf16.xpose.msra.mxu0 %v3091_v38  ;;  %5313 = vmatprep.mubr.msk.bf16.mxu0 %vm6161_vm8, %v6160_v40 }
 0x6ad   :  { %5317 = vmatprep.subr.bf16.mxu0 %v6160_v40 }
 0x6b3   :  { %5314 = vmatmul.mubr.msk.bf16.vlgmr.msra.gmra.mxu0 %vm1046_vm5, %v3083_v48 }
 0x6b4   :  { %5318 = vmatpush3.bf16.xpose.msra.mxu0 %v3143_v51  ;;  %5319 = vmatprep.mubr.msk.bf16.mxu0 %vm6161_vm8, %v6160_v40 }
 0x6b5   :  { %5329 = vmatprep.subr.bf16.mxu0 %v6160_v40 }
 0x6bb   :  { %5320 = vmatmul.mubr.msk.bf16.vlgmr.msra.gmra.mxu0 %vm1046_vm5, %v3135_v52  ;;  %v5658_v52 = vld [vmem:[#allocation20 + $0x70] ss:$8 sps:$4 sm:$0xff]  }
 0x6bc   :  { %5331 = vmatprep.mubr.msk.bf16.mxu0 %vm6161_vm8, %v6160_v40 }
 0x763   :  { %v6792_v56 = vpop.f32.mrf.mxu0 }
 0x765   :  { %v5303_v57 = vpop.f32.mrf.mxu0 }
 0x767   :  { %v3012_v1 = vpop.f32.mrf.mxu0 }
 0x769   :  { %v5304_v59 = vpop.f32.mrf.mxu0 }
 0x76a   :  { %v5646_v59 = vld [vmem:[#allocation20 + $0x30] ss:$8 sps:$4 sm:$0xff]  }
 0x76b   :  { %v6794_v2 = vpop.f32.mrf.mxu0 }
 0x76c   :  { %v3063_v3 = vcombine.low %v6792_v56, %v6794_v2  ;;  %v3556_v2 = vpack.c.bf16 %v6759_v60, %v6759_v60 }
 0x76d   :  { %v5309_v6 = vpop.f32.mrf.mxu0 }
 0x76f   :  { %v3058_v55 = vpop.f32.mrf.mxu0 }
 0x770   :  { %v5651_v55 = vld [vmem:[#allocation20 + $0x24] ss:$8 sps:$4 sm:$0xff]  }
 0x771   :  { %v5310_v7 = vpop.f32.mrf.mxu0 }
 0x772   :  { %v5649_v7 = vld [vmem:[#allocation20 + $0x20] ss:$8 sps:$4 sm:$0xff]  }
 0x773   :  { %v3127_v8 = vpop.f32.mrf.mxu0 }
 0x774   :  { %v3185_v9 = vmul.f32 0.125, %v3127_v8  ;;  %v5654_v8 = vld [vmem:[#allocation20 + $0x14] ss:$8 sps:$4 sm:$0xff]  }
 0x775   :  { %v5315_v10 = vpop.f32.mrf.mxu0 }
 0x776   :  { %v3187_v27 = vsel %vm2942_vm12, %v3185_v9, -inf  ;;  %v5657_v10 = vld [vmem:[#allocation20 + $0x4] ss:$8 sps:$4 sm:$0xff]  }
 0x777   :  { %3188 = vmax.xlane.f32.xlu0 %v3187_v27  ;;  %v3130_v19 = vpop.f32.mrf.mxu0  ;;  %v5655_v27 = vld [vmem:[#allocation20] ss:$8 sps:$4 sm:$0xff]  }
 0x778   :  { %v3070_v19 = vrot.slane %v3063_v3, %v6468_v5 }
 0x779   :  { %v5316_v4 = vpop.f32.mrf.mxu0 }
 0x77a   :  { %v3536_v4 = vpack.c.bf16 %v6730_v23, %v6730_v23 }
 0x77b   :  { %v3179_v15 = vpop.f32.mrf.mxu0 }
 0x77c   :  { %v3186_v32 = vmul.f32 0.125, %v3179_v15  ;;  %v3511_v15 = vrot.slane %v6741_v29, %v6468_v5  ;;  %v3725_v29 = vsel %vm2971_vm11, %v3556_v2, 0 }
 0x77d   :  { %v5321_v24 = vpop.f32.mrf.mxu0 }
 0x77e   :  { %v3190_v39 = vsel %vm2942_vm12, %v3186_v32, -inf  ;;  %v3607_v24 = vsel %vm1046_vm5, %v3536_v4, 0  ;;  %v3512_v56 = vcombine.high %v3511_v15, %v3511_v15 }
 0x77f   :  { %3191 = vmax.xlane.f32.xlu1 %v3190_v39  ;;  %v3182_v11 = vpop.f32.mrf.mxu0  ;;  %v5661_v39 = vld [vmem:[#allocation20 + $0x60] ss:$8 sps:$4 sm:$0xff]  }
 0x780   :  { %v3516_v3 = vpack.c.bf16 %v3512_v56, %v3512_v56  ;;  %v5663_v11 = vld [vmem:[#allocation20 + $0x64] ss:$8 sps:$4 sm:$0xff]  }
 0x781   :  { %v5322_v13 = vpop.f32.mrf.mxu0 }
 0x782   :  { %v5664_v13 = vld [vmem:[#allocation20 + $0x50] ss:$8 sps:$4 sm:$0xff]  }
 0x790   :  { %3261 = vrot.lane.b32.xlu1 %v2847_v37, %s6142_s3  ;;  %v5648_v37 = vld [vmem:[#allocation20 + $0x34] ss:$8 sps:$4 sm:$0xff]  }
 0x800   :  { %v3189_v18 = vpop.xlane.xlu0 %3188 }
 0x801   :  { %v3193_v20 = vsub.f32 %v3185_v9, %v3189_v18  ;;  %v5652_v9 = vld [vmem:[#allocation20 + $0x10] ss:$8 sps:$4 sm:$0xff]   ;;  %v5666_v18 = vld [vmem:[#allocation20 + $0x54] ss:$8 sps:$4 sm:$0xff]  }
 0x803   :  { %v3195_v21 = vmul.f32 1.442695, %v3193_v20  ;;  %v5669_v20 = vld [vmem:[#allocation20 + $0x44] ss:$8 sps:$4 sm:$0xff]  }
 0x805   :  { %5798 = vpow2.f32 %v3195_v21  ;;  %v5667_v21 = vld [vmem:[#allocation20 + $0x40] ss:$8 sps:$4 sm:$0xff]  }
 0x808   :  { %v3192_v22 = vpop.xlane.xlu1 %3191 }
 0x809   :  { %v3194_v62 = vsub.f32 %v3186_v32, %v3192_v22  ;;  %v3072_v32 = vpack.c.bf16 %v3070_v19, %v3070_v19 }
 0x80b   :  { %v3197_v17 = vmul.f32 1.442695, %v3194_v62 }
 0x80c   :  { %v3262_v33 = vpop.permute.xlu1 %3261 }
 0x80d   :  { %5800 = vpow2.f32 %v3197_v17  ;;  %v3267_v35 = vsel %vm2971_vm11, %v3262_v33, 0  ;;  %v3523_v17 = vrot.slane %v6718_v16, %v6468_v5  ;;  %v3555_v16 = vpack.c.bf16 %v6761_v61, %v6761_v61 }
 0x80e   :  { %5330 = vmatpush3.bf16.msra.mxu0 %v3267_v35 }
 0x80f   :  { %3464 = vmatprep.subr.bf16.mxu0 %v5648_v37 }
 0x812   :  { %v5799_v36 = vpop.eup %5798 }
 0x813   :  { %v3199_v42 = vsel %vm2942_vm12, %v5799_v36, 0.0 }
 0x814   :  { %3200 = vadd.xlane.f32.xlu0 %v3199_v42 }
 0x81a   :  { %v5801_v43 = vpop.eup %5800 }
 0x81b   :  { %v3202_v25 = vsel %vm2942_vm12, %v5801_v43, 0.0 }
 0x81c   :  { %3203 = vadd.xlane.f32.xlu0 %v3202_v25 }
 0x832   :  { %3212 = vrot.lane.b32.xlu0 %v6752_v54, %s6142_s3 }
 0x89d   :  { %v3201_v28 = vpop.xlane.xlu0 %3200 }
 0x89e   :  { %5802 = vrcp.f32 %v3201_v28 }
 0x8a5   :  { %v3204_v30 = vpop.xlane.xlu0 %3203 }
 0x8a6   :  { %5804 = vrcp.f32 %v3204_v30 }
 0x8a9   :  { %v3213_v48 = vpop.permute.xlu0 %3212 }
 0x8aa   :  { %v3218_v38 = vsel %vm2971_vm11, %v3213_v48, 0 }
 0x8ab   :  { %v5803_v50 = vpop.eup %5802  ;;  %5324 = vmatpush3.bf16.msra.mxu1 %v3218_v38 }
 0x8ac   :  { %v3207_v51 = vmul.f32 %v5803_v50, %v5799_v36  ;;  %3380 = vmatprep.subr.bf16.mxu1 %v5660_v47  ;;  %v3524_v36 = vcombine.high %v3523_v17, %v3523_v17  ;;  %v3515_v50 = vpack.c.bf16 %v6728_v58, %v6728_v58 }
 0x8ae   :  { %v3209_v57 = vpack.c.bf16 %v3207_v51, %v3207_v51  ;;  %v3535_v28 = vpack.c.bf16 %v3524_v36, %v3524_v36  ;;  %v3679_v51 = vsel %vm2971_vm11, %v3555_v16, 0 }
 0x8b0   :  { %5326 = vmatmul.mubr.msk.bf16.vlgmr.msra.gmra.mxu1 %vm2967_vm15, %v3209_v57  ;;  %v3561_v38 = vsel %vm1046_vm5, %v3535_v28, 0 }
 0x8b1   :  { %3381 = vmatpush1.bf16.msra.mxu1 %v5658_v52  ;;  %3404 = vmatprep.mubr.bf16.mxu1 %v6163_v44 }
 0x8b2   :  { %3382 = vmatprep.subr.bf16.mxu1 %v5663_v11 }
 0x8b3   :  { %v5805_v54 = vpop.eup %5804 }
 0x8b4   :  { %v3208_v1 = vmul.f32 %v5805_v54, %v5801_v43 }
 0x8b5   :  { %3383 = vmatpush1.bf16.msra.mxu1 %v5661_v39 }
 0x8b6   :  { %v3210_v6 = vpack.c.bf16 %v3208_v1, %v3208_v1  ;;  %3384 = vmatprep.subr.bf16.mxu1 %v5666_v18 }
 0x8b8   :  { %5332 = vmatmul.mubr.msk.bf16.vlgmr.msra.gmra.mxu0 %vm2967_vm15, %v3210_v6 }
 0x8b9   :  { %3465 = vmatpush1.bf16.msra.mxu0 %v5646_v59  ;;  %3488 = vmatprep.mubr.bf16.mxu0 %v6163_v44 }
 0x8ba   :  { %3466 = vmatprep.subr.bf16.mxu0 %v5651_v55  ;;  %3385 = vmatpush1.bf16.msra.mxu1 %v5664_v13 }
 0x8bb   :  { %3386 = vmatprep.subr.bf16.mxu1 %v5669_v20 }
 0x8bd   :  { %3467 = vmatpush1.bf16.msra.mxu0 %v5649_v7 }
 0x8be   :  { %3468 = vmatprep.subr.bf16.mxu0 %v5654_v8  ;;  %3387 = vmatpush1.bf16.msra.mxu1 %v5667_v21 }
 0x8bf   :  { %5335 = vmatprep.subr.bf16.mxu1 %v6160_v40 }
 0x8c1   :  { %3469 = vmatpush1.bf16.msra.mxu0 %v5652_v9 }
 0x8c2   :  { %3470 = vmatprep.subr.bf16.mxu0 %v5657_v10 }
 0x8c5   :  { %3471 = vmatpush1.bf16.msra.mxu0 %v5655_v27 }
 0x8c6   :  { %5341 = vmatprep.subr.bf16.mxu0 %v6160_v40 }
 0x8c8   :  { %5071 = vmatmul.mubr.msk.bf16.vlgmr.msra.gmra.mxu0 %vm1046_vm5, %v3072_v32 }
 0x8c9   :  { %5342 = vmatpush3.bf16.xpose.msra.mxu0 %v3607_v24  ;;  %5343 = vmatprep.mubr.msk.bf16.mxu0 %vm6161_vm8, %v6160_v40 }
 0x8ca   :  { %5353 = vmatprep.subr.bf16.mxu0 %v6160_v40 }
 0x8d0   :  { %5344 = vmatmul.mubr.msk.bf16.vlgmr.msra.gmra.mxu0 %vm1046_vm5, %v3516_v3 }
 0x8d1   :  { %5354 = vmatpush3.bf16.msra.mxu0 %v3725_v29  ;;  %5355 = vmatprep.mubr.msk.bf16.mxu0 %vm6161_vm8, %v6160_v40 }
 0x8d2   :  { %5359 = vmatprep.subr.bf16.mxu0 %v6160_v40 }
 0x970   :  { %v3254_v22 = vpop.f32.mrf.mxu1 }
 0x972   :  { %v5327_v62 = vpop.f32.mrf.mxu1 }
 0x974   :  { %v3257_v33 = vpop.f32.mrf.mxu1 }
 0x976   :  { %v5328_v35 = vpop.f32.mrf.mxu1 }
 0x978   :  { %v3303_v42 = vpop.f32.mrf.mxu0 }
 0x979   :  { %v3311_v43 = vcombine.low %v3254_v22, %v3303_v42 }
 0x97a   :  { %v5333_v25 = vpop.f32.mrf.mxu0 }
 0x97b   :  { %v3318_v37 = vrot.slane %v3311_v43, %v6468_v5 }
 0x97c   :  { %v3306_v30 = vpop.f32.mrf.mxu0 }
 0x97d   :  { %v3320_v47 = vpack.c.bf16 %v3318_v37, %v3318_v37 }
 0x97e   :  { %v5334_v48 = vpop.f32.mrf.mxu0 }
 0x97f   :  { %5062 = vmatmul.mubr.msk.bf16.vlgmr.msra.gmra.mxu1 %vm1046_vm5, %v3320_v47 }
 0x980   :  { %5336 = vmatpush3.bf16.xpose.msra.mxu1 %v3561_v38  ;;  %5337 = vmatprep.mubr.msk.bf16.mxu1 %vm6161_vm8, %v6160_v40 }
 0x981   :  { %5347 = vmatprep.subr.bf16.mxu1 %v6160_v40 }
 0x987   :  { %5338 = vmatmul.mubr.msk.bf16.vlgmr.msra.gmra.mxu1 %vm1046_vm5, %v3515_v50 }
 0x988   :  { %v6847_v52 = vpop.f32.mrf.mxu0  ;;  %5348 = vmatpush3.bf16.msra.mxu1 %v3679_v51  ;;  %5349 = vmatprep.mubr.msk.bf16.mxu1 %vm6161_vm8, %v6160_v40 }
 0x98a   :  { %v6851_v57 = vpop.f32.mrf.mxu0 }
 0x98c   :  { %v3494_v54 = vpop.f32.mrf.mxu0 }
 0x98e   :  { %v3495_v1 = vpop.f32.mrf.mxu0 }
 0x990   :  { %v3643_v59 = vpop.f32.mrf.mxu0 }
 0x991   :  { %v3650_v6 = vmul.f32 0.125, %v3643_v59 }
 0x992   :  { %v5345_v55 = vpop.f32.mrf.mxu0 }
 0x993   :  { %v3654_v7 = vsel %vm2942_vm12, %v3650_v6, -inf }
 0x994   :  { %3655 = vmax.xlane.f32.xlu1 %v3654_v7  ;;  %v3646_v8 = vpop.f32.mrf.mxu0 }
 0x996   :  { %v5346_v9 = vpop.f32.mrf.mxu0 }
 0x9a5   :  { %5409 = vrot.lane.b32.xlu1 %v5408_v26, %s6142_s3 }
 0x9a9   :  { %3875 = vrot.lane.b32.xlu1 %v3512_v56, %s6142_s3 }
 0xa1d   :  { %v3656_v10 = vpop.xlane.xlu1 %3655 }
 0xa1e   :  { %v3658_v27 = vsub.f32 %v3650_v6, %v3656_v10 }
 0xa20   :  { %v3661_v19 = vmul.f32 1.442695, %v3658_v27 }
 0xa21   :  { %v5410_v22 = vpop.permute.xlu1 %5409 }
 0xa22   :  { %5806 = vpow2.f32 %v3661_v19  ;;  %v5412_v17 = vunpack.i.h.bf16 %v5410_v22  ;;  %v5411_v35 = vunpack.i.l.bf16 %v5410_v22 }
 0xa24   :  { %v3888_v42 = vpack.c.bf16 %v5412_v17, %v5412_v17  ;;  %v3879_v43 = vpack.c.bf16 %v5411_v35, %v5411_v35 }
 0xa26   :  { %v3947_v28 = vsel %vm1046_vm5, %v3888_v42, 0 }
 0xa2f   :  { %v5807_v4 = vpop.eup %5806 }
 0xa30   :  { %v3666_v15 = vsel %vm2942_vm12, %v5807_v4, 0.0 }
 0xa31   :  { %3667 = vadd.xlane.f32.xlu0 %v3666_v15 }
 0xa3f   :  { %v6860_v32 = vpop.f32.mrf.mxu1 }
 0xa41   :  { %v6862_v24 = vpop.f32.mrf.mxu1 }
 0xa43   :  { %v3410_v2 = vpop.f32.mrf.mxu1 }
 0xa45   :  { %v3411_v3 = vpop.f32.mrf.mxu1 }
 0xa47   :  { %3881 = vrot.lane.b32.xlu0 %v3524_v36, %s6142_s3  ;;  %v3597_v58 = vpop.f32.mrf.mxu1  ;;  %v3876_v36 = vpop.permute.xlu1 %3875 }
 0xa48   :  { %v3649_v23 = vmul.f32 0.125, %v3597_v58  ;;  %v3880_v47 = vpack.c.bf16 %v3876_v36, %v3876_v36 }
 0xa49   :  { %v5339_v26 = vpop.f32.mrf.mxu1 }
 0xa4a   :  { %v3651_v56 = vsel %vm2942_vm12, %v3649_v23, -inf  ;;  %v5670_v26 = vld [vmem:[#allocation20 + $0xb0] ss:$8 sps:$4 sm:$0xff]  }
 0xa4b   :  { %v3600_v29 = vpop.f32.mrf.mxu1  ;;  %3652 = vmax.xlane.f32.xlu1 %v3651_v56  ;;  %v5672_v56 = vld [vmem:[#allocation20 + $0xb4] ss:$8 sps:$4 sm:$0xff]  }
 0xa4c   :  { %3838 = vmatprep.subr.bf16.mxu1 %v5672_v56  ;;  %v5673_v29 = vld [vmem:[#allocation20 + $0xa0] ss:$8 sps:$4 sm:$0xff]  }
 0xa4d   :  { %v5340_v39 = vpop.f32.mrf.mxu1 }
 0xa4e   :  { %v5675_v39 = vld [vmem:[#allocation20 + $0xa4] ss:$8 sps:$4 sm:$0xff]  }
 0xaba   :  { %v3668_v11 = vpop.xlane.xlu0 %3667 }
 0xabb   :  { %5808 = vrcp.f32 %v3668_v11  ;;  %v5678_v11 = vld [vmem:[#allocation20 + $0x94] ss:$8 sps:$4 sm:$0xff]  }
 0xabe   :  { %v3882_v13 = vpop.permute.xlu0 %3881 }
 0xabf   :  { %v3887_v20 = vpack.c.bf16 %v3882_v13, %v3882_v13  ;;  %v5676_v13 = vld [vmem:[#allocation20 + $0x90] ss:$8 sps:$4 sm:$0xff]  }
 0xac1   :  { %v3901_v33 = vsel %vm1046_vm5, %v3887_v20, 0  ;;  %v5679_v20 = vld [vmem:[#allocation20 + $0x80] ss:$8 sps:$4 sm:$0xff]  }
 0xac8   :  { %v5809_v18 = vpop.eup %5808 }
 0xac9   :  { %v3672_v21 = vmul.f32 %v5809_v18, %v5807_v4  ;;  %v5681_v18 = vld [vmem:[#allocation20 + $0x84] ss:$8 sps:$4 sm:$0xff]  }
 0xacb   :  { %v3674_v62 = vpack.c.bf16 %v3672_v21, %v3672_v21 }
 0xacd   :  { %5356 = vmatmul.mubr.msk.bf16.vlgmr.msra.gmra.mxu0 %vm2967_vm15, %v3674_v62 }
 0xace   :  { %5360 = vmatpush3.bf16.xpose.msra.mxu0 %v3901_v33  ;;  %5361 = vmatprep.mubr.msk.bf16.mxu0 %vm6161_vm8, %v6160_v40 }
 0xacf   :  { %5365 = vmatprep.subr.bf16.mxu0 %v6160_v40 }
 0xad4   :  { %v3653_v25 = vpop.xlane.xlu1 %3652 }
 0xad5   :  { %v3657_v37 = vsub.f32 %v3649_v23, %v3653_v25  ;;  %5362 = vmatmul.mubr.msk.bf16.vlgmr.msra.gmra.mxu0 %vm1046_vm5, %v3879_v43 }
 0xad6   :  { %5366 = vmatpush3.bf16.xpose.msra.mxu0 %v3947_v28  ;;  %5367 = vmatprep.mubr.msk.bf16.mxu0 %vm6161_vm8, %v6160_v40 }
 0xad7   :  { %v3659_v30 = vmul.f32 1.442695, %v3657_v37  ;;  %5377 = vmatprep.subr.bf16.mxu0 %v6160_v40 }
 0xad9   :  { %5810 = vpow2.f32 %v3659_v30 }
 0xadd   :  { %5368 = vmatmul.mubr.msk.bf16.vlgmr.msra.gmra.mxu0 %vm1046_vm5, %v3880_v47 }
 0xade   :  { %5379 = vmatprep.mubr.msk.bf16.mxu0 %vm6161_vm8, %v6160_v40 }
 0xae6   :  { %v5811_v48 = vpop.eup %5810 }
 0xae7   :  { %v3663_v38 = vsel %vm2942_vm12, %v5811_v48, 0.0 }
 0xae8   :  { %3664 = vadd.xlane.f32.xlu0 %v3663_v38 }
 0xb71   :  { %v3665_v16 = vpop.xlane.xlu0 %3664 }
 0xb72   :  { %5812 = vrcp.f32 %v3665_v16 }
 0xb7f   :  { %v5813_v50 = vpop.eup %5812 }
 0xb80   :  { %v3671_v51 = vmul.f32 %v5813_v50, %v5811_v48 }
 0xb82   :  { %v3673_v54 = vpack.c.bf16 %v3671_v51, %v3671_v51 }
 0xb84   :  { %5350 = vmatmul.mubr.msk.bf16.vlgmr.msra.gmra.mxu1 %vm2967_vm15, %v3673_v54 }
 0xb85   :  { %3862 = vmatprep.mubr.bf16.mxu1 %v6163_v44  ;;  %3839 = vmatpush1.bf16.msra.mxu1 %v5670_v26 }
 0xb86   :  { %3840 = vmatprep.subr.bf16.mxu1 %v5675_v39  ;;  %v5688_v39 = vld [vmem:[#allocation20 + $0xd0] ss:$8 sps:$4 sm:$0xff]  }
 0xb89   :  { %3841 = vmatpush1.bf16.msra.mxu1 %v5673_v29  ;;  %v5687_v29 = vld [vmem:[#allocation20 + $0xe4] ss:$8 sps:$4 sm:$0xff]  }
 0xb8a   :  { %3842 = vmatprep.subr.bf16.mxu1 %v5678_v11  ;;  %v5690_v11 = vld [vmem:[#allocation20 + $0xd4] ss:$8 sps:$4 sm:$0xff]  }
 0xb8d   :  { %v3761_v1 = vpop.f32.mrf.mxu0  ;;  %3843 = vmatpush1.bf16.msra.mxu1 %v5676_v13  ;;  %v5699_v13 = vld [vmem:[#allocation22 + $0x64] ss:$8 sps:$4 sm:$0xff]  }
 0xb8e   :  { %3844 = vmatprep.subr.bf16.mxu1 %v5681_v18  ;;  %v5697_v18 = vld [vmem:[#allocation22 + $0x60] ss:$8 sps:$4 sm:$0xff]  }
 0xb8f   :  { %v5357_v59 = vpop.f32.mrf.mxu0 }
 0xb91   :  { %v3764_v6 = vpop.f32.mrf.mxu0  ;;  %3845 = vmatpush1.bf16.msra.mxu1 %v5679_v20  ;;  %v5702_v20 = vld [vmem:[#allocation22 + $0x54] ss:$8 sps:$4 sm:$0xff]  }
 0xb92   :  { %5371 = vmatprep.subr.bf16.mxu1 %v6160_v40 }
 0xb93   :  { %v5358_v55 = vpop.f32.mrf.mxu0 }
 0xb94   :  { %v5684_v55 = vld [vmem:[#allocation20 + $0xf4] ss:$8 sps:$4 sm:$0xff]  }
 0xb95   :  { %v3937_v7 = vpop.f32.mrf.mxu0 }
 0xb96   :  { %v3989_v8 = vmul.f32 0.125, %v3937_v7 }
 0xb97   :  { %v5363_v9 = vpop.f32.mrf.mxu0 }
 0xb98   :  { %v3991_v10 = vsel %vm2942_vm12, %v3989_v8, -inf }
 0xb99   :  { %3992 = vmax.xlane.f32.xlu0 %v3991_v10  ;;  %v3940_v27 = vpop.f32.mrf.mxu0 }
 0xb9b   :  { %v5364_v19 = vpop.f32.mrf.mxu0 }
 0xb9d   :  { %v3983_v4 = vpop.f32.mrf.mxu0 }
 0xb9e   :  { %v3990_v15 = vmul.f32 0.125, %v3983_v4  ;;  %v3491_v4 = vadd.f32 %v6847_v52, %v6860_v32  ;;  %v5693_v52 = vld [vmem:[#allocation20 + $0xc4] ss:$8 sps:$4 sm:$0xff]   ;;  %v5691_v32 = vld [vmem:[#allocation20 + $0xc0] ss:$8 sps:$4 sm:$0xff]  }
 0xb9f   :  { %v5369_v2 = vpop.f32.mrf.mxu0 }
 0xba0   :  { %v3994_v3 = vsel %vm2942_vm12, %v3990_v15, -inf  ;;  %v3493_v2 = vadd.f32 %v6851_v57, %v6862_v24  ;;  %v5694_v57 = vld [vmem:[#allocation22 + $0x70] ss:$8 sps:$4 sm:$0xff]   ;;  %v5696_v24 = vld [vmem:[#allocation22 + $0x74] ss:$8 sps:$4 sm:$0xff]  }
 0xba1   :  { %3995 = vmax.xlane.f32.xlu0 %v3994_v3  ;;  %v3986_v58 = vpop.f32.mrf.mxu0 }
 0xba3   :  { %v5370_v23 = vpop.f32.mrf.mxu0 }
 0xc22   :  { %v3993_v21 = vpop.xlane.xlu0 %3992 }
 0xc23   :  { %v3997_v22 = vsub.f32 %v3989_v8, %v3993_v21  ;;  %v5700_v21 = vld [vmem:[#allocation22 + $0x50] ss:$8 sps:$4 sm:$0xff]  }
 0xc25   :  { %v3999_v62 = vmul.f32 1.442695, %v3997_v22  ;;  %v5705_v22 = vld [vmem:[#allocation22 + $0x44] ss:$8 sps:$4 sm:$0xff]  }
 0xc27   :  { %5814 = vpow2.f32 %v3999_v62  ;;  %v5703_v62 = vld [vmem:[#allocation22 + $0x40] ss:$8 sps:$4 sm:$0xff]  }
 0xc2a   :  { %v3996_v17 = vpop.xlane.xlu0 %3995 }
 0xc2b   :  { %v3998_v33 = vsub.f32 %v3990_v15, %v3996_v17  ;;  %v5708_v17 = vld [vmem:[#allocation22 + $0x34] ss:$8 sps:$4 sm:$0xff]  }
 0xc2d   :  { %v4001_v35 = vmul.f32 1.442695, %v3998_v33  ;;  %v5706_v33 = vld [vmem:[#allocation22 + $0x30] ss:$8 sps:$4 sm:$0xff]  }
 0xc2f   :  { %5816 = vpow2.f32 %v4001_v35  ;;  %v5711_v35 = vld [vmem:[#allocation22 + $0x24] ss:$8 sps:$4 sm:$0xff]  }
 0xc34   :  { %v5815_v36 = vpop.eup %5814 }
 0xc35   :  { %v4003_v42 = vsel %vm2942_vm12, %v5815_v36, 0.0 }
 0xc36   :  { %4004 = vadd.xlane.f32.xlu1 %v4003_v42  ;;  %v5714_v42 = vld [vmem:[#allocation22 + $0x14] ss:$8 sps:$4 sm:$0xff]  }
 0xc3c   :  { %v5817_v43 = vpop.eup %5816 }
 0xc3d   :  { %v4006_v25 = vsel %vm2942_vm12, %v5817_v43, 0.0 }
 0xc3e   :  { %4007 = vadd.xlane.f32.xlu0 %v4006_v25 }
 0xc44   :  { %v3715_v37 = vpop.f32.mrf.mxu1 }
 0xc45   :  { %v3769_v28 = vcombine.low %v3715_v37, %v3761_v1 }
 0xc46   :  { %v5351_v30 = vpop.f32.mrf.mxu1 }
 0xc47   :  { %v3776_v47 = vrot.slane %v3769_v28, %v6468_v5  ;;  %5414 = vrot.lane.b32.xlu1 %v5413_v0, %s6142_s3 }
 0xc48   :  { %v3718_v48 = vpop.f32.mrf.mxu1 }
 0xc49   :  { %v3778_v38 = vpack.c.bf16 %v3776_v47, %v3776_v47 }
 0xc4a   :  { %v5352_v16 = vpop.f32.mrf.mxu1 }
 0xc4b   :  { %5084 = vmatmul.mubr.msk.bf16.vlgmr.msra.gmra.mxu1 %vm1046_vm5, %v3778_v38 }
 0xc4c   :  { %5373 = vmatprep.mubr.msk.bf16.mxu1 %vm6161_vm8, %v6160_v40  ;;  %v5682_v40 = vld [vmem:[#allocation20 + $0xf0] ss:$8 sps:$4 sm:$0xff]  }
 0xcbf   :  { %v4005_v50 = vpop.xlane.xlu1 %4004 }
 0xcc0   :  { %5818 = vrcp.f32 %v4005_v50 }
 0xcc3   :  { %v5415_v51 = vpop.permute.xlu1 %5414 }
 0xcc4   :  { %v5417_v54 = vunpack.i.h.bf16 %v5415_v51  ;;  %v5416_v1 = vunpack.i.l.bf16 %v5415_v51 }
 0xcc6   :  { %v3896_v59 = vpack.c.bf16 %v5417_v54, %v5417_v54  ;;  %v3895_v6 = vpack.c.bf16 %v5416_v1, %v5416_v1  ;;  %v5717_v1 = vld [vmem:[#allocation22 + $0x4] ss:$8 sps:$4 sm:$0xff]  }
 0xcc7   :  { %v4008_v7 = vpop.xlane.xlu0 %4007 }
 0xcc8   :  { %v4065_v60 = vsel %vm2971_vm11, %v3896_v59, 0  ;;  %v4019_v61 = vsel %vm2971_vm11, %v3895_v6, 0  ;;  %5820 = vrcp.f32 %v4008_v7  ;;  %v5715_v59 = vld [vmem:[#allocation22] ss:$8 sps:$4 sm:$0xff]   ;;  %v5720_v6 = vld [vmem:[#allocation22 + $0xf4] ss:$8 sps:$4 sm:$0xff]  }
 0xcc9   :  { %5372 = vmatpush3.bf16.msra.mxu1 %v4019_v61  ;;  %5378 = vmatpush3.bf16.msra.mxu0 %v4065_v60  ;;  %v5723_v7 = vld [vmem:[#allocation22 + $0xe4] ss:$8 sps:$4 sm:$0xff]   ;;  %v5721_v60 = vld [vmem:[#allocation22 + $0xe0] ss:$8 sps:$4 sm:$0xff]   ;;  %v5726_v61 = vld [vmem:[#allocation22 + $0xd4] ss:$8 sps:$4 sm:$0xff]  }
 0xcca   :  { %4178 = vmatprep.subr.bf16.mxu1 %v5684_v55  ;;  %4534 = vmatprep.subr.bf16.mxu0 %v5696_v24  ;;  %v5718_v55 = vld [vmem:[#allocation22 + $0xf0] ss:$8 sps:$4 sm:$0xff]   ;;  %v5759_v24 = vld [vmem:[#allocation23 + $0x24] ss:$8 sps:$4 sm:$0xff]  }
 0xccd   :  { %v5819_v0 = vpop.eup %5818 }
 0xcce   :  { %v4011_v8 = vmul.f32 %v5819_v0, %v5815_v36  ;;  %v5709_v36 = vld [vmem:[#allocation22 + $0x20] ss:$8 sps:$4 sm:$0xff]   ;;  %v5724_v0 = vld [vmem:[#allocation22 + $0xd0] ss:$8 sps:$4 sm:$0xff]  }
 0xcd0   :  { %v4013_v9 = vpack.c.bf16 %v4011_v8, %v4011_v8  ;;  %v5727_v8 = vld [vmem:[#allocation22 + $0xc0] ss:$8 sps:$4 sm:$0xff]  }
 0xcd2   :  { %5374 = vmatmul.mubr.msk.bf16.vlgmr.msra.gmra.mxu1 %vm2967_vm15, %v4013_v9  ;;  %v5730_v9 = vld [vmem:[#allocation22 + $0xb0] ss:$8 sps:$4 sm:$0xff]  }
 0xcd3   :  { %4179 = vmatpush1.bf16.msra.mxu1 %v5682_v40  ;;  %4202 = vmatprep.mubr.bf16.mxu1 %v6163_v44  ;;  %v5685_v44 = vld [vmem:[#allocation20 + $0xe0] ss:$8 sps:$4 sm:$0xff]   ;;  %v5732_v40 = vld [vmem:[#allocation22 + $0xb4] ss:$8 sps:$4 sm:$0xff]  }
 0xcd4   :  { %4180 = vmatprep.subr.bf16.mxu1 %v5687_v29  ;;  %v5750_v29 = vld [vmem:[#allocation23 + $0x54] ss:$8 sps:$4 sm:$0xff]  }
 0xcd5   :  { %v5821_v10 = vpop.eup %5820 }
 0xcd6   :  { %v4012_v27 = vmul.f32 %v5821_v10, %v5817_v43  ;;  %v5712_v43 = vld [vmem:[#allocation22 + $0x10] ss:$8 sps:$4 sm:$0xff]   ;;  %v5735_v10 = vld [vmem:[#allocation22 + $0xa4] ss:$8 sps:$4 sm:$0xff]  }
 0xcd7   :  { %4181 = vmatpush1.bf16.msra.mxu1 %v5685_v44  ;;  %v5745_v44 = vld [vmem:[#allocation23 + $0x60] ss:$8 sps:$4 sm:$0xff]  }
 0xcd8   :  { %v4014_v19 = vpack.c.bf16 %v4012_v27, %v4012_v27  ;;  %4182 = vmatprep.subr.bf16.mxu1 %v5690_v11  ;;  %v5733_v27 = vld [vmem:[#allocation22 + $0xa0] ss:$8 sps:$4 sm:$0xff]   ;;  %v5753_v11 = vld [vmem:[#allocation23 + $0x44] ss:$8 sps:$4 sm:$0xff]  }
 0xcda   :  { %5380 = vmatmul.mubr.msk.bf16.vlgmr.msra.gmra.mxu0 %vm2967_vm15, %v4014_v19  ;;  %v5738_v19 = vld [vmem:[#allocation22 + $0x94] ss:$8 sps:$4 sm:$0xff]  }
 0xcdb   :  { %4183 = vmatpush1.bf16.msra.mxu1 %v5688_v39  ;;  %4535 = vmatpush1.bf16.msra.mxu0 %v5694_v57  ;;  %v5748_v39 = vld [vmem:[#allocation23 + $0x50] ss:$8 sps:$4 sm:$0xff]  }
 0xcdc   :  { %4184 = vmatprep.subr.bf16.mxu1 %v5693_v52  ;;  %4536 = vmatprep.subr.bf16.mxu0 %v5699_v13  ;;  %v5751_v52 = vld [vmem:[#allocation23 + $0x40] ss:$8 sps:$4 sm:$0xff]   ;;  %v5754_v57 = vld [vmem:[#allocation23 + $0x30] ss:$8 sps:$4 sm:$0xff]  }
 0xcdd   :  { %v5757_v13 = vld [vmem:[#allocation23 + $0x20] ss:$8 sps:$4 sm:$0xff]  }
 0xcdf   :  { %4185 = vmatpush1.bf16.msra.mxu1 %v5691_v32  ;;  %4537 = vmatpush1.bf16.msra.mxu0 %v5697_v18  ;;  %v5756_v32 = vld [vmem:[#allocation23 + $0x34] ss:$8 sps:$4 sm:$0xff]  }
 0xce0   :  { %4538 = vmatprep.subr.bf16.mxu0 %v5702_v20  ;;  %v5762_v18 = vld [vmem:[#allocation23 + $0x14] ss:$8 sps:$4 sm:$0xff]   ;;  %v5760_v20 = vld [vmem:[#allocation23 + $0x10] ss:$8 sps:$4 sm:$0xff]  }
 0xce3   :  { %4539 = vmatpush1.bf16.msra.mxu0 %v5700_v21  ;;  %v5765_v21 = vld [vmem:[#allocation23 + $0x4] ss:$8 sps:$4 sm:$0xff]  }
 0xce4   :  { %4540 = vmatprep.subr.bf16.mxu0 %v5705_v22  ;;  %v5763_v22 = vld [vmem:[#allocation23] ss:$8 sps:$4 sm:$0xff]  }
 0xce7   :  { %4541 = vmatpush1.bf16.msra.mxu0 %v5703_v62  ;;  %v5768_v62 = vld [vmem:[#allocation23 + $0xf4] ss:$8 sps:$4 sm:$0xff]  }
 0xce8   :  { %4542 = vmatprep.subr.bf16.mxu0 %v5708_v17  ;;  %v5766_v17 = vld [vmem:[#allocation23 + $0xf0] ss:$8 sps:$4 sm:$0xff]  }
 0xceb   :  { %4543 = vmatpush1.bf16.msra.mxu0 %v5706_v33  ;;  %v5771_v33 = vld [vmem:[#allocation23 + $0xe4] ss:$8 sps:$4 sm:$0xff]  }
 0xcec   :  { %4544 = vmatprep.subr.bf16.mxu0 %v5711_v35  ;;  %v5769_v35 = vld [vmem:[#allocation23 + $0xe0] ss:$8 sps:$4 sm:$0xff]  }
 0xcef   :  { %4545 = vmatpush1.bf16.msra.mxu0 %v5709_v36  ;;  %v5774_v36 = vld [vmem:[#allocation23 + $0xd4] ss:$8 sps:$4 sm:$0xff]  }
 0xcf0   :  { %4546 = vmatprep.subr.bf16.mxu0 %v5714_v42  ;;  %v5772_v42 = vld [vmem:[#allocation23 + $0xd0] ss:$8 sps:$4 sm:$0xff]  }
 0xcf3   :  { %4547 = vmatpush1.bf16.msra.mxu0 %v5712_v43  ;;  %v5777_v43 = vld [vmem:[#allocation23 + $0xc4] ss:$8 sps:$4 sm:$0xff]  }
 0xcf4   :  { %4548 = vmatprep.subr.bf16.mxu0 %v5717_v1 }
 0xcf7   :  { %4549 = vmatpush1.bf16.msra.mxu0 %v5715_v59 }
 0xcf8   :  { %4550 = vmatprep.subr.bf16.mxu0 %v5720_v6 }
 0xcfb   :  { %4551 = vmatpush2.bf16.msra.mxu0 %v5718_v55 }
 0xcfc   :  { %4552 = vmatprep.subr.bf16.mxu0 %v5723_v7 }
 0xcff   :  { %4553 = vmatpush2.bf16.msra.mxu0 %v5721_v60 }
 0xd00   :  { %4554 = vmatprep.subr.bf16.mxu0 %v5726_v61 }
 0xd03   :  { %4555 = vmatpush2.bf16.msra.mxu0 %v5724_v0 }
 0xd0b   :  { %v3864_v15 = vpop.f32.mrf.mxu1 }
 0xd0c   :  { %v6904_v3 = vadd.f32 %v3864_v15, %v3491_v4  ;;  %v5736_v4 = vld [vmem:[#allocation22 + $0x90] ss:$8 sps:$4 sm:$0xff]   ;;  %v5741_v15 = vld [vmem:[#allocation22 + $0x84] ss:$8 sps:$4 sm:$0xff]  }
 0xd0d   :  { %v3866_v58 = vpop.f32.mrf.mxu1 }
 0xd0e   :  { %v6906_v23 = vadd.f32 %v3866_v58, %v3493_v2  ;;  %v5739_v2 = vld [vmem:[#allocation22 + $0x80] ss:$8 sps:$4 sm:$0xff]   ;;  %v5742_v58 = vld [vmem:[#allocation23 + $0x70] ss:$8 sps:$4 sm:$0xff]  }
 0xd0f   :  { %v3868_v26 = vpop.f32.mrf.mxu1 }
 0xd10   :  { %v5744_v26 = vld [vmem:[#allocation23 + $0x74] ss:$8 sps:$4 sm:$0xff]  }
 0xd11   :  { %v3869_v56 = vpop.f32.mrf.mxu1  ;;  %4783 = vmatprep.subr.bf16.mxu1 %v5744_v26 }
 0xd12   :  { %v5747_v56 = vld [vmem:[#allocation23 + $0x64] ss:$8 sps:$4 sm:$0xff]  }
 0xd92   :  { %v4055_v25 = vpop.f32.mrf.mxu1 }
 0xd94   :  { %v5375_v37 = vpop.f32.mrf.mxu1 }
 0xd95   :  { %v5780_v37 = vld [vmem:[#allocation23 + $0xb4] ss:$8 sps:$4 sm:$0xff]  }
 0xd96   :  { %v4058_v28 = vpop.f32.mrf.mxu1 }
 0xd97   :  { %v5778_v28 = vld [vmem:[#allocation23 + $0xb0] ss:$8 sps:$4 sm:$0xff]  }
 0xd98   :  { %v5376_v30 = vpop.f32.mrf.mxu1 }
 0xd99   :  { %v5783_v30 = vld [vmem:[#allocation23 + $0xa4] ss:$8 sps:$4 sm:$0xff]  }
 0xd9a   :  { %v4101_v47 = vpop.f32.mrf.mxu0 }
 0xd9b   :  { %v4109_v48 = vcombine.low %v4055_v25, %v4101_v47  ;;  %v5775_v25 = vld [vmem:[#allocation23 + $0xc0] ss:$8 sps:$4 sm:$0xff]  }
 0xd9c   :  { %v5381_v38 = vpop.f32.mrf.mxu0  ;;  %v5781_v47 = vld [vmem:[#allocation23 + $0xa0] ss:$8 sps:$4 sm:$0xff]  }
 0xd9d   :  { %v4116_v16 = vrot.slane %v4109_v48, %v6468_v5  ;;  %v5729_v5 = vld [vmem:[#allocation22 + $0xc4] ss:$8 sps:$4 sm:$0xff]  }
 0xd9e   :  { %v4104_v50 = vpop.f32.mrf.mxu0  ;;  %4556 = vmatprep.subr.bf16.mxu0 %v5729_v5 }
 0xd9f   :  { %v4118_v51 = vpack.c.bf16 %v4116_v16, %v4116_v16  ;;  %4557 = vmatpush2.bf16.msra.mxu0 %v5727_v8  ;;  %v4237_v16 = vld [vmem:[%s6967_s19] sm:$0x3] }
 0xda0   :  { %v5382_v54 = vpop.f32.mrf.mxu0  ;;  %4558 = vmatprep.subr.bf16.mxu0 %v5732_v40  ;;  %v4242_v59 = vrot.slane %v4237_v16, %v6632_v12 }
 0xda1   :  { %5097 = vmatmul.mubr.msk.bf16.vlgmr.msra.gmra.mxu1 %vm1046_vm5, %v4118_v51 }
 0xda2   :  { %4784 = vmatpush1.bf16.msra.mxu1 %v5742_v58 }
 0xda3   :  { %4559 = vmatpush2.bf16.msra.mxu0 %v5730_v9  ;;  %4785 = vmatprep.subr.bf16.mxu1 %v5747_v56 }
 0xda4   :  { %4560 = vmatprep.subr.bf16.mxu0 %v5735_v10 }
 0xda6   :  { %4786 = vmatpush1.bf16.msra.mxu1 %v5745_v44 }
 0xda7   :  { %4561 = vmatpush2.bf16.msra.mxu0 %v5733_v27  ;;  %4787 = vmatprep.subr.bf16.mxu1 %v5750_v29 }
 0xda8   :  { %4562 = vmatprep.subr.bf16.mxu0 %v5738_v19  ;;  %v4246_v19 = vrot.slane %v4237_v16, %v6638_v14 }
 0xdaa   :  { %4788 = vmatpush1.bf16.msra.mxu1 %v5748_v39 }
 0xdab   :  { %4563 = vmatpush2.bf16.msra.mxu0 %v5736_v4  ;;  %4789 = vmatprep.subr.bf16.mxu1 %v5753_v11 }
 0xdac   :  { %4564 = vmatprep.subr.bf16.mxu0 %v5741_v15 }
 0xdae   :  { %4790 = vmatpush1.bf16.msra.mxu1 %v5751_v52 }
 0xdaf   :  { %4565 = vmatpush2.bf16.msra.mxu0 %v5739_v2  ;;  %4791 = vmatprep.subr.bf16.mxu1 %v5756_v32 }
 0xdb2   :  { %4792 = vmatpush1.bf16.msra.mxu1 %v5754_v57 }
 0xdb3   :  { %4793 = vmatprep.subr.bf16.mxu1 %v5759_v24 }
 0xdb6   :  { %4794 = vmatpush1.bf16.msra.mxu1 %v5757_v13 }
 0xdb7   :  { %4795 = vmatprep.subr.bf16.mxu1 %v5762_v18 }
 0xdba   :  { %4796 = vmatpush1.bf16.msra.mxu1 %v5760_v20 }
 0xdbb   :  { %4797 = vmatprep.subr.bf16.mxu1 %v5765_v21 }
 0xdbe   :  { %4798 = vmatpush1.bf16.msra.mxu1 %v5763_v22 }
 0xdbf   :  { %4799 = vmatprep.subr.bf16.mxu1 %v5768_v62 }
 0xdc2   :  { %4800 = vmatpush2.bf16.msra.mxu1 %v5766_v17 }
 0xdc3   :  { %4801 = vmatprep.subr.bf16.mxu1 %v5771_v33 }
 0xdc6   :  { %4802 = vmatpush2.bf16.msra.mxu1 %v5769_v35 }
 0xdc7   :  { %4803 = vmatprep.subr.bf16.mxu1 %v5774_v36 }
 0xdca   :  { %4804 = vmatpush2.bf16.msra.mxu1 %v5772_v42 }
 0xdcb   :  { %4805 = vmatprep.subr.bf16.mxu1 %v5777_v43 }
 0xdce   :  { %4806 = vmatpush2.bf16.msra.mxu1 %v5775_v25 }
 0xdcf   :  { %4807 = vmatprep.subr.bf16.mxu1 %v5780_v37 }
 0xdd2   :  { %4808 = vmatpush2.bf16.msra.mxu1 %v5778_v28 }
 0xdd3   :  { %4809 = vmatprep.subr.bf16.mxu1 %v5783_v30 }
 0xdd6   :  { %4810 = vmatpush2.bf16.msra.mxu1 %v5781_v47 }
 0xe61   :  { %v4204_v48 = vpop.f32.mrf.mxu1 }
 0xe62   :  { %v4211_v38 = vadd.f32 %v4204_v48, %v6904_v3 }
 0xe63   :  { %v4206_v50 = vpop.f32.mrf.mxu1 }
 0xe64   :  { %v4215_v51 = vrot.slane %v4211_v38, 1  ;;  %v4217_v54 = vrot.slane %v4211_v38, 2  ;;  %v4219_v1 = vrot.slane %v4211_v38, 3  ;;  %v4212_v6 = vadd.f32 %v4206_v50, %v6906_v23 }
 0xe65   :  { %v4208_v55 = vpop.f32.mrf.mxu1  ;;  %v4229_v7 = vadd.f32 %v4211_v38, %v6661_v34 }
 0xe66   :  { %v4231_v60 = vadd.f32 %v4215_v51, %v6669_v46  ;;  %v4233_v61 = vadd.f32 %v4217_v54, %v6665_v31  ;;  %v4235_v3 = vadd.f32 %v4219_v1, %v6681_v53  ;;  %v4216_v0 = vrot.slane %v4212_v6, 1 }
 0xe67   :  { %v4218_v5 = vrot.slane %v4212_v6, 2  ;;  %v4220_v8 = vrot.slane %v4212_v6, 3  ;;  %v4209_v40 = vpop.f32.mrf.mxu1  ;;  %v4230_v27 = vadd.f32 %v4212_v6, %v6663_v41  ;;  %v4249_v4 = vadd.f32 %v4242_v59, %v4229_v7 }
 0xe68   :  { %v4251_v9 = vadd.f32 %v4242_v59, %v4231_v60  ;;  %v4255_v10 = vadd.f32 %v4242_v59, %v4235_v3  ;;  %v4232_v23 = vadd.f32 %v4216_v0, %v6673_v49  ;;  %v4253_v31 = vadd.f32 %v4242_v59, %v4233_v61 }
 0xe69   :  { %v4234_v34 = vadd.f32 %v4218_v5, %v6667_v45  ;;  %v4236_v46 = vadd.f32 %v4220_v8, %v6689_v63  ;;  %v4250_v44 = vadd.f32 %v4246_v19, %v4230_v27 }
 0xe6a   :  { %v4265_v15 = vrot.slane %v4251_v9, 7  ;;  %v4269_v53 = vrot.slane %v4255_v10, 7  ;;  %v4252_v2 = vadd.f32 %v4246_v19, %v4232_v23 }
 0xe6b   :  { %v4256_v58 = vadd.f32 %v4246_v19, %v4236_v46  ;;  %v4254_v41 = vadd.f32 %v4246_v19, %v4234_v34  ;;  %v5786_v34 = vld [vmem:[#allocation23 + $0x94] ss:$8 sps:$4 sm:$0xff]   ;;  %v5784_v46 = vld [vmem:[#allocation23 + $0x90] ss:$8 sps:$4 sm:$0xff]  }
 0xe6c   :  { %v4266_v26 = vsel %vm944_vm10, %v4265_v15, %v4249_v4  ;;  %v4270_v56 = vsel %vm944_vm10, %v4269_v53, %v4253_v31  ;;  %v4267_v39 = vrot.slane %v4252_v2, 7  ;;  %4811 = vmatprep.subr.bf16.mxu1 %v5786_v34  ;;  %v5789_v4 = vld [vmem:[#allocation23 + $0x84] ss:$8 sps:$4 sm:$0xff]   ;;  %v5787_v31 = vld [vmem:[#allocation23 + $0x80] ss:$8 sps:$4 sm:$0xff]  }
 0xe6d   :  { %v4277_v29 = vsel %vm1349_vm3, %v4266_v26, 0.0  ;;  %v4291_v49 = vsel %vm1349_vm3, %v4270_v56, 0.0  ;;  %v4271_v45 = vrot.slane %v4256_v58, 7  ;;  %4812 = vmatpush2.bf16.msra.mxu1 %v5784_v46  ;;  %v4346_v15 = vld [vmem:[%s6969_s21] sm:$0x3]  ;;  %s6164_s21 = smov [#allocation25]  }
 0xe6e   :  { %v4278_v11 = vrot.slane %v4277_v29, 4  ;;  %v4292_v63 = vrot.slane %v4291_v49, 4  ;;  %v4268_v52 = vsel %vm944_vm10, %v4267_v39, %v4250_v44  ;;  %4813 = vmatprep.subr.bf16.mxu1 %v5789_v4  ;;  %v4351_v53 = vrot.slane %v4346_v15, %v6632_v12  ;;  %s4842_s10 = sshll.u32 %s6164_s21, 4  ;;  %s4843_s10 = int_to_ptr.vmem [resolvable:$true] %s4842_s10 }
 0xe6f   :  { %v4272_v32 = vsel %vm944_vm10, %v4271_v45, %v4254_v41  ;;  %v4284_v24 = vsel %vm1349_vm3, %v4268_v52, 0.0  ;;  %v4355_v2 = vrot.slane %v4346_v15, %v6638_v14  ;;  %s6102_s1 = scalar_lea.vmem %s4843_s10, 64  ;;  %p6107_p1 = scmp.lt.s32.totalorder %s4843_s10, %s4843_s10 }
 0xe70   :  { %v4279_v57 = vadd.f32 %v4278_v11, %v4277_v29  ;;  %v4298_v13 = vsel %vm1349_vm3, %v4272_v32, 0.0  ;;  %v4293_v18 = vadd.f32 %v4292_v63, %v4291_v49  ;;  %v4285_v20 = vrot.slane %v4284_v24, 4  ;;  %v4611_v63 = vld [vmem:[%s6971_s23] sm:$0x3]  ;;  %p6103_p0 = scmp.ne.s32.totalorder %s4843_s10, %s6102_s1  ;;  %p6108_p2 = scmp.lt.s32.totalorder %s6102_s1, %s6102_s1 }
 0xe71   :  { %v4299_v21 = vrot.slane %v4298_v13, 4  ;;  %4814 = vmatpush2.bf16.msra.mxu1 %v5787_v31  ;;  %v4616_v52 = vrot.slane %v4611_v63, %v6632_v12  ;;  %v4620_v32 = vrot.slane %v4611_v63, %v6638_v14 }
 0xe72   :  { %v4280_v22 = vrot.slane %v4279_v57, 2  ;;  %v4294_v62 = vrot.slane %v4293_v18, 2  ;;  %v4286_v17 = vadd.f32 %v4285_v20, %v4284_v24  ;;  %p6109_p3 = por %p6108_p2, %p6107_p1 }
 0xe73   :  { %v4300_v33 = vadd.f32 %v4299_v21, %v4298_v13 }
 0xe74   :  { %v4281_v35 = vadd.f32 %v4280_v22, %v4279_v57  ;;  %v4295_v36 = vadd.f32 %v4294_v62, %v4293_v18  ;;  %v4287_v42 = vrot.slane %v4286_v17, 2  ;;  %p6110_p4 = pnand %p6109_p3, %p6103_p0 }
 0xe75   :  { %v4301_v43 = vrot.slane %v4300_v33, 2 }
 0xe76   :  { %v4282_v25 = vrot.slane %v4281_v35, 1  ;;  %v4296_v37 = vrot.slane %v4295_v36, 1  ;;  %v4288_v28 = vadd.f32 %v4287_v42, %v4286_v17 }
 0xe77   :  { %v4302_v30 = vadd.f32 %v4301_v43, %v4300_v33 }
 0xe78   :  { %v4283_v47 = vadd.f32 %v4282_v25, %v4281_v35  ;;  %v4297_v48 = vadd.f32 %v4296_v37, %v4295_v36  ;;  %v4289_v38 = vrot.slane %v4288_v28, 1 }
 0xe79   :  { %v4303_v16 = vrot.slane %v4302_v30, 1 }
 0xe7a   :  { %v4306_v50 = vmul.f32 0.5, %v4283_v47  ;;  %v4308_v51 = vmul.f32 0.5, %v4297_v48  ;;  %v4290_v54 = vadd.f32 %v4289_v38, %v4288_v28 }
 0xe7b   :  { %v4304_v1 = vadd.f32 %v4303_v16, %v4302_v30 }
 0xe7c   :  { %v4312_v59 = vpack.c.bf16 %v4308_v51, %v4308_v51  ;;  %v4307_v6 = vmul.f32 0.5, %v4290_v54  ;;  %v4310_v7 = vpack.c.bf16 %v4306_v50, %v4306_v50 }
 0xe7d   :  { %v4309_v55 = vmul.f32 0.5, %v4304_v1 }
 0xe7e   :  { %v4364_v60 = vunpack.c.l.b16 %v4312_v59  ;;  %v4311_v61 = vpack.c.bf16 %v4307_v6, %v4307_v6  ;;  %v4362_v8 = vunpack.c.l.b16 %v4310_v7 }
 0xe7f   :  { %v4313_v3 = vpack.c.bf16 %v4309_v55, %v4309_v55 }
 0xe80   :  { %v4366_v0 = vrot.slane %v4364_v60, 7  ;;  %v4363_v40 = vunpack.c.l.b16 %v4311_v61 }
 0xe81   :  { %v4365_v5 = vunpack.c.l.b16 %v4313_v3 }
 0xe82   :  { %v4367_v10 = vsel %vm944_vm10, %v4366_v0, %v4362_v8 }
 0xe83   :  { %v4368_v9 = vrot.slane %v4365_v5, 7  ;;  %v4370_v23 = vpack.c.b16 %v4367_v10, %v4367_v10 }
 0xe85   :  { %v4369_v27 = vsel %vm944_vm10, %v4368_v9, %v4363_v40 }
 0xe86   :  { %v4371_v19 = vpack.c.b16 %v4369_v27, %v4369_v27 }
 0xe88   :  { %4566 = vmatprep.mubr.bf16.mxu0 %v4371_v19 }
 0xe89   :  { %4567 = vmatmul.mubr.bf16.vlgmr.msra.gmra.mxu0 %v4370_v23 }
 0xf49   :  { %v4568_v58 = vpop.f32.mrf.mxu0 }
 0xf4a   :  { %v4569_v26 = vadd.f32 %v4568_v58, %v4351_v53 }
 0xf4b   :  { %v4570_v56 = vpop.f32.mrf.mxu0 }
 0xf4c   :  { %v4571_v44 = vadd.f32 %v4570_v56, %v4355_v2  ;;  %v4575_v41 = vmax.f32 %v4569_v26, 0.0 }
 0xf4d   :  { %v4572_v29 = vpop.f32.mrf.mxu0 }
 0xf4e   :  { %v4576_v49 = vmax.f32 %v4571_v44, 0.0  ;;  %v4577_v11 = vpack.c.bf16 %v4575_v41, %v4575_v41 }
 0xf4f   :  { %v4573_v39 = vpop.f32.mrf.mxu0 }
 0xf50   :  { %v4578_v45 = vpack.c.bf16 %v4576_v49, %v4576_v49 }
 0xf52   :  { %4815 = vmatprep.mubr.bf16.mxu1 %v4578_v45 }
 0xf53   :  { %4816 = vmatmul.mubr.bf16.vlgmr.msra.gmra.mxu1 %v4577_v11 }
0x1013   :  { %v4817_v57 = vpop.f32.mrf.mxu1 }
0x1014   :  { %v4818_v13 = vadd.f32 %v4817_v57, %v4616_v52 }
0x1015   :  { %v4819_v24 = vpop.f32.mrf.mxu1 }
0x1016   :  { %v4820_v18 = vadd.f32 %v4819_v24, %v4620_v32 }
0x1017   :  { %v4821_v20 = vpop.f32.mrf.mxu1 }
0x1018   :  { %v4826_v21 = vcombine.low %v4818_v13, %v4820_v18 }
0x1019   :  { %v4822_v22 = vpop.f32.mrf.mxu1 }
0x101a   :  { %5162 = vst.sshfl [vmem:[#allocation25] sm:$0x33 pattern:$0x76325410] %v4826_v21 }
0x101b   :  { %6113 = shalt.err (!%p6110_p4)
}
0x101c   :  { %4845 = dma.vmem_to_hbm [thread:$0]  %s4843_s10, 64, %s6972_s24, [#allocation4]  }
0x101d   :  { %6138 = dma.done.wait [#allocation4], 64  }
0x101e   :  { %6139 = vsyncadd [#allocation4], 4294967232 }
0x101f   :  { %4849 = vsyncpa [#allocation3], 1 }
0x1020   :  { %4850 = vsyncpa [#allocation6], 1 }
0x1021   :  { %4851 = vsyncpa [#allocation9], 1 }
0x1022   :  { %4852 = vsyncpa [#allocation12], 1 }
0x1023   :  { %4853 = vsyncpa [#allocation15], 1 }
0x1024   :  { %4854 = vsyncpa [#allocation18], 1 }
0x1025   :  { %4855 = vsyncpa [#allocation21], 1 }
0x1026   :  { %4856 = vsyncpa [#allocation24], 1 }
0x1027   :  { %4857 = vsyncpa [#allocation4], 1 }

</bundles_post_ra>
